<compile_context>
chip_gen: v5e
topology: v5e:2x2
jax: 0.10.0
libtpu: 0.0.40
codegen_flags: <defaults>
</compile_context>

<pallas_src>
import functools
import math

import jax
import jax.numpy as jnp
import numpy as np
from jax import lax
from jax.experimental import pallas as pl
from jax.experimental.pallas import tpu as pltpu

_NEG = -1e30  # masked-score fill (exp underflows to exactly 0.0)


# ------------------------------- Pallas kernel ------------------------------ #
def _layer_norm(x, gamma, beta, eps):
    mean = jnp.mean(x, axis=-1, keepdims=True)
    xc = x - mean
    var = jnp.mean(xc * xc, axis=-1, keepdims=True)
    return xc * lax.rsqrt(var + eps) * gamma + beta


def _mba_branch_kernel(x_ref, w_in_ref, b_in_ref, w_out_ref, b_out_ref,
                       g1_ref, be1_ref, w1_ref, b1_ref, w2_ref, b2_ref,
                       g2_ref, be2_ref, w_fin_ref,
                       out_ref, *, batch, nhead, eps, ff_chunk):
    """One TransformerEncoderLayer branch + its slice of the final Linear.

    Grid axis 0 = branch index ("parallel": each branch writes its own partial
    output block).  x_ref: (S*B, D) token-major rows (row r <-> batch r % B).
    Weight matrices arrive as bf16, pre-transposed to (in, out).
    """
    N, D = x_ref.shape                       # N = S*B
    F = w1_ref.shape[1]
    dh = D // nhead
    scale = 1.0 / math.sqrt(dh)

    x = x_ref[...]                                               # (N, D) f32

    # --- fused QKV projection: one GEMM for all tokens ---
    w_in = w_in_ref[...].astype(jnp.float32)                     # bf16 -> f32
    qkv = (jnp.dot(x, w_in, preferred_element_type=jnp.float32)
           + b_in_ref[...])                                      # (N, 3D)
    q = qkv[:, :D]
    k = qkv[:, D:2 * D]
    v = qkv[:, 2 * D:]

    # --- batch block-diagonal mask over token rows (token-major layout) ---
    row_b = lax.broadcasted_iota(jnp.int32, (N, N), 0) % batch
    col_b = lax.broadcasted_iota(jnp.int32, (N, N), 1) % batch
    same_batch = row_b == col_b

    # --- attention: per head, one masked score matmul over ALL rows; each
    #     head output feeds straight into its slice of the W_out GEMM.  No
    #     scratch, no masked scatter stores.
    w_out = w_out_ref[...].astype(jnp.float32)                   # (D, D)
    attn_out = jnp.zeros((N, D), jnp.float32) + b_out_ref[...]
    for h in range(nhead):
        qh = q[:, h * dh:(h + 1) * dh]                           # (N, dh)
        kh = k[:, h * dh:(h + 1) * dh]
        vh = v[:, h * dh:(h + 1) * dh]
        s = lax.dot_general(qh, kh, (((1,), (1,)), ((), ())),
                            preferred_element_type=jnp.float32) * scale
        s = jnp.where(same_batch, s, _NEG)
        s = s - jnp.max(s, axis=-1, keepdims=True)
        p = jnp.exp(s)
        p = p * pl.reciprocal(jnp.sum(p, axis=-1, keepdims=True), approx=False)
        oh = jnp.dot(p, vh, preferred_element_type=jnp.float32)  # (N, dh)
        attn_out = attn_out + jnp.dot(oh, w_out[h * dh:(h + 1) * dh, :],
                                      preferred_element_type=jnp.float32)

    # --- residual + LayerNorm1 ---
    y1 = _layer_norm(x + attn_out, g1_ref[...], be1_ref[...], eps)

    # --- feed-forward (chunked along F to bound vreg/VMEM pressure) ---
    ff = jnp.zeros((N, D), jnp.float32) + b2_ref[...]
    for f0 in range(0, F, ff_chunk):
        w1c = w1_ref[:, f0:f0 + ff_chunk].astype(jnp.float32)    # (D, FC)
        w2c = w2_ref[f0:f0 + ff_chunk, :].astype(jnp.float32)    # (FC, D)
        b1c = b1_ref[:, f0:f0 + ff_chunk]                        # (1, FC)
        hc = jnp.maximum(
            jnp.dot(y1, w1c, preferred_element_type=jnp.float32) + b1c, 0.0)
        ff = ff + jnp.dot(hc, w2c, preferred_element_type=jnp.float32)
    y2 = _layer_norm(y1 + ff, g2_ref[...], be2_ref[...], eps)

    # --- this branch's slice of the final Linear -> per-branch partial ---
    w_fin = w_fin_ref[...].astype(jnp.float32)
    out_ref[...] = jnp.dot(y2, w_fin, preferred_element_type=jnp.float32)


# ------------------------------ module wrapper ------------------------------ #
def multi_branch_attention_forward(params, x):
    """x: (S, B, D) -> (S, B, D), matching the PyTorch module (batch_first=False)."""
    S, B, D = x.shape
    NB = params["num_branches"]
    nhead = params["nhead"]
    F = params["dim_feedforward"]
    kp = params["kernel"]
    N = S * B

    # token-major flatten: a pure reshape, no transpose / extra HBM pass.
    x2d = x.reshape(N, D)

    ff_chunk = 512 if F % 512 == 0 else F
    kernel = functools.partial(_mba_branch_kernel, batch=B, nhead=nhead,
                               eps=params["eps"], ff_chunk=ff_chunk)

    per_branch = lambda br: (br, 0, 0)
    resident = lambda br: (0, 0)

    # advisory cost estimate (kernel is weight-DMA / latency bound at D=32)
    dh = D // nhead
    flops = NB * N * (2 * D * 3 * D          # qkv proj
                      + nhead * 4 * N * dh   # scores + PV
                      + 2 * D * D            # out proj
                      + 4 * D * F            # ffn
                      + 2 * D * D)           # final linear slice
    transcendentals = NB * (nhead * N * N + 4 * N)
    w_bytes = NB * 2 * (3 * D * D + D * D + D * F + F * D + D * D)   # bf16
    b_bytes = NB * 4 * (3 * D + D + F + D + 4 * D)
    act_bytes = NB * 4 * (2 * N * D)
    cost = pl.CostEstimate(flops=flops, transcendentals=transcendentals,
                           bytes_accessed=w_bytes + b_bytes + act_bytes)

    partials = pl.pallas_call(
        kernel,
        out_shape=jax.ShapeDtypeStruct((NB, N, D), jnp.float32),
        grid=(NB,),
        in_specs=[
            pl.BlockSpec((N, D), resident),                # x (shared)
            pl.BlockSpec((None, D, 3 * D), per_branch),    # W_in^T  (bf16)
            pl.BlockSpec((None, 1, 3 * D), per_branch),    # b_in
            pl.BlockSpec((None, D, D), per_branch),        # W_out^T (bf16)
            pl.BlockSpec((None, 1, D), per_branch),        # b_out
            pl.BlockSpec((None, 1, D), per_branch),        # LN1 gamma
            pl.BlockSpec((None, 1, D), per_branch),        # LN1 beta
            pl.BlockSpec((None, D, F), per_branch),        # W1^T    (bf16)
            pl.BlockSpec((None, 1, F), per_branch),        # b1
            pl.BlockSpec((None, F, D), per_branch),        # W2^T    (bf16)
            pl.BlockSpec((None, 1, D), per_branch),        # b2
            pl.BlockSpec((None, 1, D), per_branch),        # LN2 gamma
            pl.BlockSpec((None, 1, D), per_branch),        # LN2 beta
            pl.BlockSpec((None, D, D), per_branch),        # W_final slice^T (bf16)
        ],
        out_specs=pl.BlockSpec((None, N, D), per_branch),  # per-branch partial
        compiler_params=pltpu.CompilerParams(
            dimension_semantics=("parallel",),             # branches across TCs
            vmem_limit_bytes=32 * 1024 * 1024),
        cost_estimate=cost,
    )(x2d, kp["w_in_t"], kp["b_in"], kp["w_out_t"], kp["b_out"],
      kp["g1"], kp["be1"], kp["w1_t"], kp["b1"], kp["w2_t"], kp["b2"],
      kp["g2"], kp["be2"], kp["w_fin_t"])

    # tiny XLA epilogue: NB-way sum of (N, D) partials + final bias
    out2d = partials.sum(axis=0) + kp["b_fin"]
    return out2d.reshape(S, B, D)


# --------------------------------- params ----------------------------------- #
def init_mba_params(key, d_model, nhead, num_branches, dim_feedforward=2048,
                    layer_norm_eps=1e-5):
    D, F, NB = d_model, dim_feedforward, num_branches

    def uniform(k, shape, bound):
        return jax.random.uniform(k, shape, jnp.float32, -bound, bound)

    def wround(a):
        # Weight matrices are stored/streamed as bf16; round the f32 master
        # copy once so the kernel and the f32 reference use identical values.
        return a.astype(jnp.bfloat16).astype(jnp.float32)

    branches = []
    for _ in range(NB):
        key, k1, k2, k3, k4, k5, k6, k7, k8, k9, k10 = jax.random.split(key, 11)
        w_in = wround(uniform(k1, (3 * D, D), math.sqrt(6.0 / (4 * D))))
        b_in = uniform(k2, (3 * D,), 0.1)
        w_out = wround(uniform(k3, (D, D), 1.0 / math.sqrt(D)))
        b_out = uniform(k4, (D,), 1.0 / math.sqrt(D))
        w1 = wround(uniform(k5, (F, D), 1.0 / math.sqrt(D)))
        b1 = uniform(k6, (F,), 1.0 / math.sqrt(D))
        w2 = wround(uniform(k7, (D, F), 1.0 / math.sqrt(F)))
        b2 = uniform(k8, (D,), 1.0 / math.sqrt(F))
        g1 = 1.0 + uniform(k9, (D,), 0.1)
        be1 = uniform(k9, (D,), 0.1)
        g2 = 1.0 + uniform(k10, (D,), 0.1)
        be2 = uniform(k10, (D,), 0.1)
        branches.append(dict(w_in=w_in, b_in=b_in, w_out=w_out, b_out=b_out,
                             w1=w1, b1=b1, w2=w2, b2=b2,
                             g1=g1, be1=be1, g2=g2, be2=be2))

    key, kf1, kf2 = jax.random.split(key, 3)
    w_fin = wround(uniform(kf1, (D, NB * D), 1.0 / math.sqrt(NB * D)))
    b_fin = uniform(kf2, (D,), 1.0 / math.sqrt(NB * D))

    # kernel-ready: stacked along branch axis, pre-transposed to (in, out);
    # big matrices as bf16 (weight streaming), biases / LN params as f32.
    kern = dict(
        w_in_t=jnp.stack([b["w_in"].T for b in branches]).astype(jnp.bfloat16),
        b_in=jnp.stack([b["b_in"].reshape(1, 3 * D) for b in branches]),
        w_out_t=jnp.stack([b["w_out"].T for b in branches]).astype(jnp.bfloat16),
        b_out=jnp.stack([b["b_out"].reshape(1, D) for b in branches]),
        g1=jnp.stack([b["g1"].reshape(1, D) for b in branches]),
        be1=jnp.stack([b["be1"].reshape(1, D) for b in branches]),
        w1_t=jnp.stack([b["w1"].T for b in branches]).astype(jnp.bfloat16),
        b1=jnp.stack([b["b1"].reshape(1, F) for b in branches]),
        w2_t=jnp.stack([b["w2"].T for b in branches]).astype(jnp.bfloat16),
        b2=jnp.stack([b["b2"].reshape(1, D) for b in branches]),
        g2=jnp.stack([b["g2"].reshape(1, D) for b in branches]),
        be2=jnp.stack([b["be2"].reshape(1, D) for b in branches]),
        w_fin_t=jnp.stack([w_fin[:, i * D:(i + 1) * D].T
                           for i in range(NB)]).astype(jnp.bfloat16),
        b_fin=b_fin.reshape(1, D),
    )
    return dict(d_model=D, nhead=nhead, num_branches=NB, dim_feedforward=F,
                eps=layer_norm_eps, branches=branches, w_fin=w_fin,
                b_fin=b_fin, kernel=kern)


# ----------------------------- pure-JAX reference --------------------------- #
def _ln_ref(x, g, b, eps):
    m = jnp.mean(x, axis=-1, keepdims=True)
    v = jnp.mean((x - m) ** 2, axis=-1, keepdims=True)
    return (x - m) * lax.rsqrt(v + eps) * g + b


def multi_branch_attention_reference(params, x):
    S, B, D = x.shape
    nhead = params["nhead"]
    dh = D // nhead
    eps = params["eps"]
    hp = lax.Precision.HIGHEST
    outs = []
    for br in params["branches"]:
        qkv = jnp.einsum('sbd,ed->sbe', x, br["w_in"], precision=hp) + br["b_in"]
        q, k, v = jnp.split(qkv, 3, axis=-1)
        qh = q.reshape(S, B, nhead, dh)
        kh = k.reshape(S, B, nhead, dh)
        vh = v.reshape(S, B, nhead, dh)
        scores = jnp.einsum('sbhd,tbhd->bhst', qh, kh, precision=hp) / math.sqrt(dh)
        p = jax.nn.softmax(scores, axis=-1)
        o = jnp.einsum('bhst,tbhd->sbhd', p, vh, precision=hp).reshape(S, B, D)
        attn = jnp.einsum('sbd,ed->sbe', o, br["w_out"], precision=hp) + br["b_out"]
        y1 = _ln_ref(x + attn, br["g1"], br["be1"], eps)
        ff = jnp.maximum(
            jnp.einsum('sbd,fd->sbf', y1, br["w1"], precision=hp) + br["b1"], 0.0)
        ff = jnp.einsum('sbf,df->sbd', ff, br["w2"], precision=hp) + br["b2"]
        y2 = _ln_ref(y1 + ff, br["g2"], br["be2"], eps)
        outs.append(y2)
    cat = jnp.concatenate(outs, axis=-1)
    return jnp.einsum('sbk,dk->sbd', cat, params["w_fin"], precision=hp) + params["b_fin"]


# ----------------------------------- main ----------------------------------- #
if __name__ == "__main__":
    d_model = 32
    nhead = 4
    num_branches = 2
    dim_feedforward = 2048          # PyTorch nn.TransformerEncoderLayer default
    S, B = 8, 2                     # (seq, batch), batch_first=False

    key = jax.random.PRNGKey(0)
    key, pkey, xkey = jax.random.split(key, 3)

    params = init_mba_params(pkey, d_model, nhead, num_branches, dim_feedforward)
    x = jax.random.normal(xkey, (S, B, d_model), jnp.float32)

    out = jax.block_until_ready(multi_branch_attention_forward(params, x))
    ref = jax.block_until_ready(multi_branch_attention_reference(params, x))

    assert out.shape == (S, B, d_model), (out.shape, (S, B, d_model))
    np.testing.assert_allclose(np.asarray(out), np.asarray(ref),
                               rtol=2e-4, atol=2e-4)
    print("KERNEL_OK")
</pallas_src>

<mosaic_0001>
module attributes {stable_mosaic.version = 11 : i64} {
  func.func @_mba_branch_kernel(%arg0: i32, %arg1: memref<16x32xf32, #tpu.memory_space<vmem>>, %arg2: memref<1x32x96xbf16, #tpu.memory_space<vmem>>, %arg3: memref<1x1x96xf32, #tpu.memory_space<vmem>>, %arg4: memref<1x32x32xbf16, #tpu.memory_space<vmem>>, %arg5: memref<1x1x32xf32, #tpu.memory_space<vmem>>, %arg6: memref<1x1x32xf32, #tpu.memory_space<vmem>>, %arg7: memref<1x1x32xf32, #tpu.memory_space<vmem>>, %arg8: memref<1x32x2048xbf16, #tpu.memory_space<vmem>>, %arg9: memref<1x1x2048xf32, #tpu.memory_space<vmem>>, %arg10: memref<1x2048x32xbf16, #tpu.memory_space<vmem>>, %arg11: memref<1x1x32xf32, #tpu.memory_space<vmem>>, %arg12: memref<1x1x32xf32, #tpu.memory_space<vmem>>, %arg13: memref<1x1x32xf32, #tpu.memory_space<vmem>>, %arg14: memref<1x32x32xbf16, #tpu.memory_space<vmem>>, %arg15: memref<1x16x32xf32, #tpu.memory_space<vmem>>) attributes {dimension_semantics = [#tpu.dimension_semantics<parallel>], iteration_bounds = array<i64: 2>, scalar_prefetch = 0 : i64, scratch_operands = 0 : i64, tpu.core_type = #tpu.core_type<tc>, window_params = [{pipeline_mode = #tpu.pipeline_mode<synchronous>, transform_indices = @transform_0, window_bounds = array<i64: 16, 32>}, {transform_indices = @transform_1, window_bounds = array<i64: 1, 32, 96>}, {transform_indices = @transform_2, window_bounds = array<i64: 1, 1, 96>}, {transform_indices = @transform_3, window_bounds = array<i64: 1, 32, 32>}, {transform_indices = @transform_4, window_bounds = array<i64: 1, 1, 32>}, {transform_indices = @transform_5, window_bounds = array<i64: 1, 1, 32>}, {transform_indices = @transform_6, window_bounds = array<i64: 1, 1, 32>}, {transform_indices = @transform_7, window_bounds = array<i64: 1, 32, 2048>}, {transform_indices = @transform_8, window_bounds = array<i64: 1, 1, 2048>}, {transform_indices = @transform_9, window_bounds = array<i64: 1, 2048, 32>}, {transform_indices = @transform_10, window_bounds = array<i64: 1, 1, 32>}, {transform_indices = @transform_11, window_bounds = array<i64: 1, 1, 32>}, {transform_indices = @transform_12, window_bounds = array<i64: 1, 1, 32>}, {transform_indices = @transform_13, window_bounds = array<i64: 1, 32, 32>}, {transform_indices = @transform_14, window_bounds = array<i64: 1, 16, 32>}]} {
    %c0 = arith.constant 0 : index
    %c0_0 = arith.constant 0 : index
    %0 = vector.load %arg1[%c0, %c0_0] : memref<16x32xf32, #tpu.memory_space<vmem>>, vector<16x32xf32>
    %c0_1 = arith.constant 0 : index
    %c0_2 = arith.constant 0 : index
    %c0_3 = arith.constant 0 : index
    %1 = vector.load %arg2[%c0_1, %c0_2, %c0_3] : memref<1x32x96xbf16, #tpu.memory_space<vmem>>, vector<1x32x96xbf16>
    %2 = vector.shape_cast %1 : vector<1x32x96xbf16> to vector<32x96xbf16>
    %3 = arith.extf %2 : vector<32x96xbf16> to vector<32x96xf32>
    %cst = arith.constant dense<0.000000e+00> : vector<16x96xf32>
    %4 = tpu.matmul %0, %3, %cst {dimension_numbers = #tpu.dot_dimension_numbers<[1], [0], [0], [1], [0, 0, 1, 1], [], []>} : vector<16x32xf32>, vector<32x96xf32>, vector<16x96xf32> -> vector<16x96xf32>
    %c0_4 = arith.constant 0 : index
    %c0_5 = arith.constant 0 : index
    %c0_6 = arith.constant 0 : index
    %5 = vector.load %arg3[%c0_4, %c0_5, %c0_6] : memref<1x1x96xf32, #tpu.memory_space<vmem>>, vector<1x1x96xf32>
    %6 = vector.shape_cast %5 : vector<1x1x96xf32> to vector<1x96xf32>
    %7 = vector.broadcast %6 : vector<1x96xf32> to vector<16x96xf32>
    %8 = arith.addf %4, %7 : vector<16x96xf32>
    %9 = vector.extract_strided_slice %8 {offsets = [0, 0], sizes = [16, 32], strides = [1, 1]} : vector<16x96xf32> to vector<16x32xf32>
    %10 = vector.extract_strided_slice %8 {offsets = [0, 32], sizes = [16, 32], strides = [1, 1]} : vector<16x96xf32> to vector<16x32xf32>
    %11 = vector.extract_strided_slice %8 {offsets = [0, 64], sizes = [16, 32], strides = [1, 1]} : vector<16x96xf32> to vector<16x32xf32>
    %12 = tpu.iota {dimensions = array<i32: 0>} : vector<16x16xi32>
    %c2_i32 = arith.constant 2 : i32
    %c0_i32 = arith.constant 0 : i32
    %13 = arith.cmpi eq, %c2_i32, %c0_i32 : i32
    %c1_i32 = arith.constant 1 : i32
    %14 = arith.select %13, %c1_i32, %c2_i32 : i32
    %15 = vector.broadcast %14 : i32 to vector<16x16xi32>
    %16 = arith.remsi %12, %15 : vector<16x16xi32>
    %c0_i32_7 = arith.constant 0 : i32
    %17 = vector.broadcast %c0_i32_7 : i32 to vector<16x16xi32>
    %18 = arith.cmpi ne, %16, %17 : vector<16x16xi32>
    %c0_i32_8 = arith.constant 0 : i32
    %19 = vector.broadcast %c0_i32_8 : i32 to vector<16x16xi32>
    %20 = arith.cmpi slt, %16, %19 : vector<16x16xi32>
    %c0_i32_9 = arith.constant 0 : i32
    %21 = arith.cmpi slt, %14, %c0_i32_9 : i32
    %22 = vector.broadcast %21 : i1 to vector<16x16xi1>
    %23 = vector.broadcast %22 : vector<16x16xi1> to vector<16x16xi1>
    %24 = arith.xori %20, %23 : vector<16x16xi1>
    %25 = arith.andi %24, %18 : vector<16x16xi1>
    %26 = vector.broadcast %14 : i32 to vector<16x16xi32>
    %27 = arith.addi %16, %26 : vector<16x16xi32>
    %28 = arith.select %25, %27, %16 : vector<16x16xi1>, vector<16x16xi32>
    %29 = tpu.iota {dimensions = array<i32: 1>} : vector<16x16xi32>
    %c2_i32_10 = arith.constant 2 : i32
    %c0_i32_11 = arith.constant 0 : i32
    %30 = arith.cmpi eq, %c2_i32_10, %c0_i32_11 : i32
    %c1_i32_12 = arith.constant 1 : i32
    %31 = arith.select %30, %c1_i32_12, %c2_i32_10 : i32
    %32 = vector.broadcast %31 : i32 to vector<16x16xi32>
    %33 = arith.remsi %29, %32 : vector<16x16xi32>
    %c0_i32_13 = arith.constant 0 : i32
    %34 = vector.broadcast %c0_i32_13 : i32 to vector<16x16xi32>
    %35 = arith.cmpi ne, %33, %34 : vector<16x16xi32>
    %c0_i32_14 = arith.constant 0 : i32
    %36 = vector.broadcast %c0_i32_14 : i32 to vector<16x16xi32>
    %37 = arith.cmpi slt, %33, %36 : vector<16x16xi32>
    %c0_i32_15 = arith.constant 0 : i32
    %38 = arith.cmpi slt, %31, %c0_i32_15 : i32
    %39 = vector.broadcast %38 : i1 to vector<16x16xi1>
    %40 = vector.broadcast %39 : vector<16x16xi1> to vector<16x16xi1>
    %41 = arith.xori %37, %40 : vector<16x16xi1>
    %42 = arith.andi %41, %35 : vector<16x16xi1>
    %43 = vector.broadcast %31 : i32 to vector<16x16xi32>
    %44 = arith.addi %33, %43 : vector<16x16xi32>
    %45 = arith.select %42, %44, %33 : vector<16x16xi1>, vector<16x16xi32>
    %46 = arith.cmpi eq, %28, %45 : vector<16x16xi32>
    %c0_16 = arith.constant 0 : index
    %c0_17 = arith.constant 0 : index
    %c0_18 = arith.constant 0 : index
    %47 = vector.load %arg4[%c0_16, %c0_17, %c0_18] : memref<1x32x32xbf16, #tpu.memory_space<vmem>>, vector<1x32x32xbf16>
    %48 = vector.shape_cast %47 : vector<1x32x32xbf16> to vector<32x32xbf16>
    %49 = arith.extf %48 : vector<32x32xbf16> to vector<32x32xf32>
    %cst_19 = arith.constant 0.000000e+00 : f32
    %50 = vector.broadcast %cst_19 : f32 to vector<16x32xf32>
    %c0_20 = arith.constant 0 : index
    %c0_21 = arith.constant 0 : index
    %c0_22 = arith.constant 0 : index
    %51 = vector.load %arg5[%c0_20, %c0_21, %c0_22] : memref<1x1x32xf32, #tpu.memory_space<vmem>>, vector<1x1x32xf32>
    %52 = vector.shape_cast %51 : vector<1x1x32xf32> to vector<1x32xf32>
    %53 = vector.broadcast %52 : vector<1x32xf32> to vector<16x32xf32>
    %54 = arith.addf %50, %53 : vector<16x32xf32>
    %55 = vector.extract_strided_slice %9 {offsets = [0, 0], sizes = [16, 8], strides = [1, 1]} : vector<16x32xf32> to vector<16x8xf32>
    %56 = vector.extract_strided_slice %10 {offsets = [0, 0], sizes = [16, 8], strides = [1, 1]} : vector<16x32xf32> to vector<16x8xf32>
    %57 = vector.extract_strided_slice %11 {offsets = [0, 0], sizes = [16, 8], strides = [1, 1]} : vector<16x32xf32> to vector<16x8xf32>
    %cst_23 = arith.constant dense<0.000000e+00> : vector<16x16xf32>
    %58 = tpu.matmul %55, %56, %cst_23 {dimension_numbers = #tpu.dot_dimension_numbers<[1], [1], [0], [0], [0, 0, 1, 0], [], []>} : vector<16x8xf32>, vector<16x8xf32>, vector<16x16xf32> -> vector<16x16xf32>
    %cst_24 = arith.constant 0.353553385 : f32
    %59 = vector.broadcast %cst_24 : f32 to vector<16x16xf32>
    %60 = arith.mulf %58, %59 : vector<16x16xf32>
    %cst_25 = arith.constant -1.000000e+30 : f32
    %61 = vector.broadcast %cst_25 : f32 to vector<16x16xf32>
    %62 = arith.select %46, %60, %61 : vector<16x16xi1>, vector<16x16xf32>
    %cst_26 = arith.constant dense<0xFF800000> : vector<16xf32>
    %63 = vector.multi_reduction <maximumf>, %62, %cst_26 [1] : vector<16x16xf32> to vector<16xf32>
    %64 = vector.shape_cast %63 : vector<16xf32> to vector<16x1xf32>
    %65 = vector.broadcast %64 : vector<16x1xf32> to vector<16x16xf32>
    %66 = arith.subf %62, %65 : vector<16x16xf32>
    %67 = math.exp %66 : vector<16x16xf32>
    %cst_27 = arith.constant dense<0.000000e+00> : vector<16xf32>
    %68 = vector.multi_reduction <add>, %67, %cst_27 [1] : vector<16x16xf32> to vector<16xf32>
    %69 = vector.shape_cast %68 : vector<16xf32> to vector<16x1xf32>
    %70 = tpu.reciprocal %69 : vector<16x1xf32> -> vector<16x1xf32>
    %71 = vector.broadcast %70 : vector<16x1xf32> to vector<16x16xf32>
    %72 = arith.mulf %67, %71 : vector<16x16xf32>
    %cst_28 = arith.constant dense<0.000000e+00> : vector<16x8xf32>
    %73 = tpu.matmul %72, %57, %cst_28 {dimension_numbers = #tpu.dot_dimension_numbers<[1], [0], [0], [1], [0, 0, 1, 1], [], []>} : vector<16x16xf32>, vector<16x8xf32>, vector<16x8xf32> -> vector<16x8xf32>
    %74 = vector.extract_strided_slice %49 {offsets = [0, 0], sizes = [8, 32], strides = [1, 1]} : vector<32x32xf32> to vector<8x32xf32>
    %cst_29 = arith.constant dense<0.000000e+00> : vector<16x32xf32>
    %75 = tpu.matmul %73, %74, %cst_29 {dimension_numbers = #tpu.dot_dimension_numbers<[1], [0], [0], [1], [0, 0, 1, 1], [], []>} : vector<16x8xf32>, vector<8x32xf32>, vector<16x32xf32> -> vector<16x32xf32>
    %76 = arith.addf %54, %75 : vector<16x32xf32>
    %77 = vector.extract_strided_slice %9 {offsets = [0, 8], sizes = [16, 8], strides = [1, 1]} : vector<16x32xf32> to vector<16x8xf32>
    %78 = vector.extract_strided_slice %10 {offsets = [0, 8], sizes = [16, 8], strides = [1, 1]} : vector<16x32xf32> to vector<16x8xf32>
    %79 = vector.extract_strided_slice %11 {offsets = [0, 8], sizes = [16, 8], strides = [1, 1]} : vector<16x32xf32> to vector<16x8xf32>
    %cst_30 = arith.constant dense<0.000000e+00> : vector<16x16xf32>
    %80 = tpu.matmul %77, %78, %cst_30 {dimension_numbers = #tpu.dot_dimension_numbers<[1], [1], [0], [0], [0, 0, 1, 0], [], []>} : vector<16x8xf32>, vector<16x8xf32>, vector<16x16xf32> -> vector<16x16xf32>
    %cst_31 = arith.constant 0.353553385 : f32
    %81 = vector.broadcast %cst_31 : f32 to vector<16x16xf32>
    %82 = arith.mulf %80, %81 : vector<16x16xf32>
    %cst_32 = arith.constant -1.000000e+30 : f32
    %83 = vector.broadcast %cst_32 : f32 to vector<16x16xf32>
    %84 = arith.select %46, %82, %83 : vector<16x16xi1>, vector<16x16xf32>
    %cst_33 = arith.constant dense<0xFF800000> : vector<16xf32>
    %85 = vector.multi_reduction <maximumf>, %84, %cst_33 [1] : vector<16x16xf32> to vector<16xf32>
    %86 = vector.shape_cast %85 : vector<16xf32> to vector<16x1xf32>
    %87 = vector.broadcast %86 : vector<16x1xf32> to vector<16x16xf32>
    %88 = arith.subf %84, %87 : vector<16x16xf32>
    %89 = math.exp %88 : vector<16x16xf32>
    %cst_34 = arith.constant dense<0.000000e+00> : vector<16xf32>
    %90 = vector.multi_reduction <add>, %89, %cst_34 [1] : vector<16x16xf32> to vector<16xf32>
    %91 = vector.shape_cast %90 : vector<16xf32> to vector<16x1xf32>
    %92 = tpu.reciprocal %91 : vector<16x1xf32> -> vector<16x1xf32>
    %93 = vector.broadcast %92 : vector<16x1xf32> to vector<16x16xf32>
    %94 = arith.mulf %89, %93 : vector<16x16xf32>
    %cst_35 = arith.constant dense<0.000000e+00> : vector<16x8xf32>
    %95 = tpu.matmul %94, %79, %cst_35 {dimension_numbers = #tpu.dot_dimension_numbers<[1], [0], [0], [1], [0, 0, 1, 1], [], []>} : vector<16x16xf32>, vector<16x8xf32>, vector<16x8xf32> -> vector<16x8xf32>
    %96 = vector.extract_strided_slice %49 {offsets = [8, 0], sizes = [8, 32], strides = [1, 1]} : vector<32x32xf32> to vector<8x32xf32>
    %cst_36 = arith.constant dense<0.000000e+00> : vector<16x32xf32>
    %97 = tpu.matmul %95, %96, %cst_36 {dimension_numbers = #tpu.dot_dimension_numbers<[1], [0], [0], [1], [0, 0, 1, 1], [], []>} : vector<16x8xf32>, vector<8x32xf32>, vector<16x32xf32> -> vector<16x32xf32>
    %98 = arith.addf %76, %97 : vector<16x32xf32>
    %99 = vector.extract_strided_slice %9 {offsets = [0, 16], sizes = [16, 8], strides = [1, 1]} : vector<16x32xf32> to vector<16x8xf32>
    %100 = vector.extract_strided_slice %10 {offsets = [0, 16], sizes = [16, 8], strides = [1, 1]} : vector<16x32xf32> to vector<16x8xf32>
    %101 = vector.extract_strided_slice %11 {offsets = [0, 16], sizes = [16, 8], strides = [1, 1]} : vector<16x32xf32> to vector<16x8xf32>
    %cst_37 = arith.constant dense<0.000000e+00> : vector<16x16xf32>
    %102 = tpu.matmul %99, %100, %cst_37 {dimension_numbers = #tpu.dot_dimension_numbers<[1], [1], [0], [0], [0, 0, 1, 0], [], []>} : vector<16x8xf32>, vector<16x8xf32>, vector<16x16xf32> -> vector<16x16xf32>
    %cst_38 = arith.constant 0.353553385 : f32
    %103 = vector.broadcast %cst_38 : f32 to vector<16x16xf32>
    %104 = arith.mulf %102, %103 : vector<16x16xf32>
    %cst_39 = arith.constant -1.000000e+30 : f32
    %105 = vector.broadcast %cst_39 : f32 to vector<16x16xf32>
    %106 = arith.select %46, %104, %105 : vector<16x16xi1>, vector<16x16xf32>
    %cst_40 = arith.constant dense<0xFF800000> : vector<16xf32>
    %107 = vector.multi_reduction <maximumf>, %106, %cst_40 [1] : vector<16x16xf32> to vector<16xf32>
    %108 = vector.shape_cast %107 : vector<16xf32> to vector<16x1xf32>
    %109 = vector.broadcast %108 : vector<16x1xf32> to vector<16x16xf32>
    %110 = arith.subf %106, %109 : vector<16x16xf32>
    %111 = math.exp %110 : vector<16x16xf32>
    %cst_41 = arith.constant dense<0.000000e+00> : vector<16xf32>
    %112 = vector.multi_reduction <add>, %111, %cst_41 [1] : vector<16x16xf32> to vector<16xf32>
    %113 = vector.shape_cast %112 : vector<16xf32> to vector<16x1xf32>
    %114 = tpu.reciprocal %113 : vector<16x1xf32> -> vector<16x1xf32>
    %115 = vector.broadcast %114 : vector<16x1xf32> to vector<16x16xf32>
    %116 = arith.mulf %111, %115 : vector<16x16xf32>
    %cst_42 = arith.constant dense<0.000000e+00> : vector<16x8xf32>
    %117 = tpu.matmul %116, %101, %cst_42 {dimension_numbers = #tpu.dot_dimension_numbers<[1], [0], [0], [1], [0, 0, 1, 1], [], []>} : vector<16x16xf32>, vector<16x8xf32>, vector<16x8xf32> -> vector<16x8xf32>
    %118 = vector.extract_strided_slice %49 {offsets = [16, 0], sizes = [8, 32], strides = [1, 1]} : vector<32x32xf32> to vector<8x32xf32>
    %cst_43 = arith.constant dense<0.000000e+00> : vector<16x32xf32>
    %119 = tpu.matmul %117, %118, %cst_43 {dimension_numbers = #tpu.dot_dimension_numbers<[1], [0], [0], [1], [0, 0, 1, 1], [], []>} : vector<16x8xf32>, vector<8x32xf32>, vector<16x32xf32> -> vector<16x32xf32>
    %120 = arith.addf %98, %119 : vector<16x32xf32>
    %121 = vector.extract_strided_slice %9 {offsets = [0, 24], sizes = [16, 8], strides = [1, 1]} : vector<16x32xf32> to vector<16x8xf32>
    %122 = vector.extract_strided_slice %10 {offsets = [0, 24], sizes = [16, 8], strides = [1, 1]} : vector<16x32xf32> to vector<16x8xf32>
    %123 = vector.extract_strided_slice %11 {offsets = [0, 24], sizes = [16, 8], strides = [1, 1]} : vector<16x32xf32> to vector<16x8xf32>
    %cst_44 = arith.constant dense<0.000000e+00> : vector<16x16xf32>
    %124 = tpu.matmul %121, %122, %cst_44 {dimension_numbers = #tpu.dot_dimension_numbers<[1], [1], [0], [0], [0, 0, 1, 0], [], []>} : vector<16x8xf32>, vector<16x8xf32>, vector<16x16xf32> -> vector<16x16xf32>
    %cst_45 = arith.constant 0.353553385 : f32
    %125 = vector.broadcast %cst_45 : f32 to vector<16x16xf32>
    %126 = arith.mulf %124, %125 : vector<16x16xf32>
    %cst_46 = arith.constant -1.000000e+30 : f32
    %127 = vector.broadcast %cst_46 : f32 to vector<16x16xf32>
    %128 = arith.select %46, %126, %127 : vector<16x16xi1>, vector<16x16xf32>
    %cst_47 = arith.constant dense<0xFF800000> : vector<16xf32>
    %129 = vector.multi_reduction <maximumf>, %128, %cst_47 [1] : vector<16x16xf32> to vector<16xf32>
    %130 = vector.shape_cast %129 : vector<16xf32> to vector<16x1xf32>
    %131 = vector.broadcast %130 : vector<16x1xf32> to vector<16x16xf32>
    %132 = arith.subf %128, %131 : vector<16x16xf32>
    %133 = math.exp %132 : vector<16x16xf32>
    %cst_48 = arith.constant dense<0.000000e+00> : vector<16xf32>
    %134 = vector.multi_reduction <add>, %133, %cst_48 [1] : vector<16x16xf32> to vector<16xf32>
    %135 = vector.shape_cast %134 : vector<16xf32> to vector<16x1xf32>
    %136 = tpu.reciprocal %135 : vector<16x1xf32> -> vector<16x1xf32>
    %137 = vector.broadcast %136 : vector<16x1xf32> to vector<16x16xf32>
    %138 = arith.mulf %133, %137 : vector<16x16xf32>
    %cst_49 = arith.constant dense<0.000000e+00> : vector<16x8xf32>
    %139 = tpu.matmul %138, %123, %cst_49 {dimension_numbers = #tpu.dot_dimension_numbers<[1], [0], [0], [1], [0, 0, 1, 1], [], []>} : vector<16x16xf32>, vector<16x8xf32>, vector<16x8xf32> -> vector<16x8xf32>
    %140 = vector.extract_strided_slice %49 {offsets = [24, 0], sizes = [8, 32], strides = [1, 1]} : vector<32x32xf32> to vector<8x32xf32>
    %cst_50 = arith.constant dense<0.000000e+00> : vector<16x32xf32>
    %141 = tpu.matmul %139, %140, %cst_50 {dimension_numbers = #tpu.dot_dimension_numbers<[1], [0], [0], [1], [0, 0, 1, 1], [], []>} : vector<16x8xf32>, vector<8x32xf32>, vector<16x32xf32> -> vector<16x32xf32>
    %142 = arith.addf %120, %141 : vector<16x32xf32>
    %143 = arith.addf %0, %142 : vector<16x32xf32>
    %c0_51 = arith.constant 0 : index
    %c0_52 = arith.constant 0 : index
    %c0_53 = arith.constant 0 : index
    %144 = vector.load %arg6[%c0_51, %c0_52, %c0_53] : memref<1x1x32xf32, #tpu.memory_space<vmem>>, vector<1x1x32xf32>
    %145 = vector.shape_cast %144 : vector<1x1x32xf32> to vector<1x32xf32>
    %c0_54 = arith.constant 0 : index
    %c0_55 = arith.constant 0 : index
    %c0_56 = arith.constant 0 : index
    %146 = vector.load %arg7[%c0_54, %c0_55, %c0_56] : memref<1x1x32xf32, #tpu.memory_space<vmem>>, vector<1x1x32xf32>
    %147 = vector.shape_cast %146 : vector<1x1x32xf32> to vector<1x32xf32>
    %cst_57 = arith.constant dense<0.000000e+00> : vector<16xf32>
    %148 = vector.multi_reduction <add>, %143, %cst_57 [1] : vector<16x32xf32> to vector<16xf32>
    %149 = vector.shape_cast %148 : vector<16xf32> to vector<16x1xf32>
    %cst_58 = arith.constant 3.200000e+01 : f32
    %150 = vector.broadcast %cst_58 : f32 to vector<16x1xf32>
    %151 = arith.divf %149, %150 : vector<16x1xf32>
    %152 = vector.broadcast %151 : vector<16x1xf32> to vector<16x32xf32>
    %153 = arith.subf %143, %152 : vector<16x32xf32>
    %154 = arith.mulf %153, %153 : vector<16x32xf32>
    %cst_59 = arith.constant dense<0.000000e+00> : vector<16xf32>
    %155 = vector.multi_reduction <add>, %154, %cst_59 [1] : vector<16x32xf32> to vector<16xf32>
    %156 = vector.shape_cast %155 : vector<16xf32> to vector<16x1xf32>
    %cst_60 = arith.constant 3.200000e+01 : f32
    %157 = vector.broadcast %cst_60 : f32 to vector<16x1xf32>
    %158 = arith.divf %156, %157 : vector<16x1xf32>
    %cst_61 = arith.constant 9.99999974E-6 : f32
    %159 = vector.broadcast %cst_61 : f32 to vector<16x1xf32>
    %160 = arith.addf %158, %159 : vector<16x1xf32>
    %161 = math.rsqrt %160 : vector<16x1xf32>
    %162 = vector.broadcast %161 : vector<16x1xf32> to vector<16x32xf32>
    %163 = arith.mulf %153, %162 : vector<16x32xf32>
    %164 = vector.broadcast %145 : vector<1x32xf32> to vector<16x32xf32>
    %165 = arith.mulf %163, %164 : vector<16x32xf32>
    %166 = vector.broadcast %147 : vector<1x32xf32> to vector<16x32xf32>
    %167 = arith.addf %165, %166 : vector<16x32xf32>
    %cst_62 = arith.constant 0.000000e+00 : f32
    %168 = vector.broadcast %cst_62 : f32 to vector<16x32xf32>
    %c0_63 = arith.constant 0 : index
    %c0_64 = arith.constant 0 : index
    %c0_65 = arith.constant 0 : index
    %169 = vector.load %arg11[%c0_63, %c0_64, %c0_65] : memref<1x1x32xf32, #tpu.memory_space<vmem>>, vector<1x1x32xf32>
    %170 = vector.shape_cast %169 : vector<1x1x32xf32> to vector<1x32xf32>
    %171 = vector.broadcast %170 : vector<1x32xf32> to vector<16x32xf32>
    %172 = arith.addf %168, %171 : vector<16x32xf32>
    %c0_66 = arith.constant 0 : index
    %c0_67 = arith.constant 0 : index
    %c0_68 = arith.constant 0 : index
    %173 = vector.load %arg8[%c0_66, %c0_67, %c0_68] : memref<1x32x2048xbf16, #tpu.memory_space<vmem>>, vector<1x32x512xbf16>
    %174 = vector.shape_cast %173 : vector<1x32x512xbf16> to vector<32x512xbf16>
    %175 = arith.extf %174 : vector<32x512xbf16> to vector<32x512xf32>
    %c0_69 = arith.constant 0 : index
    %c0_70 = arith.constant 0 : index
    %c0_71 = arith.constant 0 : index
    %176 = vector.load %arg10[%c0_69, %c0_70, %c0_71] : memref<1x2048x32xbf16, #tpu.memory_space<vmem>>, vector<1x512x32xbf16>
    %177 = vector.shape_cast %176 : vector<1x512x32xbf16> to vector<512x32xbf16>
    %178 = arith.extf %177 : vector<512x32xbf16> to vector<512x32xf32>
    %c0_72 = arith.constant 0 : index
    %c0_73 = arith.constant 0 : index
    %c0_74 = arith.constant 0 : index
    %179 = vector.load %arg9[%c0_72, %c0_73, %c0_74] : memref<1x1x2048xf32, #tpu.memory_space<vmem>>, vector<1x1x512xf32>
    %180 = vector.shape_cast %179 : vector<1x1x512xf32> to vector<1x512xf32>
    %cst_75 = arith.constant dense<0.000000e+00> : vector<16x512xf32>
    %181 = tpu.matmul %167, %175, %cst_75 {dimension_numbers = #tpu.dot_dimension_numbers<[1], [0], [0], [1], [0, 0, 1, 1], [], []>} : vector<16x32xf32>, vector<32x512xf32>, vector<16x512xf32> -> vector<16x512xf32>
    %182 = vector.broadcast %180 : vector<1x512xf32> to vector<16x512xf32>
    %183 = arith.addf %181, %182 : vector<16x512xf32>
    %cst_76 = arith.constant 0.000000e+00 : f32
    %184 = vector.broadcast %cst_76 : f32 to vector<16x512xf32>
    %185 = arith.maximumf %183, %184 : vector<16x512xf32>
    %cst_77 = arith.constant dense<0.000000e+00> : vector<16x32xf32>
    %186 = tpu.matmul %185, %178, %cst_77 {dimension_numbers = #tpu.dot_dimension_numbers<[1], [0], [0], [1], [0, 0, 1, 1], [], []>} : vector<16x512xf32>, vector<512x32xf32>, vector<16x32xf32> -> vector<16x32xf32>
    %187 = arith.addf %172, %186 : vector<16x32xf32>
    %c0_78 = arith.constant 0 : index
    %c0_79 = arith.constant 0 : index
    %c512 = arith.constant 512 : index
    %188 = vector.load %arg8[%c0_78, %c0_79, %c512] : memref<1x32x2048xbf16, #tpu.memory_space<vmem>>, vector<1x32x512xbf16>
    %189 = vector.shape_cast %188 : vector<1x32x512xbf16> to vector<32x512xbf16>
    %190 = arith.extf %189 : vector<32x512xbf16> to vector<32x512xf32>
    %c0_80 = arith.constant 0 : index
    %c512_81 = arith.constant 512 : index
    %c0_82 = arith.constant 0 : index
    %191 = vector.load %arg10[%c0_80, %c512_81, %c0_82] : memref<1x2048x32xbf16, #tpu.memory_space<vmem>>, vector<1x512x32xbf16>
    %192 = vector.shape_cast %191 : vector<1x512x32xbf16> to vector<512x32xbf16>
    %193 = arith.extf %192 : vector<512x32xbf16> to vector<512x32xf32>
    %c0_83 = arith.constant 0 : index
    %c0_84 = arith.constant 0 : index
    %c512_85 = arith.constant 512 : index
    %194 = vector.load %arg9[%c0_83, %c0_84, %c512_85] : memref<1x1x2048xf32, #tpu.memory_space<vmem>>, vector<1x1x512xf32>
    %195 = vector.shape_cast %194 : vector<1x1x512xf32> to vector<1x512xf32>
    %cst_86 = arith.constant dense<0.000000e+00> : vector<16x512xf32>
    %196 = tpu.matmul %167, %190, %cst_86 {dimension_numbers = #tpu.dot_dimension_numbers<[1], [0], [0], [1], [0, 0, 1, 1], [], []>} : vector<16x32xf32>, vector<32x512xf32>, vector<16x512xf32> -> vector<16x512xf32>
    %197 = vector.broadcast %195 : vector<1x512xf32> to vector<16x512xf32>
    %198 = arith.addf %196, %197 : vector<16x512xf32>
    %cst_87 = arith.constant 0.000000e+00 : f32
    %199 = vector.broadcast %cst_87 : f32 to vector<16x512xf32>
    %200 = arith.maximumf %198, %199 : vector<16x512xf32>
    %cst_88 = arith.constant dense<0.000000e+00> : vector<16x32xf32>
    %201 = tpu.matmul %200, %193, %cst_88 {dimension_numbers = #tpu.dot_dimension_numbers<[1], [0], [0], [1], [0, 0, 1, 1], [], []>} : vector<16x512xf32>, vector<512x32xf32>, vector<16x32xf32> -> vector<16x32xf32>
    %202 = arith.addf %187, %201 : vector<16x32xf32>
    %c0_89 = arith.constant 0 : index
    %c0_90 = arith.constant 0 : index
    %c1024 = arith.constant 1024 : index
    %203 = vector.load %arg8[%c0_89, %c0_90, %c1024] : memref<1x32x2048xbf16, #tpu.memory_space<vmem>>, vector<1x32x512xbf16>
    %204 = vector.shape_cast %203 : vector<1x32x512xbf16> to vector<32x512xbf16>
    %205 = arith.extf %204 : vector<32x512xbf16> to vector<32x512xf32>
    %c0_91 = arith.constant 0 : index
    %c1024_92 = arith.constant 1024 : index
    %c0_93 = arith.constant 0 : index
    %206 = vector.load %arg10[%c0_91, %c1024_92, %c0_93] : memref<1x2048x32xbf16, #tpu.memory_space<vmem>>, vector<1x512x32xbf16>
    %207 = vector.shape_cast %206 : vector<1x512x32xbf16> to vector<512x32xbf16>
    %208 = arith.extf %207 : vector<512x32xbf16> to vector<512x32xf32>
    %c0_94 = arith.constant 0 : index
    %c0_95 = arith.constant 0 : index
    %c1024_96 = arith.constant 1024 : index
    %209 = vector.load %arg9[%c0_94, %c0_95, %c1024_96] : memref<1x1x2048xf32, #tpu.memory_space<vmem>>, vector<1x1x512xf32>
    %210 = vector.shape_cast %209 : vector<1x1x512xf32> to vector<1x512xf32>
    %cst_97 = arith.constant dense<0.000000e+00> : vector<16x512xf32>
    %211 = tpu.matmul %167, %205, %cst_97 {dimension_numbers = #tpu.dot_dimension_numbers<[1], [0], [0], [1], [0, 0, 1, 1], [], []>} : vector<16x32xf32>, vector<32x512xf32>, vector<16x512xf32> -> vector<16x512xf32>
    %212 = vector.broadcast %210 : vector<1x512xf32> to vector<16x512xf32>
    %213 = arith.addf %211, %212 : vector<16x512xf32>
    %cst_98 = arith.constant 0.000000e+00 : f32
    %214 = vector.broadcast %cst_98 : f32 to vector<16x512xf32>
    %215 = arith.maximumf %213, %214 : vector<16x512xf32>
    %cst_99 = arith.constant dense<0.000000e+00> : vector<16x32xf32>
    %216 = tpu.matmul %215, %208, %cst_99 {dimension_numbers = #tpu.dot_dimension_numbers<[1], [0], [0], [1], [0, 0, 1, 1], [], []>} : vector<16x512xf32>, vector<512x32xf32>, vector<16x32xf32> -> vector<16x32xf32>
    %217 = arith.addf %202, %216 : vector<16x32xf32>
    %c0_100 = arith.constant 0 : index
    %c0_101 = arith.constant 0 : index
    %c1536 = arith.constant 1536 : index
    %218 = vector.load %arg8[%c0_100, %c0_101, %c1536] : memref<1x32x2048xbf16, #tpu.memory_space<vmem>>, vector<1x32x512xbf16>
    %219 = vector.shape_cast %218 : vector<1x32x512xbf16> to vector<32x512xbf16>
    %220 = arith.extf %219 : vector<32x512xbf16> to vector<32x512xf32>
    %c0_102 = arith.constant 0 : index
    %c1536_103 = arith.constant 1536 : index
    %c0_104 = arith.constant 0 : index
    %221 = vector.load %arg10[%c0_102, %c1536_103, %c0_104] : memref<1x2048x32xbf16, #tpu.memory_space<vmem>>, vector<1x512x32xbf16>
    %222 = vector.shape_cast %221 : vector<1x512x32xbf16> to vector<512x32xbf16>
    %223 = arith.extf %222 : vector<512x32xbf16> to vector<512x32xf32>
    %c0_105 = arith.constant 0 : index
    %c0_106 = arith.constant 0 : index
    %c1536_107 = arith.constant 1536 : index
    %224 = vector.load %arg9[%c0_105, %c0_106, %c1536_107] : memref<1x1x2048xf32, #tpu.memory_space<vmem>>, vector<1x1x512xf32>
    %225 = vector.shape_cast %224 : vector<1x1x512xf32> to vector<1x512xf32>
    %cst_108 = arith.constant dense<0.000000e+00> : vector<16x512xf32>
    %226 = tpu.matmul %167, %220, %cst_108 {dimension_numbers = #tpu.dot_dimension_numbers<[1], [0], [0], [1], [0, 0, 1, 1], [], []>} : vector<16x32xf32>, vector<32x512xf32>, vector<16x512xf32> -> vector<16x512xf32>
    %227 = vector.broadcast %225 : vector<1x512xf32> to vector<16x512xf32>
    %228 = arith.addf %226, %227 : vector<16x512xf32>
    %cst_109 = arith.constant 0.000000e+00 : f32
    %229 = vector.broadcast %cst_109 : f32 to vector<16x512xf32>
    %230 = arith.maximumf %228, %229 : vector<16x512xf32>
    %cst_110 = arith.constant dense<0.000000e+00> : vector<16x32xf32>
    %231 = tpu.matmul %230, %223, %cst_110 {dimension_numbers = #tpu.dot_dimension_numbers<[1], [0], [0], [1], [0, 0, 1, 1], [], []>} : vector<16x512xf32>, vector<512x32xf32>, vector<16x32xf32> -> vector<16x32xf32>
    %232 = arith.addf %217, %231 : vector<16x32xf32>
    %233 = arith.addf %167, %232 : vector<16x32xf32>
    %c0_111 = arith.constant 0 : index
    %c0_112 = arith.constant 0 : index
    %c0_113 = arith.constant 0 : index
    %234 = vector.load %arg12[%c0_111, %c0_112, %c0_113] : memref<1x1x32xf32, #tpu.memory_space<vmem>>, vector<1x1x32xf32>
    %235 = vector.shape_cast %234 : vector<1x1x32xf32> to vector<1x32xf32>
    %c0_114 = arith.constant 0 : index
    %c0_115 = arith.constant 0 : index
    %c0_116 = arith.constant 0 : index
    %236 = vector.load %arg13[%c0_114, %c0_115, %c0_116] : memref<1x1x32xf32, #tpu.memory_space<vmem>>, vector<1x1x32xf32>
    %237 = vector.shape_cast %236 : vector<1x1x32xf32> to vector<1x32xf32>
    %cst_117 = arith.constant dense<0.000000e+00> : vector<16xf32>
    %238 = vector.multi_reduction <add>, %233, %cst_117 [1] : vector<16x32xf32> to vector<16xf32>
    %239 = vector.shape_cast %238 : vector<16xf32> to vector<16x1xf32>
    %cst_118 = arith.constant 3.200000e+01 : f32
    %240 = vector.broadcast %cst_118 : f32 to vector<16x1xf32>
    %241 = arith.divf %239, %240 : vector<16x1xf32>
    %242 = vector.broadcast %241 : vector<16x1xf32> to vector<16x32xf32>
    %243 = arith.subf %233, %242 : vector<16x32xf32>
    %244 = arith.mulf %243, %243 : vector<16x32xf32>
    %cst_119 = arith.constant dense<0.000000e+00> : vector<16xf32>
    %245 = vector.multi_reduction <add>, %244, %cst_119 [1] : vector<16x32xf32> to vector<16xf32>
    %246 = vector.shape_cast %245 : vector<16xf32> to vector<16x1xf32>
    %cst_120 = arith.constant 3.200000e+01 : f32
    %247 = vector.broadcast %cst_120 : f32 to vector<16x1xf32>
    %248 = arith.divf %246, %247 : vector<16x1xf32>
    %cst_121 = arith.constant 9.99999974E-6 : f32
    %249 = vector.broadcast %cst_121 : f32 to vector<16x1xf32>
    %250 = arith.addf %248, %249 : vector<16x1xf32>
    %251 = math.rsqrt %250 : vector<16x1xf32>
    %252 = vector.broadcast %251 : vector<16x1xf32> to vector<16x32xf32>
    %253 = arith.mulf %243, %252 : vector<16x32xf32>
    %254 = vector.broadcast %235 : vector<1x32xf32> to vector<16x32xf32>
    %255 = arith.mulf %253, %254 : vector<16x32xf32>
    %256 = vector.broadcast %237 : vector<1x32xf32> to vector<16x32xf32>
    %257 = arith.addf %255, %256 : vector<16x32xf32>
    %c0_122 = arith.constant 0 : index
    %c0_123 = arith.constant 0 : index
    %c0_124 = arith.constant 0 : index
    %258 = vector.load %arg14[%c0_122, %c0_123, %c0_124] : memref<1x32x32xbf16, #tpu.memory_space<vmem>>, vector<1x32x32xbf16>
    %259 = vector.shape_cast %258 : vector<1x32x32xbf16> to vector<32x32xbf16>
    %260 = arith.extf %259 : vector<32x32xbf16> to vector<32x32xf32>
    %cst_125 = arith.constant dense<0.000000e+00> : vector<16x32xf32>
    %261 = tpu.matmul %257, %260, %cst_125 {dimension_numbers = #tpu.dot_dimension_numbers<[1], [0], [0], [1], [0, 0, 1, 1], [], []>} : vector<16x32xf32>, vector<32x32xf32>, vector<16x32xf32> -> vector<16x32xf32>
    %c0_126 = arith.constant 0 : index
    %c0_127 = arith.constant 0 : index
    %c0_128 = arith.constant 0 : index
    %262 = vector.load %arg15[%c0_126, %c0_127, %c0_128] : memref<1x16x32xf32, #tpu.memory_space<vmem>>, vector<1x16x32xf32>
    %263 = vector.shape_cast %262 : vector<1x16x32xf32> to vector<16x32xf32>
    %264 = vector.shape_cast %261 : vector<16x32xf32> to vector<1x16x32xf32>
    tpu.vector_store %arg15[%c0_126, %c0_127, %c0_128], %264 {strides = array<i32>} : memref<1x16x32xf32, #tpu.memory_space<vmem>>, vector<1x16x32xf32>,
    return
  }
  func.func @transform_0(%arg0: i32) -> (i32, i32) {
    %c0_i32 = arith.constant 0 : i32
    %c0_i32_0 = arith.constant 0 : i32
    %c0_i32_1 = arith.constant 0 : i32
    return %c0_i32, %c0_i32_0 : i32, i32
  }
  func.func @transform_1(%arg0: i32) -> (i32, i32, i32) {
    %c0_i32 = arith.constant 0 : i32
    %c0_i32_0 = arith.constant 0 : i32
    %c0_i32_1 = arith.constant 0 : i32
    return %arg0, %c0_i32, %c0_i32_0 : i32, i32, i32
  }
  func.func @transform_2(%arg0: i32) -> (i32, i32, i32) {
    %c0_i32 = arith.constant 0 : i32
    %c0_i32_0 = arith.constant 0 : i32
    %c0_i32_1 = arith.constant 0 : i32
    return %arg0, %c0_i32, %c0_i32_0 : i32, i32, i32
  }
  func.func @transform_3(%arg0: i32) -> (i32, i32, i32) {
    %c0_i32 = arith.constant 0 : i32
    %c0_i32_0 = arith.constant 0 : i32
    %c0_i32_1 = arith.constant 0 : i32
    return %arg0, %c0_i32, %c0_i32_0 : i32, i32, i32
  }
  func.func @transform_4(%arg0: i32) -> (i32, i32, i32) {
    %c0_i32 = arith.constant 0 : i32
    %c0_i32_0 = arith.constant 0 : i32
    %c0_i32_1 = arith.constant 0 : i32
    return %arg0, %c0_i32, %c0_i32_0 : i32, i32, i32
  }
  func.func @transform_5(%arg0: i32) -> (i32, i32, i32) {
    %c0_i32 = arith.constant 0 : i32
    %c0_i32_0 = arith.constant 0 : i32
    %c0_i32_1 = arith.constant 0 : i32
    return %arg0, %c0_i32, %c0_i32_0 : i32, i32, i32
  }
  func.func @transform_6(%arg0: i32) -> (i32, i32, i32) {
    %c0_i32 = arith.constant 0 : i32
    %c0_i32_0 = arith.constant 0 : i32
    %c0_i32_1 = arith.constant 0 : i32
    return %arg0, %c0_i32, %c0_i32_0 : i32, i32, i32
  }
  func.func @transform_7(%arg0: i32) -> (i32, i32, i32) {
    %c0_i32 = arith.constant 0 : i32
    %c0_i32_0 = arith.constant 0 : i32
    %c0_i32_1 = arith.constant 0 : i32
    return %arg0, %c0_i32, %c0_i32_0 : i32, i32, i32
  }
  func.func @transform_8(%arg0: i32) -> (i32, i32, i32) {
    %c0_i32 = arith.constant 0 : i32
    %c0_i32_0 = arith.constant 0 : i32
    %c0_i32_1 = arith.constant 0 : i32
    return %arg0, %c0_i32, %c0_i32_0 : i32, i32, i32
  }
  func.func @transform_9(%arg0: i32) -> (i32, i32, i32) {
    %c0_i32 = arith.constant 0 : i32
    %c0_i32_0 = arith.constant 0 : i32
    %c0_i32_1 = arith.constant 0 : i32
    return %arg0, %c0_i32, %c0_i32_0 : i32, i32, i32
  }
  func.func @transform_10(%arg0: i32) -> (i32, i32, i32) {
    %c0_i32 = arith.constant 0 : i32
    %c0_i32_0 = arith.constant 0 : i32
    %c0_i32_1 = arith.constant 0 : i32
    return %arg0, %c0_i32, %c0_i32_0 : i32, i32, i32
  }
  func.func @transform_11(%arg0: i32) -> (i32, i32, i32) {
    %c0_i32 = arith.constant 0 : i32
    %c0_i32_0 = arith.constant 0 : i32
    %c0_i32_1 = arith.constant 0 : i32
    return %arg0, %c0_i32, %c0_i32_0 : i32, i32, i32
  }
  func.func @transform_12(%arg0: i32) -> (i32, i32, i32) {
    %c0_i32 = arith.constant 0 : i32
    %c0_i32_0 = arith.constant 0 : i32
    %c0_i32_1 = arith.constant 0 : i32
    return %arg0, %c0_i32, %c0_i32_0 : i32, i32, i32
  }
  func.func @transform_13(%arg0: i32) -> (i32, i32, i32) {
    %c0_i32 = arith.constant 0 : i32
    %c0_i32_0 = arith.constant 0 : i32
    %c0_i32_1 = arith.constant 0 : i32
    return %arg0, %c0_i32, %c0_i32_0 : i32, i32, i32
  }
  func.func @transform_14(%arg0: i32) -> (i32, i32, i32) {
    %c0_i32 = arith.constant 0 : i32
    %c0_i32_0 = arith.constant 0 : i32
    %c0_i32_1 = arith.constant 0 : i32
    return %arg0, %c0_i32, %c0_i32_0 : i32, i32, i32
  }
}

</mosaic_0001>

<bundles_post_ra>
// kernel: tpu_custom_call.1
= control target key start
LH: loop header
LB: loop body
LE: loop exit
PB: predicated region body
PF: predicated region fallthrough
CT: control target
= control target key end

     0   :  { %s4888_s0 = inlined_call_operand.vmem [shape: f32[16,32], index: 0, kind: input, shape index: {}]   ;;  %s4889_s1 = inlined_call_operand.vmem [shape: bf16[2,32,96], index: 1, kind: input, shape index: {}]   ;;  %s4890_s2 = inlined_call_operand.vmem [shape: f32[2,1,96], index: 2, kind: input, shape index: {}]   ;;  %s4891_s3 = inlined_call_operand.vmem [shape: bf16[2,32,32], index: 3, kind: input, shape index: {}]   ;;  %s4892_s4 = inlined_call_operand.vmem [shape: f32[2,1,32], index: 4, kind: input, shape index: {}]   ;;  %s4893_s5 = inlined_call_operand.vmem [shape: f32[2,1,32], index: 5, kind: input, shape index: {}]   ;;  %s4894_s6 = inlined_call_operand.vmem [shape: f32[2,1,32], index: 6, kind: input, shape index: {}]   ;;  %s4895_s7 = inlined_call_operand.vmem [shape: bf16[2,32,2048], index: 7, kind: input, shape index: {}]   ;;  %s4896_s8 = inlined_call_operand.vmem [shape: f32[2,1,2048], index: 8, kind: input, shape index: {}]   ;;  %s4897_s9 = inlined_call_operand.vmem [shape: bf16[2,2048,32], index: 9, kind: input, shape index: {}]   ;;  %s4898_s10 = inlined_call_operand.vmem [shape: f32[2,1,32], index: 10, kind: input, shape index: {}]   ;;  %s4899_s11 = inlined_call_operand.vmem [shape: f32[2,1,32], index: 11, kind: input, shape index: {}]   ;;  %s4900_s12 = inlined_call_operand.vmem [shape: f32[2,1,32], index: 12, kind: input, shape index: {}]   ;;  %s4901_s13 = inlined_call_operand.vmem [shape: bf16[2,32,32], index: 13, kind: input, shape index: {}]   ;;  %s4902_s14 = inlined_call_operand.hbm [shape: f32[2,16,32], index: 14, kind: output, shape index: {}]  }
   0x1   :  { %4906 = sst [smem:[#allocation8_spill]] %s4888_s0 }
   0x2   :  { %4907 = sst [smem:[#allocation9_spill]] %s4889_s1 }
   0x3   :  { %19 = vsyncpa [#allocation3], 0 }
   0x4   :  { %21 = vsyncpa [#allocation3 + $0x1], 0  ;;  %s4226_s29 = smov 0   ;;  %s4228_s30 = smov 0  }
   0x5   :  { %s4230_s15 = smov 0   ;;  %s4232_s16 = smov 0  }
   0x6 LB: > { %4908 = sst [smem:[#allocation5_spill]] %s4131_s15  ;;  %s4247_s17 = sadd.s32 4294967295, %s4135_s16   ;;  %s4135_s16 = sphi %s4232_s16, %s4919_s16   ;;  %s4131_s15 = sphi %s4230_s15, %s4921_s15   ;;  %s4127_s30 = sphi %s4228_s30, %s4923_s30   ;;  %s4123_s29 = sphi %s4226_s29, %s4922_s29  }
   0x7   : > { %s3187_s18 = sadd.s32 4294967294, %s4135_s16   ;;  %s4251_s19 = sadd.s32 1, %s4135_s16  }
   0x8   : > { %4909 = sst [smem:[#allocation6_spill]] %s4251_s19  ;;  %s393_s20 = sadd.s32 1, %s4131_s15 }
   0x9   : > { %s390_s21 = ssub.s32 %s4135_s16, %s4251_s19  ;;  %p403_p0 = scmp.ne.s32.totalorder %s4131_s15, %s4127_s30 }
   0xa   : > { %p391_p1 = scmp.eq.s32.totalorder %s390_s21, 0  ;;  %p404_p2 = scmp.eq.s32.totalorder %s4247_s17, 1 }
   0xb   : > { %p409_p3 = scmp.ne.s32.totalorder %s4127_s30, %s4123_s29  ;;  %p410_p4 = scmp.eq.s32.totalorder %s3187_s18, 1 }
   0xc   : > { %s4262_s22 = scalar_select %p391_p1, %s4131_s15, %s393_s20  }
   0xd   : > { %p4264_p5 = por %p404_p2, %p403_p0  ;;  %p4268_p6 = por %p410_p4, %p409_p3 }
   0xe   : > { %4910 = sst [smem:[#allocation7_spill]] %s4262_s22  ;;  %p3190_p7 = scmp.ge.s32.totalorder %s4135_s16, 1 }
   0xf   : > { %p520_p8 = scmp.lt.s32.totalorder %s4135_s16, 3 }
  0x11   : > { %p521_p9 = pnand %p3190_p7, %p520_p8 }
  0x12   : > { %p611_p10 = scmp.lt.s32.totalorder (!%p521_p9), %s4247_s17, 1  ;;  %s4913_s1 = sld [smem:[#allocation9_spill]] (!%p521_p9) }
  0x13   : > { %524 = sbr.rel (%p521_p9) target bundleno = 3467 (0xd8b), region = 76  ;;  %s4914_s0 = sld [smem:[#allocation8_spill]] (!%p521_p9) }
  0x14   : > { %s4137_s15 = smov (!%p521_p9), 96   ;;  %s4138_s19 = smov (!%p521_p9), 64  }
  0x15   : > { %s4143_s20 = smov (!%p521_p9), 112   ;;  %s4144_s21 = smov (!%p521_p9), 72  }
  0x16   : > { %s4145_s28 = smov (!%p521_p9), 104  }
  0x18   : > { %s4276_s25 = scalar_select %p611_p10, %s4247_s17, 1  ;;  %vm675_vm0 = vcmask 261120   ;;  %vm767_vm1 = vcmask 64512   ;;  %v705_v24 = vlaneseq  ;;  %vm803_vm3 = vcmask 130048  }
  0x19   : > { %v4292_v6 = vld [vmem:[%s4914_s0] sm:$0xff]  ;;  %v4299_v7 = vld [vmem:[%s4914_s0 + $0x8] sm:$0xff] }
  0x1a   : > { %s4279_s26 = sshll.u32 %s4276_s25, 4  ;;  %s618_s18 = scalar_lea.vmem %s4890_s2, %s4276_s25  ;;  %v706_v25 = vshrl.u32 %v705_v24, 7  ;;  %v733_v26 = vand.u32 127, %v705_v24 }
  0x1b   : > { %s615_s22 = scalar_lea.vmem %s4913_s1, %s4279_s26  ;;  %v4024_v9 = vld [vmem:[%s618_s18] ss:$0 sm:$0xff]  ;;  %s4140_s18 = smov 120  }
  0x1c   : > { %v3818_v0 = vld [vmem:[%s615_s22 + $0x8] sm:$0xff]   ;;  %v3283_v1 = vld [vmem:[%s615_s22] sm:$0xff]   ;;  %s4139_s22 = smov 88   ;;  %s4322_s27 = scalar_lea.vmem %s4891_s3, %s4279_s26  ;;  %v712_v27 = vand.u32 1, %v706_v25  ;;  %v738_v28 = vand.u32 1, %v733_v26  ;;  %v707_v31 = vadd.s32 8, %v706_v25 }
  0x1d   : > { %v3289_v2 = vunpack.c.h.bf16 %v3818_v0  ;;  %v3288_v3 = vunpack.c.l.bf16 %v3818_v0  ;;  %v3285_v4 = vunpack.c.h.bf16 %v3283_v1  ;;  %v3284_v5 = vunpack.c.l.bf16 %v3283_v1  ;;  %v3291_v14 = vld [vmem:[%s4322_s27] sm:$0xff]  }
  0x1e   : > { %v3292_v15 = vunpack.c.l.bf16 %v3291_v14  ;;  %v3293_v18 = vunpack.c.h.bf16 %v3291_v14  ;;  %vm4333_vm2 = vcmp.eq.s32.totalorder %v712_v27, %v738_v28  ;;  %v719_v35 = vand.u32 1, %v707_v31 }
  0x1f   : > { %694 = vmatpush.msra.mxu0 %v3289_v2 }
  0x20   : > { %3950 = vmatpush.msra.mxu3 %v3292_v15  ;;  %vm4340_vm4 = vcmp.eq.s32.totalorder %v719_v35, %v738_v28 }
  0x21   : > { %695 = vmatpush.msra.mxu0 %v3288_v3 }
  0x23   : > { %696 = vmatpush.msra.mxu0 %v3285_v4 }
  0x25   : > { %697 = vmatpush.msra.mxu0 %v3284_v5 }
  0x26   : > { %3203 = vmatmul.msk.f32.vlgmr.msra.gmra.mxu0 %vm675_vm0, %v4292_v6 }
  0x2e   : > { %3204 = vmatmul.msk.f32.gmra.mxu0 %vm675_vm0, %v4299_v7 }
  0xa3   : > { %v699_v8 = vpop.f32.mrf.mxu0 }
  0xa4   : > { %v4303_v11 = vadd.f32 %v4024_v9, %v699_v8 }
  0xab   : > { %v702_v10 = vpop.f32.mrf.mxu0 }
  0xac   : > { %v4305_v12 = vadd.f32 %v4024_v9, %v702_v10 }
  0xae   : > { %765 = vrot.lane.b32.xlu0 %v4305_v12, %s4137_s15  ;;  %v4310_v13 = vpack.i.bf16 %v4303_v11, %v4305_v12 }
  0xb0   : > { %4005 = vrot.lane.b32.xlu2 %v4310_v13, %s4138_s19  ;;  %s626_s19 = scalar_lea.vmem %s4892_s4, %s4276_s25 }
  0xb6   : > { %763 = vrot.lane.b32.xlu0 %v4303_v11, %s4137_s15  ;;  %s632_s15 = scalar_lea.vmem %s4894_s6, %s4276_s25 }
  0xb8   : > { %924 = vrot.lane.b32.xlu2 %v4305_v12, %s4139_s22 }
  0xbe   : > { %922 = vrot.lane.b32.xlu0 %v4303_v11, %s4139_s22  ;;  %s4141_s22 = smov 56  }
  0xc0   : > { %920 = vrot.lane.b32.xlu2 %v4305_v12, %s4140_s18 }
 0x10a   : > { %v4006_v16 = vpop.permute.xlu2 %4005 }
 0x10b   : > { %v4007_v17 = vunpack.i.l.bf16 %v4006_v16  ;;  %v4008_v19 = vunpack.i.h.bf16 %v4006_v16 }
 0x10d   : > { %878 = vmatpush.msrb.mxu0 %v4007_v17  ;;  %3948 = vmatpush.msra.mxu2 %v4007_v17 }
 0x10f   : > { %879 = vmatpush.msrb.mxu0 %v4008_v19  ;;  %3949 = vmatpush.msra.mxu2 %v4008_v19 }
 0x111   : > { %1065 = vmatpush.msra.mxu0 %v3293_v18 }
 0x112   : > { %v925_v20 = vpop.permute.xlu2 %924 }
 0x113   : > { %3213 = vmatpush.xpose.msk.msrb.mxu3 %vm767_vm1, %v925_v20 }
 0x11a   : > { %v921_v60 = vpop.permute.xlu2 %920 }
 0x120   : > { %v766_v21 = vpop.permute.xlu0 %765 }
 0x121   : > { %3205 = vmatpush.xpose.msk.msra.mxu1 %vm767_vm1, %v766_v21 }
 0x128   : > { %v764_v22 = vpop.permute.xlu0 %763 }
 0x129   : > { %3206 = vmatpush.xpose.msk.msra.mxu1 %vm767_vm1, %v764_v22 }
 0x12c   : > { %3207 = vmatmul.msk.f32.vlgmr.msra.gmra.mxu1 %vm767_vm1, %v4303_v11 }
 0x12d   : > { %908 = vmatpush.msrb.mxu1 %v3292_v15 }
 0x130   : > { %v923_v23 = vpop.permute.xlu0 %922 }
 0x131   : > { %3214 = vmatpush.xpose.msk.msrb.mxu3 %vm767_vm1, %v923_v23 }
 0x134   : > { %3208 = vmatmul.msk.f32.gmra.mxu1 %vm767_vm1, %v4305_v12 }
 0x1a9   : > { %v793_v29 = vpop.f32.mrf.mxu1 }
 0x1aa   : > { %v799_v32 = vmul.f32 0.35355338, %v793_v29 }
 0x1ac   : > { %v801_v33 = vsel %vm4333_vm2, %v799_v32, -1e+30 }
 0x1ad   : > { %v804_v34 = vsel %vm803_vm3, %v801_v33, -inf }
 0x1ae   : > { %805 = vmax.xlane.f32.xlu2 %v804_v34 }
 0x1b1   : > { %v796_v36 = vpop.f32.mrf.mxu1 }
 0x1b2   : > { %v800_v38 = vmul.f32 0.35355338, %v796_v36 }
 0x1b4   : > { %v802_v39 = vsel %vm4340_vm4, %v800_v38, -1e+30 }
 0x1b5   : > { %v807_v40 = vsel %vm803_vm3, %v802_v39, -inf }
 0x1b6   : > { %808 = vmax.xlane.f32.xlu1 %v807_v40 }
 0x221   : > { %v806_v61 = vpop.xlane.xlu2 %805 }
 0x222   : > { %v810_v63 = vsub.f32 %v801_v33, %v806_v61 }
 0x224   : > { %v812_v0 = vmul.f32 1.442695, %v810_v63 }
 0x229   : > { %v809_v41 = vpop.xlane.xlu1 %808 }
 0x22a   : > { %v811_v42 = vsub.f32 %v802_v39, %v809_v41  ;;  %v4382_v39 = vld [vmem:[%s4322_s27 + $0x8] sm:$0xff]  }
 0x22c   : > { %v814_v43 = vmul.f32 1.442695, %v811_v42 }
 0x22e   : > { %4031 = vpow2.f32 %v814_v43  ;;  %v3296_v43 = vunpack.c.l.bf16 %v4382_v39 }
 0x234   : > { %v4032_v44 = vpop.eup %4031 }
 0x235   : > { %v819_v45 = vsel %vm803_vm3, %v4032_v44, 0.0 }
 0x236   : > { %820 = vadd.xlane.f32.xlu1 %v819_v45 }
 0x24f   : > { %918 = vrot.lane.b32.xlu1 %v4303_v11, %s4140_s18  ;;  %s4142_s18 = smov 80  }
 0x2a9   : > { %v821_v46 = vpop.xlane.xlu1 %820 }
 0x2aa   : > { %4033 = vrcp.f32 %v821_v46  ;;  %v847_v50 = vand.u32 2147483648, %v821_v46  ;;  %v845_v52 = vand.u32 2147483647, %v821_v46  ;;  %vm841_vm6 = vweird.f32 %v821_v46 }
 0x2ab   : > { %4035 = vpow2.f32 %v812_v0 }
 0x2ac   : > { %v848_v54 = vor.u32 1.1754944e-38, %v847_v50  ;;  %vm846_vm8 = vcmp.eq.f32.partialorder %v845_v52, 8.507059e+37 }
 0x2b0   : > { %v4034_v47 = vpop.eup %4033 }
 0x2b1   : > { %v837_v48 = vmul.f32 %v4034_v47, %v821_v46  ;;  %vm842_vm5 = vweird.f32 %v4034_v47  ;;  %v4036_v8 = vpop.eup %4035 }
 0x2b2   : > { %vm843_vm7 = vmor %vm841_vm6, %vm842_vm5  ;;  %v816_v14 = vsel %vm803_vm3, %v4036_v8, 0.0 }
 0x2b3   : > { %v838_v49 = vsub.f32 1.0, %v837_v48 }
 0x2b5   : > { %v839_v51 = vmul.f32 %v4034_v47, %v838_v49 }
 0x2b7   : > { %v840_v53 = vadd.f32 %v4034_v47, %v839_v51 }
 0x2b9   : > { %v844_v55 = vsel %vm843_vm7, %v4034_v47, %v840_v53 }
 0x2ba   : > { %v849_v56 = vsel %vm846_vm8, %v848_v54, %v844_v55 }
 0x2bb   : > { %v851_v57 = vmul.f32 %v4032_v44, %v849_v56 }
 0x2bd   : > { %3210 = vmatmul.msk.f32.vlgmr.msra.gmra.mxu2 %vm803_vm3, %v851_v57 }
 0x2c1   : > { %v919_v59 = vpop.permute.xlu1 %918 }
 0x340   : > { %v884_v58 = vpop.f32.mrf.mxu2 }
 0x341   : > { %3212 = vmatmul.msk.f32.vlgmr.msra.gmra.mxu3 %vm767_vm1, %v884_v58 }
 0x349   : > { %3215 = vmatmul.msk.f32.vlgmr.msrb.gmra.mxu3 %vm767_vm1, %v919_v59 }
 0x351   : > { %3216 = vmatmul.msk.f32.gmra.mxu3 %vm767_vm1, %v921_v60 }
 0x3c4   : > { %v4358_v62 = vpop.f32.mrf.mxu3 }
 0x3cc   : > { %v951_v1 = vpop.f32.mrf.mxu3 }
 0x3cd   : > { %v957_v2 = vmul.f32 0.35355338, %v951_v1 }
 0x3cf   : > { %v959_v3 = vsel %vm4333_vm2, %v957_v2, -1e+30 }
 0x3d0   : > { %v961_v4 = vsel %vm803_vm3, %v959_v3, -inf }
 0x3d1   : > { %962 = vmax.xlane.f32.xlu0 %v961_v4 }
 0x3d4   : > { %v954_v5 = vpop.f32.mrf.mxu3 }
 0x3d5   : > { %v958_v9 = vmul.f32 0.35355338, %v954_v5 }
 0x3d7   : > { %v960_v10 = vsel %vm4340_vm4, %v958_v9, -1e+30 }
 0x3d8   : > { %v964_v15 = vsel %vm803_vm3, %v960_v10, -inf }
 0x3d9   : > { %817 = vadd.xlane.f32.xlu0 %v816_v14  ;;  %965 = vmax.xlane.f32.xlu1 %v964_v15 }
 0x3ed   : > { %4010 = vrot.lane.b32.xlu0 %v4310_v13, %s4141_s22  ;;  %s4147_s22 = smov 40  }
 0x3f2   : > { %1079 = vrot.lane.b32.xlu1 %v4303_v11, %s4142_s18 }
 0x3f5   : > { %1075 = vrot.lane.b32.xlu0 %v4303_v11, %s4143_s20 }
 0x3fa   : > { %1077 = vrot.lane.b32.xlu1 %v4305_v12, %s4143_s20 }
 0x3fd   : > { %1238 = vrot.lane.b32.xlu0 %v4305_v12, %s4144_s21 }
 0x405   : > { %1232 = vrot.lane.b32.xlu0 %v4303_v11, %s4145_s28 }
 0x444   : > { %v963_v16 = vpop.xlane.xlu0 %962 }
 0x445   : > { %v967_v17 = vsub.f32 %v959_v3, %v963_v16 }
 0x447   : > { %v969_v18 = vmul.f32 1.442695, %v967_v17 }
 0x449   : > { %4037 = vpow2.f32 %v969_v18 }
 0x44c   : > { %v818_v19 = vpop.xlane.xlu0 %817  ;;  %v966_v20 = vpop.xlane.xlu1 %965 }
 0x44d   : > { %4039 = vrcp.f32 %v818_v19  ;;  %v968_v21 = vsub.f32 %v960_v10, %v966_v20  ;;  %v833_v28 = vand.u32 2147483648, %v818_v19  ;;  %v831_v32 = vand.u32 2147483647, %v818_v19 }
 0x44e   : > { %vm827_vm10 = vweird.f32 %v818_v19 }
 0x44f   : > { %v4038_v22 = vpop.eup %4037  ;;  %v971_v23 = vmul.f32 1.442695, %v968_v21  ;;  %v834_v35 = vor.u32 1.1754944e-38, %v833_v28  ;;  %vm832_vm12 = vcmp.eq.f32.partialorder %v831_v32, 8.507059e+37 }
 0x450   : > { %v973_v24 = vsel %vm803_vm3, %v4038_v22, 0.0 }
 0x451   : > { %974 = vadd.xlane.f32.xlu2 %v973_v24  ;;  %4041 = vpow2.f32 %v971_v23 }
 0x453   : > { %v4040_v25 = vpop.eup %4039 }
 0x454   : > { %v823_v26 = vmul.f32 %v4040_v25, %v818_v19  ;;  %vm828_vm9 = vweird.f32 %v4040_v25 }
 0x455   : > { %vm829_vm11 = vmor %vm827_vm10, %vm828_vm9 }
 0x456   : > { %v824_v27 = vsub.f32 1.0, %v823_v26 }
 0x457   : > { %v4377_v29 = vpop.eup %4041 }
 0x458   : > { %v825_v31 = vmul.f32 %v4040_v25, %v824_v27  ;;  %v976_v33 = vsel %vm803_vm3, %v4377_v29, 0.0 }
 0x459   : > { %977 = vadd.xlane.f32.xlu2 %v976_v33 }
 0x45a   : > { %v826_v34 = vadd.f32 %v4040_v25, %v825_v31 }
 0x45c   : > { %v830_v36 = vsel %vm829_vm11, %v4040_v25, %v826_v34 }
 0x45d   : > { %v835_v38 = vsel %vm832_vm12, %v834_v35, %v830_v36 }
 0x45e   : > { %v850_v40 = vmul.f32 %v4036_v8, %v835_v38 }
 0x45f   : > { %v4011_v41 = vpop.permute.xlu0 %4010 }
 0x460   : > { %3209 = vmatmul.msk.f32.vlgmr.msrb.gmra.mxu0 %vm803_vm3, %v850_v40  ;;  %v4012_v42 = vunpack.i.l.bf16 %v4011_v41  ;;  %v4013_v44 = vunpack.i.h.bf16 %v4011_v41 }
 0x462   : > { %1035 = vmatpush.msrb.mxu2 %v4012_v42 }
 0x464   : > { %1036 = vmatpush.msrb.mxu2 %v4013_v44  ;;  %v1080_v0 = vpop.permute.xlu1 %1079 }
 0x466   : > { %1222 = vmatpush.msra.mxu2 %v3296_v43 }
 0x467   : > { %v1076_v45 = vpop.permute.xlu0 %1075 }
 0x46c   : > { %v1078_v15 = vpop.permute.xlu1 %1077 }
 0x46f   : > { %v1239_v46 = vpop.permute.xlu0 %1238 }
 0x470   : > { %3229 = vmatpush.xpose.msk.msrb.mxu0 %vm767_vm1, %v1239_v46 }
 0x471   : > { %1081 = vrot.lane.b32.xlu2 %v4305_v12, %s4142_s18  ;;  %s4609_s18 = scalar_lea.vmem %s4896_s8, %s4279_s26 }
 0x477   : > { %v1233_v24 = vpop.permute.xlu0 %1232 }
 0x479   : > { %1236 = vrot.lane.b32.xlu2 %v4303_v11, %s4144_s21  ;;  %s629_s21 = scalar_lea.vmem %s4893_s5, %s4276_s25 }
 0x481   : > { %1234 = vrot.lane.b32.xlu2 %v4305_v12, %s4145_s28  ;;  %s3279_s28 = sshll.u32 %s4276_s25, 10 }
 0x4c4   : > { %v975_v47 = vpop.xlane.xlu2 %974 }
 0x4c5   : > { %4043 = vrcp.f32 %v975_v47  ;;  %v990_v52 = vand.u32 2147483648, %v975_v47  ;;  %v988_v54 = vand.u32 2147483647, %v975_v47  ;;  %vm984_vm14 = vweird.f32 %v975_v47 }
 0x4c7   : > { %v991_v56 = vor.u32 1.1754944e-38, %v990_v52  ;;  %vm989_vm5 = vcmp.eq.f32.partialorder %v988_v54, 8.507059e+37 }
 0x4cb   : > { %v4044_v48 = vpop.eup %4043 }
 0x4cc   : > { %v980_v49 = vmul.f32 %v4044_v48, %v975_v47  ;;  %v978_v50 = vpop.xlane.xlu2 %977  ;;  %vm985_vm13 = vweird.f32 %v4044_v48 }
 0x4cd   : > { %4045 = vrcp.f32 %v978_v50  ;;  %vm986_vm15 = vmor %vm984_vm14, %vm985_vm13  ;;  %v1004_v63 = vand.u32 2147483648, %v978_v50  ;;  %v1002_v2 = vand.u32 2147483647, %v978_v50  ;;  %vm998_vm7 = vweird.f32 %v978_v50 }
 0x4ce   : > { %v981_v51 = vsub.f32 1.0, %v980_v49 }
 0x4cf   : > { %v1005_v4 = vor.u32 1.1754944e-38, %v1004_v63  ;;  %vm1003_vm9 = vcmp.eq.f32.partialorder %v1002_v2, 8.507059e+37 }
 0x4d0   : > { %v982_v53 = vmul.f32 %v4044_v48, %v981_v51 }
 0x4d2   : > { %v983_v55 = vadd.f32 %v4044_v48, %v982_v53 }
 0x4d3   : > { %v4046_v57 = vpop.eup %4045 }
 0x4d4   : > { %v987_v11 = vsel %vm986_vm15, %v4044_v48, %v983_v55  ;;  %v994_v58 = vmul.f32 %v4046_v57, %v978_v50  ;;  %v1082_v12 = vpop.permute.xlu2 %1081  ;;  %vm999_vm6 = vweird.f32 %v4046_v57 }
 0x4d5   : > { %v992_v59 = vsel %vm989_vm5, %v991_v56, %v987_v11  ;;  %3221 = vmatpush.xpose.msk.msra.mxu1 %vm767_vm1, %v1082_v12  ;;  %vm1000_vm8 = vmor %vm998_vm7, %vm999_vm6 }
 0x4d6   : > { %v1007_v60 = vmul.f32 %v4038_v22, %v992_v59  ;;  %v995_v61 = vsub.f32 1.0, %v994_v58 }
 0x4d8   : > { %3217 = vmatmul.msk.f32.vlgmr.msrb.gmra.mxu2 %vm803_vm3, %v1007_v60  ;;  %v996_v1 = vmul.f32 %v4046_v57, %v995_v61 }
 0x4d9   : > { %3222 = vmatpush.xpose.msk.msra.mxu1 %vm767_vm1, %v1080_v0 }
 0x4da   : > { %v997_v3 = vadd.f32 %v4046_v57, %v996_v1 }
 0x4dc   : > { %v1237_v5 = vpop.permute.xlu2 %1236  ;;  %v1001_v9 = vsel %vm1000_vm8, %v4046_v57, %v997_v3 }
 0x4dd   : > { %v881_v8 = vpop.f32.mrf.mxu0  ;;  %3230 = vmatpush.xpose.msk.msrb.mxu0 %vm767_vm1, %v1237_v5  ;;  %v1006_v10 = vsel %vm1003_vm9, %v1005_v4, %v1001_v9 }
 0x4de   : > { %3211 = vmatmul.msk.f32.vlgmr.msrb.gmra.mxu1 %vm767_vm1, %v881_v8  ;;  %v1008_v14 = vmul.f32 %v4377_v29, %v1006_v10  ;;  %v4025_v29 = vld [vmem:[%s626_s19] ss:$0 sm:$0xff]  ;;  %s4146_s19 = smov 48  }
 0x4df   : > { %v917_v38 = vadd.f32 %v4025_v29, %v4358_v62 }
 0x4e0   : > { %3218 = vmatmul.msk.f32.gmra.mxu2 %vm803_vm3, %v1008_v14 }
 0x4e4   : > { %v1235_v28 = vpop.permute.xlu2 %1234 }
 0x4e6   : > { %3223 = vmatmul.msk.f32.vlgmr.msra.gmra.mxu1 %vm767_vm1, %v1076_v45 }
 0x4ee   : > { %3224 = vmatmul.msk.f32.gmra.mxu1 %vm767_vm1, %v1078_v15 }
 0x55b   : > { %v910_v16 = vpop.f32.mrf.mxu1  ;;  %v1038_v17 = vpop.f32.mrf.mxu2 }
 0x55c   : > { %3219 = vmatmul.msk.f32.vlgmr.msra.gmra.mxu0 %vm767_vm1, %v1038_v17  ;;  %v916_v31 = vadd.f32 %v4025_v29, %v910_v16 }
 0x563   : > { %v1108_v18 = vpop.f32.mrf.mxu1  ;;  %v1041_v19 = vpop.f32.mrf.mxu2 }
 0x564   : > { %v1114_v20 = vmul.f32 0.35355338, %v1108_v18  ;;  %3220 = vmatmul.msk.f32.gmra.mxu0 %vm767_vm1, %v1041_v19  ;;  %v3297_v19 = vunpack.c.h.bf16 %v4382_v39 }
 0x566   : > { %v1116_v21 = vsel %vm4333_vm2, %v1114_v20, -1e+30 }
 0x567   : > { %v1118_v22 = vsel %vm803_vm3, %v1116_v21, -inf }
 0x568   : > { %1119 = vmax.xlane.f32.xlu1 %v1118_v22 }
 0x56b   : > { %v1111_v23 = vpop.f32.mrf.mxu1 }
 0x56c   : > { %v1115_v25 = vmul.f32 0.35355338, %v1111_v23  ;;  %3231 = vmatmul.msk.f32.vlgmr.msrb.gmra.mxu0 %vm767_vm1, %v1233_v24 }
 0x56e   : > { %v1117_v26 = vsel %vm4340_vm4, %v1115_v25, -1e+30 }
 0x56f   : > { %v1121_v27 = vsel %vm803_vm3, %v1117_v26, -inf }
 0x570   : > { %1122 = vmax.xlane.f32.xlu0 %v1121_v27 }
 0x574   : > { %3232 = vmatmul.msk.f32.gmra.mxu0 %vm767_vm1, %v1235_v28 }
 0x5d9   : > { %v1067_v32 = vpop.f32.mrf.mxu0 }
 0x5da   : > { %v4417_v33 = vadd.f32 %v1067_v32, %v916_v31 }
 0x5db   : > { %v1120_v34 = vpop.xlane.xlu1 %1119 }
 0x5dc   : > { %v1124_v35 = vsub.f32 %v1116_v21, %v1120_v34 }
 0x5de   : > { %v1126_v36 = vmul.f32 1.442695, %v1124_v35 }
 0x5e0   : > { %4047 = vpow2.f32 %v1126_v36 }
 0x5e1   : > { %v1070_v40 = vpop.f32.mrf.mxu0 }
 0x5e2   : > { %v4420_v41 = vadd.f32 %v1070_v40, %v917_v38 }
 0x5e3   : > { %v1123_v42 = vpop.xlane.xlu0 %1122 }
 0x5e4   : > { %v1125_v43 = vsub.f32 %v1117_v26, %v1123_v42 }
 0x5e6   : > { %v4048_v44 = vpop.eup %4047  ;;  %v1128_v46 = vmul.f32 1.442695, %v1125_v43 }
 0x5e7   : > { %v1130_v45 = vsel %vm803_vm3, %v4048_v44, 0.0 }
 0x5e8   : > { %1131 = vadd.xlane.f32.xlu0 %v1130_v45  ;;  %4049 = vpow2.f32 %v1128_v46 }
 0x5e9   : > { %v1265_v47 = vpop.f32.mrf.mxu0 }
 0x5ea   : > { %v1271_v48 = vmul.f32 0.35355338, %v1265_v47 }
 0x5ec   : > { %v1273_v49 = vsel %vm4333_vm2, %v1271_v48, -1e+30 }
 0x5ed   : > { %v1275_v50 = vsel %vm803_vm3, %v1273_v49, -inf }
 0x5ee   : > { %1276 = vmax.xlane.f32.xlu2 %v1275_v50  ;;  %v4426_v51 = vpop.eup %4049 }
 0x5ef   : > { %v1133_v55 = vsel %vm803_vm3, %v4426_v51, 0.0 }
 0x5f1   : > { %v1268_v62 = vpop.f32.mrf.mxu0 }
 0x5f2   : > { %v1272_v52 = vmul.f32 0.35355338, %v1268_v62 }
 0x5f4   : > { %v1274_v53 = vsel %vm4340_vm4, %v1272_v52, -1e+30 }
 0x5f5   : > { %v1278_v54 = vsel %vm803_vm3, %v1274_v53, -inf }
 0x5f6   : > { %1279 = vmax.xlane.f32.xlu1 %v1278_v54  ;;  %1134 = vadd.xlane.f32.xlu2 %v1133_v55 }
 0x60e   : > { %4015 = vrot.lane.b32.xlu2 %v4310_v13, %s4146_s19  ;;  %s3278_s19 = sshll.u32 %s4276_s25, 8 }
 0x60f   : > { %s4487_s20 = scalar_lea.vmem %s4895_s7, %s3278_s19 }
 0x65b   : > { %v1132_v30 = vpop.xlane.xlu0 %1131 }
 0x65c   : > { %4051 = vrcp.f32 %v1132_v30  ;;  %v1147_v2 = vand.u32 2147483648, %v1132_v30  ;;  %vm1141_vm4 = vweird.f32 %v1132_v30  ;;  %v1145_v3 = vand.u32 2147483647, %v1132_v30 }
 0x65e   : > { %v1148_v10 = vor.u32 1.1754944e-38, %v1147_v2  ;;  %vm1146_vm11 = vcmp.eq.f32.partialorder %v1145_v3, 8.507059e+37 }
 0x661   : > { %v1277_v57 = vpop.xlane.xlu2 %1276 }
 0x662   : > { %v4052_v56 = vpop.eup %4051  ;;  %v1281_v58 = vsub.f32 %v1273_v49, %v1277_v57 }
 0x663   : > { %v1137_v11 = vmul.f32 %v4052_v56, %v1132_v30  ;;  %vm1142_vm2 = vweird.f32 %v4052_v56 }
 0x664   : > { %v1283_v59 = vmul.f32 1.442695, %v1281_v58  ;;  %vm1143_vm10 = vmor %vm1141_vm4, %vm1142_vm2 }
 0x665   : > { %v1138_v12 = vsub.f32 1.0, %v1137_v11 }
 0x666   : > { %4053 = vpow2.f32 %v1283_v59 }
 0x667   : > { %v1139_v37 = vmul.f32 %v4052_v56, %v1138_v12 }
 0x669   : > { %v1135_v60 = vpop.xlane.xlu2 %1134  ;;  %v1280_v61 = vpop.xlane.xlu1 %1279  ;;  %v1140_v63 = vadd.f32 %v4052_v56, %v1139_v37 }
 0x66a   : > { %4055 = vrcp.f32 %v1135_v60  ;;  %v1282_v0 = vsub.f32 %v1274_v53, %v1280_v61  ;;  %v1161_v20 = vand.u32 2147483648, %v1135_v60  ;;  %v1159_v25 = vand.u32 2147483647, %v1135_v60 }
 0x66b   : > { %v1144_v8 = vsel %vm1143_vm10, %v4052_v56, %v1140_v63  ;;  %vm1155_vm13 = vweird.f32 %v1135_v60 }
 0x66c   : > { %v4434_v1 = vpop.eup %4053  ;;  %v1285_v4 = vmul.f32 1.442695, %v1282_v0  ;;  %v1149_v16 = vsel %vm1146_vm11, %v1148_v10, %v1144_v8  ;;  %v1162_v28 = vor.u32 1.1754944e-38, %v1161_v20  ;;  %vm1160_vm15 = vcmp.eq.f32.partialorder %v1159_v25, 8.507059e+37 }
 0x66d   : > { %v1287_v5 = vsel %vm803_vm3, %v4434_v1, 0.0  ;;  %v1164_v24 = vmul.f32 %v4048_v44, %v1149_v16  ;;  %v4148_v10 = vmov 32.0  }
 0x66e   : > { %1288 = vadd.xlane.f32.xlu1 %v1287_v5  ;;  %4057 = vpow2.f32 %v1285_v4 }
 0x670   : > { %v4056_v9 = vpop.eup %4055 }
 0x671   : > { %v1151_v14 = vmul.f32 %v4056_v9, %v1135_v60  ;;  %v4016_v15 = vpop.permute.xlu2 %4015  ;;  %vm1156_vm12 = vweird.f32 %v4056_v9 }
 0x672   : > { %v4017_v17 = vunpack.i.l.bf16 %v4016_v15  ;;  %v4018_v21 = vunpack.i.h.bf16 %v4016_v15  ;;  %vm1157_vm14 = vmor %vm1155_vm13, %vm1156_vm12 }
 0x673   : > { %v1152_v18 = vsub.f32 1.0, %v1151_v14 }
 0x674   : > { %1192 = vmatpush.msra.mxu3 %v4017_v17  ;;  %v4439_v22 = vpop.eup %4057 }
 0x675   : > { %v1153_v23 = vmul.f32 %v4056_v9, %v1152_v18  ;;  %v1290_v26 = vsel %vm803_vm3, %v4439_v22, 0.0 }
 0x676   : > { %1193 = vmatpush.msra.mxu3 %v4018_v21  ;;  %1291 = vadd.xlane.f32.xlu0 %v1290_v26 }
 0x677   : > { %3225 = vmatmul.msk.f32.vlgmr.msra.gmra.mxu3 %vm803_vm3, %v1164_v24  ;;  %v1154_v27 = vadd.f32 %v4056_v9, %v1153_v23 }
 0x678   : > { %1379 = vmatpush.msrb.mxu3 %v3297_v19 }
 0x679   : > { %v1158_v39 = vsel %vm1157_vm14, %v4056_v9, %v1154_v27 }
 0x67a   : > { %v1163_v29 = vsel %vm1160_vm15, %v1162_v28, %v1158_v39  ;;  %v1465_v28 = vld [vmem:[%s4487_s20 + $0xc0] sm:$0xff]  ;;  %v1466_v39 = vld [vmem:[%s4487_s20 + $0xc8] sm:$0xff] }
 0x67b   : > { %v1165_v31 = vmul.f32 %v4426_v51, %v1163_v29  ;;  %v1479_v29 = vunpack.c.l.bf16 %v1465_v28 }
 0x67d   : > { %1639 = vmatpush.msrb.mxu2 %v1479_v29 }
 0x67f   : > { %3226 = vmatmul.msk.f32.gmra.mxu3 %vm803_vm3, %v1165_v31  ;;  %v1480_v31 = vunpack.c.h.bf16 %v1465_v28 }
 0x681   : > { %1662 = vmatpush.msra.mxu0 %v1480_v31 }
 0x687   : > { %4020 = vrot.lane.b32.xlu1 %v4310_v13, %s4147_s22  ;;  %s4504_s22 = scalar_lea.vmem %s4897_s9, %s3279_s28 }
 0x688   : > { %v3839_v29 = vld [vmem:[%s4504_s22 + $0xa0] sm:$0xff]  }
 0x6e1   : > { %v1289_v32 = vpop.xlane.xlu1 %1288 }
 0x6e2   : > { %4059 = vrcp.f32 %v1289_v32  ;;  %v1304_v45 = vand.u32 2147483648, %v1289_v32  ;;  %vm1298_vm6 = vweird.f32 %v1289_v32  ;;  %v1302_v47 = vand.u32 2147483647, %v1289_v32 }
 0x6e4   : > { %v1305_v13 = vor.u32 1.1754944e-38, %v1304_v45  ;;  %vm1303_vm8 = vcmp.eq.f32.partialorder %v1302_v47, 8.507059e+37  ;;  %v1462_v45 = vld [vmem:[%s4487_s20 + $0x48] sm:$0xff] }
 0x6e8   : > { %v4060_v34 = vpop.eup %4059 }
 0x6e9   : > { %v1294_v35 = vmul.f32 %v4060_v34, %v1289_v32  ;;  %v1292_v36 = vpop.xlane.xlu0 %1291  ;;  %vm1299_vm5 = vweird.f32 %v4060_v34  ;;  %v1481_v32 = vunpack.c.l.bf16 %v1466_v39 }
 0x6ea   : > { %4061 = vrcp.f32 %v1292_v36  ;;  %vm1300_vm7 = vmor %vm1298_vm6, %vm1299_vm5  ;;  %v1318_v54 = vand.u32 2147483648, %v1292_v36  ;;  %vm1312_vm2 = vweird.f32 %v1292_v36  ;;  %v1316_v56 = vand.u32 2147483647, %v1292_v36 }
 0x6eb   : > { %v1295_v38 = vsub.f32 1.0, %v1294_v35  ;;  %4063 = vrcp.f32 %v4148_v10  ;;  %v1463_v35 = vld [vmem:[%s4487_s20 + $0x80] sm:$0xff]  ;;  %v3840_v10 = vld [vmem:[%s4504_s22 + $0xa8] sm:$0xff]  }
 0x6ec   : > { %v1319_v11 = vor.u32 1.1754944e-38, %v1318_v54  ;;  %vm1317_vm10 = vcmp.eq.f32.partialorder %v1316_v56, 8.507059e+37  ;;  %v3834_v56 = vld [vmem:[%s4504_s22 + $0x78] sm:$0xff]  }
 0x6ed   : > { %v1296_v40 = vmul.f32 %v4060_v34, %v1295_v38  ;;  %v1475_v38 = vunpack.c.l.bf16 %v1463_v35 }
 0x6ef   : > { %v1297_v44 = vadd.f32 %v4060_v34, %v1296_v40  ;;  %v1476_v40 = vunpack.c.h.bf16 %v1463_v35  ;;  %1640 = vmatpush.msrb.mxu2 %v1475_v38  ;;  %v3384_v35 = vunpack.c.l.bf16 %v3840_v10 }
 0x6f0   : > { %v4062_v42 = vpop.eup %4061 }
 0x6f1   : > { %v1308_v43 = vmul.f32 %v4062_v42, %v1292_v36  ;;  %v1301_v48 = vsel %vm1300_vm7, %v4060_v34, %v1297_v44  ;;  %vm1313_vm9 = vweird.f32 %v4062_v42  ;;  %v4064_v14 = vpop.eup %4063  ;;  %v1482_v34 = vunpack.c.h.bf16 %v1466_v39  ;;  %v1464_v36 = vld [vmem:[%s4487_s20 + $0x88] sm:$0xff]  ;;  %v1461_v44 = vld [vmem:[%s4487_s20 + $0x40] sm:$0xff]  ;;  %1663 = vmatpush.msra.mxu0 %v1476_v40 }
 0x6f2   : > { %v1306_v62 = vsel %vm1303_vm8, %v1305_v13, %v1301_v48  ;;  %vm1314_vm4 = vmor %vm1312_vm2, %vm1313_vm9  ;;  %v1400_v15 = vmul.f32 32.0, %v4064_v14  ;;  %v1472_v47 = vunpack.c.h.bf16 %v1461_v44  ;;  %v1473_v48 = vunpack.c.l.bf16 %v1462_v45  ;;  %v1459_v13 = vld [vmem:[%s4487_s20] sm:$0xff] }
 0x6f3   : > { %v1309_v46 = vsub.f32 1.0, %v1308_v43  ;;  %v1321_v30 = vmul.f32 %v4434_v1, %v1306_v62  ;;  %v1478_v43 = vunpack.c.h.bf16 %v1464_v36  ;;  %1708 = vmatpush.msra.mxu3 %v1482_v34  ;;  %v1467_v62 = vunpack.c.l.bf16 %v1459_v13  ;;  %v3831_v39 = vld [vmem:[%s4504_s22 + $0x60] sm:$0xff]  }
 0x6f4   : > { %1664 = vmatpush.msra.mxu0 %v1472_v47  ;;  %v3830_v47 = vld [vmem:[%s4504_s22 + $0x58] sm:$0xff]  }
 0x6f5   : > { %v1310_v49 = vmul.f32 %v4062_v42, %v1309_v46  ;;  %v1471_v46 = vunpack.c.l.bf16 %v1461_v44  ;;  %1709 = vmatpush.msra.mxu3 %v1478_v43  ;;  %v3349_v43 = vunpack.c.h.bf16 %v3831_v39  ;;  %v3381_v44 = vunpack.c.h.bf16 %v3839_v29 }
 0x6f7   : > { %v1311_v53 = vadd.f32 %v4062_v42, %v1310_v49  ;;  %v1474_v49 = vunpack.c.h.bf16 %v1462_v45  ;;  %1641 = vmatpush.msrb.mxu2 %v1471_v46  ;;  %v3847_v45 = vld [vmem:[%s4504_s22 + $0xe0] sm:$0xff]  }
 0x6f9   : > { %v4021_v50 = vpop.permute.xlu1 %4020  ;;  %v1315_v57 = vsel %vm1314_vm4, %v4062_v42, %v1311_v53  ;;  %v1477_v42 = vunpack.c.l.bf16 %v1464_v36  ;;  %1710 = vmatpush.msra.mxu3 %v1474_v49  ;;  %1642 = vmatpush.msrb.mxu2 %v1467_v62  ;;  %v3823_v36 = vld [vmem:[%s4504_s22 + $0x20] sm:$0xff]   ;;  %v3348_v62 = vunpack.c.l.bf16 %v3831_v39 }
 0x6fa   : > { %v4022_v51 = vunpack.i.l.bf16 %v4021_v50  ;;  %v1195_v52 = vpop.f32.mrf.mxu3  ;;  %v4023_v55 = vunpack.i.h.bf16 %v4021_v50  ;;  %v1320_v12 = vsel %vm1317_vm10, %v1319_v11, %v1315_v57  ;;  %v1460_v50 = vld [vmem:[%s4487_s20 + $0x8] sm:$0xff]  ;;  %v3842_v57 = vld [vmem:[%s4504_s22 + $0xb8] sm:$0xff]   ;;  %v3833_v11 = vld [vmem:[%s4504_s22 + $0x70] sm:$0xff]  }
 0x6fb   : > { %3227 = vmatmul.msk.f32.vlgmr.msra.gmra.mxu2 %vm767_vm1, %v1195_v52  ;;  %v1322_v59 = vmul.f32 %v4439_v22, %v1320_v12  ;;  %v1469_v52 = vunpack.c.l.bf16 %v1460_v50  ;;  %v1470_v53 = vunpack.c.h.bf16 %v1460_v50  ;;  %v3393_v12 = vunpack.c.h.bf16 %v3842_v57 }
 0x6fc   : > { %1349 = vmatpush.msrb.mxu1 %v4022_v51  ;;  %v1468_v51 = vunpack.c.h.bf16 %v1459_v13  ;;  %v3317_v13 = vunpack.c.h.bf16 %v3823_v36 }
 0x6fd   : > { %1711 = vmatpush.msra.mxu3 %v1470_v53 }
 0x6fe   : > { %1350 = vmatpush.msrb.mxu1 %v4023_v55  ;;  %1665 = vmatpush.msra.mxu0 %v1468_v51  ;;  %v3380_v51 = vunpack.c.l.bf16 %v3839_v29 }
 0x6ff   : > { %3233 = vmatmul.msk.f32.vlgmr.msrb.gmra.mxu1 %vm803_vm3, %v1321_v30 }
 0x700   : > { %1685 = vmatpush.msra.mxu1 %v1481_v32 }
 0x702   : > { %v1198_v58 = vpop.f32.mrf.mxu3  ;;  %1686 = vmatpush.msra.mxu1 %v1477_v42 }
 0x703   : > { %3228 = vmatmul.msk.f32.gmra.mxu2 %vm767_vm1, %v1198_v58  ;;  %v3361_v58 = vunpack.c.h.bf16 %v3834_v56 }
 0x704   : > { %1687 = vmatpush.msra.mxu1 %v1473_v48  ;;  %v3838_v48 = vld [vmem:[%s4504_s22 + $0x98] sm:$0xff]  }
 0x705   : > { %1750 = vmatpush.msrb.mxu0 %v3361_v58  ;;  %v3846_v58 = vld [vmem:[%s4504_s22 + $0xd8] sm:$0xff]  }
 0x706   : > { %1688 = vmatpush.msra.mxu1 %v1469_v52  ;;  %v3822_v52 = vld [vmem:[%s4504_s22 + $0x18] sm:$0xff]  }
 0x707   : > { %3234 = vmatmul.msk.f32.gmra.mxu1 %vm803_vm3, %v1322_v59  ;;  %v3360_v59 = vunpack.c.l.bf16 %v3834_v56  ;;  %v3316_v56 = vunpack.c.l.bf16 %v3823_v36 }
 0x708   : > { %1773 = vmatpush.msrb.mxu1 %v3393_v12 }
 0x709   : > { %1751 = vmatpush.msrb.mxu0 %v3360_v59 }
 0x77c   : > { %v1352_v37 = vpop.f32.mrf.mxu1 }
 0x77d   : > { %3235 = vmatmul.msk.f32.vlgmr.msrb.gmra.mxu3 %vm767_vm1, %v1352_v37  ;;  %v3392_v37 = vunpack.c.l.bf16 %v3842_v57  ;;  %v3345_v57 = vunpack.c.h.bf16 %v3830_v47 }
 0x77e   : > { %v1224_v61 = vpop.f32.mrf.mxu2 }
 0x77f   : > { %v1230_v63 = vadd.f32 %v1224_v61, %v4417_v33  ;;  %v3826_v61 = vld [vmem:[%s4504_s22 + $0x38] sm:$0xff]   ;;  %1774 = vmatpush.msrb.mxu1 %v3392_v37  ;;  %v3412_v37 = vunpack.c.l.bf16 %v3847_v45 }
 0x784   : > { %v1355_v60 = vpop.f32.mrf.mxu1 }
 0x785   : > { %3236 = vmatmul.msk.f32.gmra.mxu3 %vm767_vm1, %v1355_v60  ;;  %vm1404_vm1 = vweird.f32 %v4064_v14  ;;  %v3841_v60 = vld [vmem:[%s4504_s22 + $0xb0] sm:$0xff]  }
 0x786   : > { %v1227_v3 = vpop.f32.mrf.mxu2 }
 0x787   : > { %v1231_v5 = vadd.f32 %v1227_v3, %v4420_v41  ;;  %v1401_v41 = vsub.f32 1.0, %v1400_v15  ;;  %v3825_v3 = vld [vmem:[%s4504_s22 + $0x30] sm:$0xff]  }
 0x788   : > { %v3325_v15 = vunpack.c.h.bf16 %v3825_v3 }
 0x789   : > { %v1402_v16 = vmul.f32 %v4064_v14, %v1401_v41 }
 0x78b   : > { %v1403_v17 = vadd.f32 %v4064_v14, %v1402_v16 }
 0x78d   : > { %v4469_v18 = vsel %vm1404_vm1, %v4064_v14, %v1403_v17  ;;  %v3356_v17 = vunpack.c.l.bf16 %v3833_v11 }
 0x800   : > { %v1381_v0 = vpop.f32.mrf.mxu3 }
 0x801   : > { %v1387_v1 = vadd.f32 %v1381_v0, %v1230_v63  ;;  %v3850_v63 = vld [vmem:[%s4504_s22 + $0xf8] sm:$0xff]  }
 0x802   : > { %v3424_v14 = vunpack.c.l.bf16 %v3850_v63 }
 0x803   : > { %v1389_v2 = vadd.f32 %v1387_v1, %v4292_v6  ;;  %v3357_v1 = vunpack.c.h.bf16 %v3833_v11  ;;  %v3377_v11 = vunpack.c.h.bf16 %v3838_v48 }
 0x805   : > { %v1393_v4 = vsel %vm675_vm0, %v1389_v2, 0.0  ;;  %1752 = vmatpush.msrb.mxu0 %v3357_v1  ;;  %v3376_v1 = vunpack.c.l.bf16 %v3838_v48 }
 0x806   : > { %1394 = vadd.xlane.f32.xlu0 %v1393_v4 }
 0x807   : > { %1753 = vmatpush.msrb.mxu0 %v3356_v17  ;;  %v3408_v17 = vunpack.c.l.bf16 %v3846_v58 }
 0x808   : > { %v1384_v8 = vpop.f32.mrf.mxu3 }
 0x809   : > { %v1388_v9 = vadd.f32 %v1384_v8, %v1231_v5  ;;  %v3389_v5 = vunpack.c.h.bf16 %v3841_v60  ;;  %v3425_v8 = vunpack.c.h.bf16 %v3850_v63 }
 0x80b   : > { %v1390_v33 = vadd.f32 %v1388_v9, %v4299_v7  ;;  %v3328_v9 = vunpack.c.l.bf16 %v3826_v61  ;;  %1796 = vmatpush.msrb.mxu3 %v3425_v8  ;;  %1775 = vmatpush.msrb.mxu1 %v3389_v5  ;;  %v3409_v5 = vunpack.c.h.bf16 %v3846_v58  ;;  %v3312_v8 = vunpack.c.l.bf16 %v3822_v52 }
 0x80d   : > { %v1396_v6 = vsel %vm675_vm0, %v1390_v33, 0.0  ;;  %1797 = vmatpush.msrb.mxu3 %v3424_v14 }
 0x80e   : > { %1397 = vadd.xlane.f32.xlu0 %v1396_v6  ;;  %v3832_v6 = vld [vmem:[%s4504_s22 + $0x68] sm:$0xff]  }
 0x80f   : > { %v3352_v34 = vunpack.c.l.bf16 %v3832_v6 }
 0x879   : > { %v1395_v19 = vpop.xlane.xlu0 %1394 }
 0x87a   : > { %v1406_v20 = vmul.f32 %v4469_v18, %v1395_v19  ;;  %v3388_v19 = vunpack.c.l.bf16 %v3841_v60  ;;  %v3313_v60 = vunpack.c.h.bf16 %v3822_v52 }
 0x87c   : > { %v4472_v21 = vsub.f32 %v1389_v2, %v1406_v20  ;;  %v3329_v2 = vunpack.c.h.bf16 %v3826_v61  ;;  %v3824_v20 = vld [vmem:[%s4504_s22 + $0x28] sm:$0xff]   ;;  %1776 = vmatpush.msrb.mxu1 %v3388_v19  ;;  %v4027_v61 = vld [vmem:[%s632_s15] ss:$0 sm:$0xff]  ;;  %s4093_s15 = scalar_lea.hbm %s4902_s14, 32 }
 0x87d   : > { %v3321_v32 = vunpack.c.h.bf16 %v3824_v20  ;;  %v3320_v42 = vunpack.c.l.bf16 %v3824_v20 }
 0x87e   : > { %v1410_v7 = vmul.f32 %v4472_v21, %v4472_v21  ;;  %1727 = vmatpush.msra.mxu2 %v3329_v2 }
 0x880   : > { %v1412_v22 = vsel %vm675_vm0, %v1410_v7, 0.0  ;;  %1728 = vmatpush.msra.mxu2 %v3328_v9 }
 0x881   : > { %1413 = vadd.xlane.f32.xlu0 %v1412_v22  ;;  %v1398_v23 = vpop.xlane.xlu0 %1397 }
 0x882   : > { %v1407_v24 = vmul.f32 %v4469_v18, %v1398_v23  ;;  %v3324_v23 = vunpack.c.l.bf16 %v3825_v3  ;;  %1729 = vmatpush.msra.mxu2 %v3325_v15  ;;  %v3829_v3 = vld [vmem:[%s4504_s22 + $0x50] sm:$0xff]   ;;  %v3828_v15 = vld [vmem:[%s4504_s22 + $0x48] sm:$0xff]  }
 0x883   : > { %v3340_v19 = vunpack.c.l.bf16 %v3829_v3  ;;  %v3336_v39 = vunpack.c.l.bf16 %v3828_v15 }
 0x884   : > { %v4478_v25 = vsub.f32 %v1390_v33, %v1407_v24  ;;  %v3849_v33 = vld [vmem:[%s4504_s22 + $0xf0] sm:$0xff]   ;;  %v3353_v24 = vunpack.c.h.bf16 %v3832_v6  ;;  %1730 = vmatpush.msra.mxu2 %v3324_v23  ;;  %v3341_v6 = vunpack.c.h.bf16 %v3829_v3 }
 0x885   : > { %v3421_v22 = vunpack.c.h.bf16 %v3849_v33  ;;  %v3420_v31 = vunpack.c.l.bf16 %v3849_v33 }
 0x886   : > { %v1411_v26 = vmul.f32 %v4478_v25, %v4478_v25  ;;  %1754 = vmatpush.msrb.mxu0 %v3353_v24  ;;  %1731 = vmatpush.msra.mxu2 %v3321_v32  ;;  %v3827_v32 = vld [vmem:[%s4504_s22 + $0x40] sm:$0xff]  }
 0x887   : > { %1798 = vmatpush.msrb.mxu3 %v3421_v22  ;;  %v3337_v22 = vunpack.c.h.bf16 %v3828_v15  ;;  %v3333_v36 = vunpack.c.h.bf16 %v3827_v32 }
 0x888   : > { %v1415_v27 = vsel %vm675_vm0, %v1411_v26, 0.0  ;;  %v3385_v26 = vunpack.c.h.bf16 %v3840_v10  ;;  %1755 = vmatpush.msrb.mxu0 %v3352_v34  ;;  %1732 = vmatpush.msra.mxu2 %v3320_v42  ;;  %v3835_v34 = vld [vmem:[%s4504_s22 + $0x80] sm:$0xff]   ;;  %v3820_v42 = vld [vmem:[%s4504_s22 + $0x8] sm:$0xff]  }
 0x889   : > { %1416 = vadd.xlane.f32.xlu2 %v1415_v27  ;;  %v3848_v27 = vld [vmem:[%s4504_s22 + $0xe8] sm:$0xff]   ;;  %1799 = vmatpush.msrb.mxu3 %v3420_v31  ;;  %v3304_v48 = vunpack.c.l.bf16 %v3820_v42 }
 0x88a   : > { %v3417_v40 = vunpack.c.h.bf16 %v3848_v27  ;;  %1777 = vmatpush.msrb.mxu1 %v3385_v26  ;;  %v3416_v49 = vunpack.c.l.bf16 %v3848_v27  ;;  %1756 = vmatpush.msrb.mxu0 %v3349_v43  ;;  %v3845_v27 = vld [vmem:[%s4504_s22 + $0xd0] sm:$0xff]   ;;  %v3844_v43 = vld [vmem:[%s4504_s22 + $0xc8] sm:$0xff]  }
 0x88b   : > { %1733 = vmatpush.msra.mxu2 %v3317_v13  ;;  %v3405_v31 = vunpack.c.h.bf16 %v3845_v27  ;;  %v3299_v13 = vld [vmem:[%s4504_s22] sm:$0xff]  }
 0x88c   : > { %1778 = vmatpush.msrb.mxu1 %v3384_v35  ;;  %1800 = vmatpush.msrb.mxu3 %v3417_v40  ;;  %v3404_v40 = vunpack.c.l.bf16 %v3845_v27  ;;  %v3300_v52 = vunpack.c.l.bf16 %v3299_v13  ;;  %v3874_v27 = vld [vmem:[%s4504_s22 + $0x1b8] sm:$0xff]  }
 0x88d   : > { %1757 = vmatpush.msrb.mxu0 %v3348_v62  ;;  %1734 = vmatpush.msra.mxu2 %v3316_v56  ;;  %v3301_v62 = vunpack.c.h.bf16 %v3299_v13 }
 0x88e   : > { %1779 = vmatpush.msrb.mxu1 %v3381_v44  ;;  %1801 = vmatpush.msrb.mxu3 %v3416_v49  ;;  %v3305_v44 = vunpack.c.h.bf16 %v3820_v42  ;;  %v3400_v49 = vunpack.c.l.bf16 %v3844_v43 }
 0x88f   : > { %1758 = vmatpush.msrb.mxu0 %v3345_v57  ;;  %1735 = vmatpush.msra.mxu2 %v3313_v60  ;;  %v1825_v57 = vld [vmem:[%s4487_s20 + $0x90] sm:$0xff] }
 0x890   : > { %1780 = vmatpush.msrb.mxu1 %v3380_v51  ;;  %v1838_v58 = vunpack.c.h.bf16 %v1825_v57 }
 0x891   : > { %1736 = vmatpush.msra.mxu2 %v3312_v8 }
 0x892   : > { %1781 = vmatpush.msrb.mxu1 %v3377_v11  ;;  %v1826_v11 = vld [vmem:[%s4487_s20 + $0x98] sm:$0xff] }
 0x893   : > { %v1840_v8 = vunpack.c.h.bf16 %v1826_v11 }
 0x894   : > { %1782 = vmatpush.msrb.mxu1 %v3376_v1 }
 0x8f4   : > { %v1414_v54 = vpop.xlane.xlu0 %1413 }
 0x8f5   : > { %v1418_v55 = vmul.f32 %v1414_v54, %v4469_v18 }
 0x8f7   : > { %v4499_v30 = vadd.f32 1e-05, %v1418_v55  ;;  %v3413_v55 = vunpack.c.h.bf16 %v3847_v45  ;;  %v3332_v45 = vunpack.c.l.bf16 %v3827_v32  ;;  %v3520_v32 = vunpack.c.l.bf16 %v3874_v27 }
 0x8f9   : > { %4065 = vrsqrt.f32 %v4499_v30  ;;  %vm1428_vm11 = vweird.f32 %v4499_v30  ;;  %1802 = vmatpush.msrb.mxu3 %v3413_v55  ;;  %v1828_v55 = vld [vmem:[%s4487_s20 + $0xd8] sm:$0xff] }
 0x8fb   : > { %1803 = vmatpush.msrb.mxu3 %v3412_v37  ;;  %v1824_v37 = vld [vmem:[%s4487_s20 + $0x58] sm:$0xff] }
 0x8fc   : > { %v1417_v0 = vpop.xlane.xlu2 %1416 }
 0x8fd   : > { %v1419_v4 = vmul.f32 %v1417_v0, %v4469_v18  ;;  %v3344_v0 = vunpack.c.l.bf16 %v3830_v47  ;;  %1804 = vmatpush.msrb.mxu3 %v3409_v5  ;;  %v3401_v47 = vunpack.c.h.bf16 %v3844_v43  ;;  %v1837_v5 = vunpack.c.l.bf16 %v1825_v57 }
 0x8ff   : > { %v4518_v41 = vpop.eup %4065  ;;  %v4520_v16 = vadd.f32 1e-05, %v1419_v4  ;;  %v3837_v4 = vld [vmem:[%s4504_s22 + $0x90] sm:$0xff]   ;;  %1759 = vmatpush.msrb.mxu0 %v3344_v0  ;;  %1805 = vmatpush.msrb.mxu3 %v3408_v17  ;;  %v1822_v0 = vld [vmem:[%s4487_s20 + $0x18] sm:$0xff] }
 0x900   : > { %v1423_v7 = vmul.f32 %v4518_v41, %v4499_v30  ;;  %vm1429_vm3 = vweird.f32 %v4518_v41  ;;  %v4026_v30 = vld [vmem:[%s629_s21] ss:$0 sm:$0xff]  ;;  %v3373_v10 = vunpack.c.h.bf16 %v3837_v4  ;;  %v3372_v20 = vunpack.c.l.bf16 %v3837_v4  ;;  %s649_s21 = scalar_lea.vmem %s4898_s10, %s4276_s25 }
 0x901   : > { %4067 = vrsqrt.f32 %v4520_v16  ;;  %vm1430_vm12 = vmor %vm1428_vm11, %vm1429_vm3  ;;  %vm1438_vm14 = vweird.f32 %v4520_v16  ;;  %1760 = vmatpush.msrb.mxu0 %v3341_v6  ;;  %1806 = vmatpush.msrb.mxu3 %v3405_v31  ;;  %v1831_v3 = vunpack.c.l.bf16 %v1822_v0  ;;  %v1844_v4 = vunpack.c.h.bf16 %v1828_v55 }
 0x902   : > { %v1424_v28 = vmul.f32 %v4518_v41, %v1423_v7  ;;  %1783 = vmatpush.msrb.mxu1 %v3373_v10  ;;  %v1832_v10 = vunpack.c.h.bf16 %v1822_v0 }
 0x903   : > { %1761 = vmatpush.msrb.mxu0 %v3340_v19  ;;  %1807 = vmatpush.msrb.mxu3 %v3404_v40 }
 0x904   : > { %v1425_v38 = vmul.f32 0.5, %v1424_v28  ;;  %1784 = vmatpush.msrb.mxu1 %v3372_v20 }
 0x905   : > { %1762 = vmatpush.msrb.mxu0 %v3337_v22  ;;  %1808 = vmatpush.msrb.mxu3 %v3401_v47 }
 0x906   : > { %v1426_v46 = vsub.f32 1.5, %v1425_v38  ;;  %v3365_v38 = vunpack.c.h.bf16 %v3835_v34 }
 0x907   : > { %v4535_v50 = vpop.eup %4067  ;;  %1763 = vmatpush.msrb.mxu0 %v3336_v39  ;;  %1809 = vmatpush.msrb.mxu3 %v3400_v49 }
 0x908   : > { %v1427_v53 = vmul.f32 %v4518_v41, %v1426_v46  ;;  %v1433_v54 = vmul.f32 %v4535_v50, %v4520_v16  ;;  %vm1439_vm13 = vweird.f32 %v4535_v50  ;;  %v3364_v46 = vunpack.c.l.bf16 %v3835_v34  ;;  %v3873_v34 = vld [vmem:[%s4504_s22 + $0x1b0] sm:$0xff]  }
 0x909   : > { %vm1440_vm15 = vmor %vm1438_vm14, %vm1439_vm13  ;;  %1764 = vmatpush.msrb.mxu0 %v3333_v36 }
 0x90a   : > { %v1431_v12 = vsel %vm1430_vm12, %v4518_v41, %v1427_v53  ;;  %v1434_v59 = vmul.f32 %v4535_v50, %v1433_v54  ;;  %v3836_v41 = vld [vmem:[%s4504_s22 + $0x88] sm:$0xff]   ;;  %v1827_v54 = vld [vmem:[%s4487_s20 + $0xd0] sm:$0xff] }
 0x90b   : > { %v1442_v63 = vmul.f32 %v1431_v12, %v4472_v21  ;;  %v3369_v23 = vunpack.c.h.bf16 %v3836_v41  ;;  %v3368_v29 = vunpack.c.l.bf16 %v3836_v41  ;;  %1765 = vmatpush.msrb.mxu0 %v3332_v45  ;;  %v1842_v56 = vunpack.c.h.bf16 %v1827_v54 }
 0x90c   : > { %v1435_v2 = vmul.f32 0.5, %v1434_v59  ;;  %v1839_v12 = vunpack.c.l.bf16 %v1826_v11  ;;  %v1823_v59 = vld [vmem:[%s4487_s20 + $0x50] sm:$0xff]  ;;  %v1841_v1 = vunpack.c.l.bf16 %v1827_v54 }
 0x90d   : > { %v1447_v9 = vmul.f32 %v4026_v30, %v1442_v63  ;;  %1785 = vmatpush.msrb.mxu1 %v3369_v23  ;;  %v1834_v60 = vunpack.c.h.bf16 %v1823_v59  ;;  %v1821_v63 = vld [vmem:[%s4487_s20 + $0x10] sm:$0xff] }
 0x90e   : > { %v1436_v33 = vsub.f32 1.5, %v1435_v2  ;;  %v1830_v2 = vunpack.c.h.bf16 %v1821_v63  ;;  %v1829_v6 = vunpack.c.l.bf16 %v1821_v63  ;;  %v3871_v63 = vld [vmem:[%s4504_s22 + $0x1a0] sm:$0xff]  }
 0x90f   : > { %v4561_v21 = vadd.f32 %v4027_v61, %v1447_v9  ;;  %1786 = vmatpush.msrb.mxu1 %v3368_v29  ;;  %v1833_v9 = vunpack.c.l.bf16 %v1823_v59  ;;  %v3521_v29 = vunpack.c.h.bf16 %v3874_v27  ;;  %v3869_v27 = vld [vmem:[%s4504_s22 + $0x190] sm:$0xff]  }
 0x910   : > { %v1437_v14 = vmul.f32 %v4535_v50, %v1436_v33  ;;  %v1836_v33 = vunpack.c.h.bf16 %v1824_v37 }
 0x911   : > { %3237 = vmatmul.msk.f32.vlgmr.msrb.gmra.mxu2 %vm675_vm0, %v4561_v21  ;;  %3239 = vmatmul.msk.f32.vlgmr.msra.gmra.mxu0 %vm675_vm0, %v4561_v21 }
 0x912   : > { %v1441_v7 = vsel %vm1440_vm15, %v4535_v50, %v1437_v14  ;;  %3241 = vmatmul.msk.f32.vlgmr.msra.gmra.mxu1 %vm675_vm0, %v4561_v21  ;;  %3243 = vmatmul.msk.f32.vlgmr.msra.gmra.mxu3 %vm675_vm0, %v4561_v21  ;;  %v3843_v50 = vld [vmem:[%s4504_s22 + $0xc0] sm:$0xff]  }
 0x913   : > { %v1443_v16 = vmul.f32 %v1441_v7, %v4478_v25  ;;  %v3821_v25 = vld [vmem:[%s4504_s22 + $0x10] sm:$0xff]   ;;  %1787 = vmatpush.msrb.mxu1 %v3365_v38  ;;  %v3397_v51 = vunpack.c.h.bf16 %v3843_v50  ;;  %v3396_v53 = vunpack.c.l.bf16 %v3843_v50  ;;  %2018 = vmatpush.msra.mxu0 %v1842_v56  ;;  %v1611_v14 = vld [vmem:[%s4609_s18] sm:$0xf] }
 0x914   : > { %v3309_v28 = vunpack.c.h.bf16 %v3821_v25  ;;  %v3308_v35 = vunpack.c.l.bf16 %v3821_v25  ;;  %v1614_v15 = vperm.slane %v1611_v14, 1  ;;  %v1615_v41 = vperm.slane %v1611_v14, 2  ;;  %v3866_v25 = vld [vmem:[%s4504_s22 + $0x178] sm:$0xff]  }
 0x915   : > { %v1448_v24 = vmul.f32 %v4026_v30, %v1443_v16  ;;  %1788 = vmatpush.msrb.mxu1 %v3364_v46  ;;  %1810 = vmatpush.msrb.mxu3 %v3397_v51  ;;  %v1843_v30 = vunpack.c.l.bf16 %v1828_v55  ;;  %v1613_v22 = vperm.slane %v1611_v14, 0  ;;  %v3489_v39 = vunpack.c.h.bf16 %v3866_v25 }
 0x916   : > { %1737 = vmatpush.msra.mxu2 %v3309_v28  ;;  %2019 = vmatpush.msra.mxu0 %v1838_v58  ;;  %v3865_v28 = vld [vmem:[%s4504_s22 + $0x170] sm:$0xff]   ;;  %v3488_v31 = vunpack.c.l.bf16 %v3866_v25 }
 0x917   : > { %v4579_v26 = vadd.f32 %v4027_v61, %v1448_v24  ;;  %1811 = vmatpush.msrb.mxu3 %v3396_v53  ;;  %2041 = vmatpush.msra.mxu1 %v1843_v30  ;;  %v1835_v61 = vunpack.c.l.bf16 %v1824_v37  ;;  %v1616_v24 = vperm.slane %v1611_v14, 3  ;;  %v3485_v40 = vunpack.c.h.bf16 %v3865_v28  ;;  %v3870_v14 = vld [vmem:[%s4504_s22 + $0x198] sm:$0xff]   ;;  %v3861_v25 = vld [vmem:[%s4504_s22 + $0x150] sm:$0xff]  }
 0x918   : > { %1738 = vmatpush.msra.mxu2 %v3308_v35  ;;  %2020 = vmatpush.msra.mxu0 %v1834_v60  ;;  %v3484_v50 = vunpack.c.l.bf16 %v3865_v28  ;;  %v3858_v60 = vld [vmem:[%s4504_s22 + $0x138] sm:$0xff]  }
 0x919   : > { %3238 = vmatmul.msk.f32.gmra.mxu2 %vm675_vm0, %v4579_v26  ;;  %3240 = vmatmul.msk.f32.gmra.mxu0 %vm675_vm0, %v4579_v26  ;;  %v3457_v0 = vunpack.c.h.bf16 %v3858_v60 }
 0x91a   : > { %3242 = vmatmul.msk.f32.gmra.mxu1 %vm675_vm0, %v4579_v26  ;;  %3244 = vmatmul.msk.f32.gmra.mxu3 %vm675_vm0, %v4579_v26 }
 0x91b   : > { %1739 = vmatpush.msra.mxu2 %v3305_v44  ;;  %2042 = vmatpush.msra.mxu1 %v1839_v12  ;;  %v3517_v44 = vunpack.c.h.bf16 %v3873_v34 }
 0x91c   : > { %2021 = vmatpush.msra.mxu0 %v1830_v2  ;;  %2064 = vmatpush.msra.mxu3 %v1844_v4  ;;  %v3509_v2 = vunpack.c.h.bf16 %v3871_v63  ;;  %v3456_v4 = vunpack.c.l.bf16 %v3858_v60  ;;  %v3877_v60 = vld [vmem:[%s4504_s22 + $0x1d0] sm:$0xff]  }
 0x91d   : > { %1740 = vmatpush.msra.mxu2 %v3304_v48  ;;  %2043 = vmatpush.msra.mxu1 %v1835_v61  ;;  %v3864_v48 = vld [vmem:[%s4504_s22 + $0x168] sm:$0xff]   ;;  %v3863_v61 = vld [vmem:[%s4504_s22 + $0x160] sm:$0xff]  }
 0x91e   : > { %2065 = vmatpush.msra.mxu3 %v1840_v8  ;;  %v3481_v54 = vunpack.c.h.bf16 %v3864_v48  ;;  %v3480_v59 = vunpack.c.l.bf16 %v3864_v48  ;;  %v3862_v8 = vld [vmem:[%s4504_s22 + $0x158] sm:$0xff]  }
 0x91f   : > { %1741 = vmatpush.msra.mxu2 %v3301_v62  ;;  %2044 = vmatpush.msra.mxu1 %v1831_v3  ;;  %v3872_v62 = vld [vmem:[%s4504_s22 + $0x1a8] sm:$0xff]   ;;  %v3882_v3 = vld [vmem:[%s4504_s22 + $0x1f8] sm:$0xff]  }
 0x920   : > { %2066 = vmatpush.msra.mxu3 %v1836_v33  ;;  %v3513_v55 = vunpack.c.h.bf16 %v3872_v62  ;;  %v3512_v37 = vunpack.c.l.bf16 %v3872_v62  ;;  %v3476_v33 = vunpack.c.l.bf16 %v3863_v61 }
 0x921   : > { %1742 = vmatpush.msra.mxu2 %v3300_v52  ;;  %v3516_v52 = vunpack.c.l.bf16 %v3873_v34 }
 0x922   : > { %2067 = vmatpush.msra.mxu3 %v1832_v10  ;;  %v3552_v10 = vunpack.c.l.bf16 %v3882_v3 }
 0x923   : > { %1995 = vmatpush.msrb.mxu2 %v1841_v1  ;;  %v3477_v1 = vunpack.c.h.bf16 %v3863_v61 }
 0x925   : > { %1996 = vmatpush.msrb.mxu2 %v1837_v5  ;;  %v3857_v5 = vld [vmem:[%s4504_s22 + $0x130] sm:$0xff]  }
 0x927   : > { %1997 = vmatpush.msrb.mxu2 %v1833_v9  ;;  %v3553_v9 = vunpack.c.h.bf16 %v3882_v3  ;;  %v3876_v3 = vld [vmem:[%s4504_s22 + $0x1c8] sm:$0xff]  }
 0x929   : > { %1998 = vmatpush.msrb.mxu2 %v1829_v6  ;;  %v3508_v6 = vunpack.c.l.bf16 %v3871_v63  ;;  %v3533_v63 = vunpack.c.h.bf16 %v3877_v60 }
 0x98e   : > { %v1667_v17 = vpop.f32.mrf.mxu0 }
 0x98f   : > { %v1668_v19 = vadd.f32 %v1667_v17, %v1614_v15  ;;  %v1690_v20 = vpop.f32.mrf.mxu1  ;;  %v3473_v17 = vunpack.c.h.bf16 %v3862_v8 }
 0x990   : > { %v1691_v7 = vadd.f32 %v1690_v20, %v1615_v41 }
 0x991   : > { %v1720_v16 = vmax.f32 %v1668_v19, 0.0  ;;  %v3505_v19 = vunpack.c.h.bf16 %v3870_v14 }
 0x992   : > { %v1721_v23 = vmax.f32 %v1691_v7, 0.0  ;;  %v3452_v7 = vunpack.c.l.bf16 %v3857_v5 }
 0x993   : > { %1766 = vmatmul.f32.vlgmr.msrb.gmra.mxu0 %v1720_v16  ;;  %v3472_v16 = vunpack.c.l.bf16 %v3862_v8 }
 0x994   : > { %1789 = vmatmul.f32.vlgmr.msrb.gmra.mxu1 %v1721_v23  ;;  %v1644_v35 = vpop.f32.mrf.mxu2  ;;  %2106 = vmatpush.msrb.mxu0 %v3489_v39  ;;  %v3469_v39 = vunpack.c.h.bf16 %v3861_v25 }
 0x995   : > { %v1645_v36 = vadd.f32 %v1644_v35, %v1613_v22  ;;  %v1713_v38 = vpop.f32.mrf.mxu3  ;;  %2129 = vmatpush.msrb.mxu1 %v3521_v29  ;;  %v3501_v29 = vunpack.c.h.bf16 %v3869_v27  ;;  %v3468_v35 = vunpack.c.l.bf16 %v3861_v25 }
 0x996   : > { %v1714_v42 = vadd.f32 %v1713_v38, %v1616_v24  ;;  %v1670_v43 = vpop.f32.mrf.mxu0  ;;  %2107 = vmatpush.msrb.mxu0 %v3488_v31  ;;  %v3880_v31 = vld [vmem:[%s4504_s22 + $0x1e8] sm:$0xff]  }
 0x997   : > { %v1719_v45 = vmax.f32 %v1645_v36, 0.0  ;;  %v1671_v46 = vadd.f32 %v1670_v43, %v1614_v15  ;;  %v1693_v47 = vpop.f32.mrf.mxu1  ;;  %2130 = vmatpush.msrb.mxu1 %v3520_v32  ;;  %v3881_v15 = vld [vmem:[%s4504_s22 + $0x1f0] sm:$0xff]   ;;  %v3545_v32 = vunpack.c.h.bf16 %v3880_v31  ;;  %v3500_v36 = vunpack.c.l.bf16 %v3869_v27 }
 0x998   : > { %v1722_v49 = vmax.f32 %v1714_v42, 0.0  ;;  %v1694_v13 = vadd.f32 %v1693_v47, %v1615_v41  ;;  %2108 = vmatpush.msrb.mxu0 %v3485_v40  ;;  %v3453_v41 = vunpack.c.h.bf16 %v3857_v5  ;;  %v3549_v20 = vunpack.c.h.bf16 %v3881_v15  ;;  %v3855_v40 = vld [vmem:[%s4504_s22 + $0x120] sm:$0xff]   ;;  %v3860_v42 = vld [vmem:[%s4504_s22 + $0x148] sm:$0xff]  }
 0x999   : > { %v1724_v51 = vmax.f32 %v1671_v46, 0.0  ;;  %1743 = vmatmul.f32.vlgmr.msra.gmra.mxu2 %v1719_v45  ;;  %2131 = vmatpush.msrb.mxu1 %v3517_v44  ;;  %v3548_v23 = vunpack.c.l.bf16 %v3881_v15  ;;  %v3544_v38 = vunpack.c.l.bf16 %v3880_v31  ;;  %v3445_v43 = vunpack.c.h.bf16 %v3855_v40  ;;  %v3868_v45 = vld [vmem:[%s4504_s22 + $0x188] sm:$0xff]   ;;  %v3879_v46 = vld [vmem:[%s4504_s22 + $0x1e0] sm:$0xff]  }
 0x99a   : > { %v1725_v53 = vmax.f32 %v1694_v13, 0.0  ;;  %1812 = vmatmul.f32.vlgmr.msrb.gmra.mxu3 %v1722_v49  ;;  %2109 = vmatpush.msrb.mxu0 %v3484_v50  ;;  %v3465_v44 = vunpack.c.h.bf16 %v3860_v42  ;;  %v3497_v47 = vunpack.c.h.bf16 %v3868_v45  ;;  %v3541_v48 = vunpack.c.h.bf16 %v3879_v46 }
 0x99b   : > { %1769 = vmatmul.f32.gmra.mxu0 %v1724_v51  ;;  %2132 = vmatpush.msrb.mxu1 %v3516_v52  ;;  %v3444_v49 = vunpack.c.l.bf16 %v3855_v40  ;;  %v3464_v13 = vunpack.c.l.bf16 %v3860_v42  ;;  %v3496_v50 = vunpack.c.l.bf16 %v3868_v45  ;;  %v3540_v62 = vunpack.c.l.bf16 %v3879_v46  ;;  %v3854_v51 = vld [vmem:[%s4504_s22 + $0x118] sm:$0xff]   ;;  %v3859_v52 = vld [vmem:[%s4504_s22 + $0x140] sm:$0xff]  }
 0x99c   : > { %1792 = vmatmul.f32.gmra.mxu1 %v1725_v53  ;;  %v1647_v56 = vpop.f32.mrf.mxu2  ;;  %2110 = vmatpush.msrb.mxu0 %v3481_v54  ;;  %v3867_v53 = vld [vmem:[%s4504_s22 + $0x180] sm:$0xff]   ;;  %v3441_v54 = vunpack.c.h.bf16 %v3854_v51  ;;  %v3529_v5 = vunpack.c.h.bf16 %v3876_v3 }
 0x99d   : > { %v1648_v30 = vadd.f32 %v1647_v56, %v1613_v22  ;;  %v1716_v57 = vpop.f32.mrf.mxu3  ;;  %2133 = vmatpush.msrb.mxu1 %v3513_v55  ;;  %2083 = vmatpush.msra.mxu2 %v3457_v0  ;;  %v3504_v22 = vunpack.c.l.bf16 %v3870_v14  ;;  %v3461_v55 = vunpack.c.h.bf16 %v3859_v52  ;;  %v3493_v56 = vunpack.c.h.bf16 %v3867_v53  ;;  %v4673_v42 = vld [vmem:[%s4609_s18 + $0x4] sm:$0xf] }
 0x99e   : > { %v1717_v11 = vadd.f32 %v1716_v57, %v1616_v24  ;;  %2111 = vmatpush.msrb.mxu0 %v3480_v59  ;;  %2152 = vmatpush.msrb.mxu3 %v3553_v9  ;;  %v3856_v24 = vld [vmem:[%s4504_s22 + $0x128] sm:$0xff]   ;;  %v3528_v9 = vunpack.c.l.bf16 %v3876_v3  ;;  %v1975_v3 = vperm.slane %v4673_v42, 0 }
 0x99f   : > { %v1723_v58 = vmax.f32 %v1648_v30, 0.0  ;;  %2134 = vmatpush.msrb.mxu1 %v3512_v37  ;;  %2084 = vmatpush.msra.mxu2 %v3456_v4  ;;  %v3449_v28 = vunpack.c.h.bf16 %v3856_v24  ;;  %v3448_v34 = vunpack.c.l.bf16 %v3856_v24  ;;  %v3878_v30 = vld [vmem:[%s4504_s22 + $0x1d8] sm:$0xff]   ;;  %v3853_v37 = vld [vmem:[%s4504_s22 + $0x110] sm:$0xff]  }
 0x9a0   : > { %v1726_v12 = vmax.f32 %v1717_v11, 0.0  ;;  %2112 = vmatpush.msrb.mxu0 %v3477_v1  ;;  %2153 = vmatpush.msrb.mxu3 %v3552_v10  ;;  %v3537_v57 = vunpack.c.h.bf16 %v3878_v30  ;;  %v3440_v11 = vunpack.c.l.bf16 %v3854_v51  ;;  %v3536_v59 = vunpack.c.l.bf16 %v3878_v30  ;;  %v2183_v10 = vld [vmem:[%s4487_s20 + $0xe0] sm:$0xff] }
 0x9a1   : > { %1746 = vmatmul.f32.gmra.mxu2 %v1723_v58  ;;  %2135 = vmatpush.msrb.mxu1 %v3509_v2  ;;  %v3460_v58 = vunpack.c.l.bf16 %v3859_v52  ;;  %v3437_v61 = vunpack.c.h.bf16 %v3853_v37  ;;  %v3436_v0 = vunpack.c.l.bf16 %v3853_v37  ;;  %v3532_v1 = vunpack.c.l.bf16 %v3877_v60  ;;  %v3852_v2 = vld [vmem:[%s4504_s22 + $0x108] sm:$0xff]  }
 0x9a2   : > { %1815 = vmatmul.f32.gmra.mxu3 %v1726_v12  ;;  %2113 = vmatpush.msrb.mxu0 %v3476_v33  ;;  %v3492_v12 = vunpack.c.l.bf16 %v3867_v53  ;;  %v3433_v4 = vunpack.c.h.bf16 %v3852_v2  ;;  %v3432_v8 = vunpack.c.l.bf16 %v3852_v2  ;;  %v3851_v33 = vld [vmem:[%s4504_s22 + $0x100] sm:$0xff]  }
 0x9a3   : > { %3247 = vmatmul.msk.f32.vlgmr.msra.gmra.mxu0 %vm675_vm0, %v4561_v21  ;;  %2136 = vmatpush.msrb.mxu1 %v3508_v6  ;;  %v3875_v6 = vld [vmem:[%s4504_s22 + $0x1c0] sm:$0xff]   ;;  %v3429_v14 = vunpack.c.h.bf16 %v3851_v33 }
 0x9a4   : > { %3249 = vmatmul.msk.f32.vlgmr.msra.gmra.mxu1 %vm675_vm0, %v4561_v21  ;;  %2085 = vmatpush.msra.mxu2 %v3453_v41  ;;  %v3525_v15 = vunpack.c.h.bf16 %v3875_v6  ;;  %v2198_v41 = vunpack.c.h.bf16 %v2183_v10 }
 0x9a5   : > { %2114 = vmatpush.msrb.mxu0 %v3473_v17  ;;  %2137 = vmatpush.msrb.mxu1 %v3505_v19  ;;  %v2184_v17 = vld [vmem:[%s4487_s20 + $0xe8] sm:$0xff] }
 0x9a6   : > { %2154 = vmatpush.msrb.mxu3 %v3549_v20  ;;  %2086 = vmatpush.msra.mxu2 %v3452_v7  ;;  %v2199_v19 = vunpack.c.l.bf16 %v2184_v17  ;;  %v2181_v20 = vld [vmem:[%s4487_s20 + $0xa0] sm:$0xff]  ;;  %v2182_v7 = vld [vmem:[%s4487_s20 + $0xa8] sm:$0xff] }
 0x9a7   : > { %2115 = vmatpush.msrb.mxu0 %v3472_v16  ;;  %2138 = vmatpush.msrb.mxu1 %v3504_v22  ;;  %v3428_v22 = vunpack.c.l.bf16 %v3851_v33  ;;  %v2194_v24 = vunpack.c.h.bf16 %v2181_v20  ;;  %v2195_v25 = vunpack.c.l.bf16 %v2182_v7  ;;  %v2193_v45 = vunpack.c.l.bf16 %v2181_v20 }
 0x9a8   : > { %2155 = vmatpush.msrb.mxu3 %v3548_v23  ;;  %2087 = vmatpush.msra.mxu2 %v3449_v28  ;;  %v3524_v23 = vunpack.c.l.bf16 %v3875_v6  ;;  %v2179_v28 = vld [vmem:[%s4487_s20 + $0x60] sm:$0xff]  ;;  %v2196_v46 = vunpack.c.h.bf16 %v2182_v7 }
 0x9a9   : > { %3245 = vmatmul.msk.f32.vlgmr.msrb.gmra.mxu2 %vm675_vm0, %v4561_v21  ;;  %2116 = vmatpush.msrb.mxu0 %v3469_v39  ;;  %v2180_v39 = vld [vmem:[%s4487_s20 + $0x68] sm:$0xff] }
 0x9aa   : > { %3251 = vmatmul.msk.f32.vlgmr.msra.gmra.mxu3 %vm675_vm0, %v4561_v21  ;;  %2139 = vmatpush.msrb.mxu1 %v3501_v29  ;;  %v2190_v29 = vunpack.c.h.bf16 %v2179_v28  ;;  %v2191_v31 = vunpack.c.l.bf16 %v2180_v39  ;;  %v2192_v51 = vunpack.c.h.bf16 %v2180_v39  ;;  %v3896_v39 = vld [vmem:[%s4504_s22 + $0x268] sm:$0xff]  }
 0x9ab   : > { %3248 = vmatmul.msk.f32.gmra.mxu0 %vm675_vm0, %v4579_v26  ;;  %2156 = vmatpush.msrb.mxu3 %v3545_v32  ;;  %v2177_v32 = vld [vmem:[%s4487_s20 + $0x20] sm:$0xff] }
 0x9ac   : > { %3250 = vmatmul.msk.f32.gmra.mxu1 %vm675_vm0, %v4579_v26  ;;  %2088 = vmatpush.msra.mxu2 %v3448_v34  ;;  %v2178_v34 = vld [vmem:[%s4487_s20 + $0x28] sm:$0xff]  ;;  %v2185_v52 = vunpack.c.l.bf16 %v2177_v32 }
 0x9ad   : > { %2117 = vmatpush.msrb.mxu0 %v3468_v35  ;;  %2140 = vmatpush.msrb.mxu1 %v3500_v36  ;;  %v2186_v35 = vunpack.c.h.bf16 %v2177_v32  ;;  %v2187_v36 = vunpack.c.l.bf16 %v2178_v34  ;;  %v2188_v53 = vunpack.c.h.bf16 %v2178_v34  ;;  %v3609_v34 = vunpack.c.h.bf16 %v3896_v39 }
 0x9ae   : > { %2157 = vmatpush.msrb.mxu3 %v3544_v38  ;;  %2089 = vmatpush.msra.mxu2 %v3445_v43  ;;  %v2197_v43 = vunpack.c.l.bf16 %v2183_v10 }
 0x9af   : > { %2118 = vmatpush.msrb.mxu0 %v3465_v44  ;;  %2141 = vmatpush.msrb.mxu1 %v3497_v47  ;;  %v2200_v44 = vunpack.c.h.bf16 %v2184_v17 }
 0x9b0   : > { %2158 = vmatpush.msrb.mxu3 %v3541_v48  ;;  %2090 = vmatpush.msra.mxu2 %v3444_v49 }
 0x9b1   : > { %3246 = vmatmul.msk.f32.gmra.mxu2 %vm675_vm0, %v4579_v26  ;;  %2119 = vmatpush.msrb.mxu0 %v3464_v13  ;;  %v1976_v13 = vperm.slane %v4673_v42, 1 }
 0x9b2   : > { %3252 = vmatmul.msk.f32.gmra.mxu3 %vm675_vm0, %v4579_v26  ;;  %2142 = vmatpush.msrb.mxu1 %v3496_v50  ;;  %v1977_v50 = vperm.slane %v4673_v42, 2 }
 0x9b3   : > { %2159 = vmatpush.msrb.mxu3 %v3540_v62  ;;  %2091 = vmatpush.msra.mxu2 %v3441_v54  ;;  %v2189_v62 = vunpack.c.l.bf16 %v2179_v28 }
 0x9b4   : > { %2120 = vmatpush.msrb.mxu0 %v3461_v55  ;;  %2143 = vmatpush.msrb.mxu1 %v3493_v56 }
 0x9b5   : > { %2160 = vmatpush.msrb.mxu3 %v3537_v57  ;;  %2092 = vmatpush.msra.mxu2 %v3440_v11 }
 0x9b6   : > { %2121 = vmatpush.msrb.mxu0 %v3460_v58  ;;  %2144 = vmatpush.msrb.mxu1 %v3492_v12 }
 0x9b7   : > { %2161 = vmatpush.msrb.mxu3 %v3536_v59  ;;  %2093 = vmatpush.msra.mxu2 %v3437_v61 }
 0x9b8   : > { %2374 = vmatpush.msra.mxu0 %v2198_v41  ;;  %2397 = vmatpush.msra.mxu1 %v2199_v19 }
 0x9b9   : > { %2162 = vmatpush.msrb.mxu3 %v3533_v63  ;;  %2094 = vmatpush.msra.mxu2 %v3436_v0 }
 0x9ba   : > { %2375 = vmatpush.msra.mxu0 %v2194_v24  ;;  %2398 = vmatpush.msra.mxu1 %v2195_v25  ;;  %v3904_v25 = vld [vmem:[%s4504_s22 + $0x2a8] sm:$0xff]  }
 0x9bb   : > { %2163 = vmatpush.msrb.mxu3 %v3532_v1  ;;  %2095 = vmatpush.msra.mxu2 %v3433_v4  ;;  %v3641_v32 = vunpack.c.h.bf16 %v3904_v25 }
 0x9bc   : > { %2376 = vmatpush.msra.mxu0 %v2190_v29  ;;  %2399 = vmatpush.msra.mxu1 %v2191_v31 }
 0x9bd   : > { %2164 = vmatpush.msrb.mxu3 %v3529_v5  ;;  %2096 = vmatpush.msra.mxu2 %v3432_v8  ;;  %v1978_v5 = vperm.slane %v4673_v42, 3  ;;  %v3898_v8 = vld [vmem:[%s4504_s22 + $0x278] sm:$0xff]  }
 0x9be   : > { %2377 = vmatpush.msra.mxu0 %v2186_v35  ;;  %2400 = vmatpush.msra.mxu1 %v2187_v36  ;;  %v3617_v6 = vunpack.c.h.bf16 %v3898_v8  ;;  %v3616_v19 = vunpack.c.l.bf16 %v3898_v8  ;;  %v3900_v8 = vld [vmem:[%s4504_s22 + $0x288] sm:$0xff]  }
 0x9bf   : > { %2165 = vmatpush.msrb.mxu3 %v3528_v9  ;;  %2097 = vmatpush.msra.mxu2 %v3429_v14  ;;  %v3906_v9 = vld [vmem:[%s4504_s22 + $0x2b8] sm:$0xff]   ;;  %v3897_v14 = vld [vmem:[%s4504_s22 + $0x270] sm:$0xff]  }
 0x9c0   : > { %v3649_v10 = vunpack.c.h.bf16 %v3906_v9  ;;  %v3648_v20 = vunpack.c.l.bf16 %v3906_v9  ;;  %v3613_v24 = vunpack.c.h.bf16 %v3897_v14  ;;  %v3612_v31 = vunpack.c.l.bf16 %v3897_v14 }
 0x9c1   : > { %2166 = vmatpush.msrb.mxu3 %v3525_v15  ;;  %2098 = vmatpush.msra.mxu2 %v3428_v22  ;;  %v3905_v15 = vld [vmem:[%s4504_s22 + $0x2b0] sm:$0xff]   ;;  %v3625_v14 = vunpack.c.h.bf16 %v3900_v8 }
 0x9c2   : > { %v3645_v22 = vunpack.c.h.bf16 %v3905_v15  ;;  %v3644_v28 = vunpack.c.l.bf16 %v3905_v15 }
 0x9c3   : > { %2167 = vmatpush.msrb.mxu3 %v3524_v23  ;;  %2351 = vmatpush.msrb.mxu2 %v2197_v43 }
 0x9c5   : > { %2420 = vmatpush.msra.mxu3 %v2200_v44  ;;  %2352 = vmatpush.msrb.mxu2 %v2193_v45  ;;  %v3608_v44 = vunpack.c.l.bf16 %v3896_v39  ;;  %v3640_v45 = vunpack.c.l.bf16 %v3904_v25  ;;  %v3887_v39 = vld [vmem:[%s4504_s22 + $0x220] sm:$0xff]  }
 0x9c7   : > { %2421 = vmatpush.msra.mxu3 %v2196_v46  ;;  %2353 = vmatpush.msrb.mxu2 %v2189_v62  ;;  %v3895_v46 = vld [vmem:[%s4504_s22 + $0x260] sm:$0xff]  }
 0x9c9   : > { %2422 = vmatpush.msra.mxu3 %v2192_v51  ;;  %2354 = vmatpush.msrb.mxu2 %v2185_v52  ;;  %v3902_v51 = vld [vmem:[%s4504_s22 + $0x298] sm:$0xff]  }
 0x9cb   : > { %2423 = vmatpush.msra.mxu3 %v2188_v53  ;;  %v3633_v53 = vunpack.c.h.bf16 %v3902_v51 }
 0xa10   : > { %v1767_v16 = vpop.f32.mrf.mxu0 }
 0xa11   : > { %v1790_v27 = vpop.f32.mrf.mxu1 }
 0xa18   : > { %v1770_v38 = vpop.f32.mrf.mxu0 }
 0xa19   : > { %v1793_v40 = vpop.f32.mrf.mxu1 }
 0xa1c   : > { %v1744_v47 = vpop.f32.mrf.mxu2 }
 0xa1d   : > { %v1768_v48 = vadd.f32 %v1767_v16, %v1744_v47  ;;  %v1813_v49 = vpop.f32.mrf.mxu3  ;;  %v3903_v47 = vld [vmem:[%s4504_s22 + $0x2a0] sm:$0xff]  }
 0xa1e   : > { %v3636_v62 = vunpack.c.l.bf16 %v3903_v47 }
 0xa1f   : > { %v1791_v54 = vadd.f32 %v1790_v27, %v1768_v48  ;;  %v3894_v48 = vld [vmem:[%s4504_s22 + $0x258] sm:$0xff]  }
 0xa20   : > { %v2023_v55 = vpop.f32.mrf.mxu0  ;;  %v3601_v52 = vunpack.c.h.bf16 %v3894_v48 }
 0xa21   : > { %v4677_v56 = vadd.f32 %v1813_v49, %v1791_v54  ;;  %v2024_v30 = vadd.f32 %v2023_v55, %v1976_v13  ;;  %v2046_v57 = vpop.f32.mrf.mxu1  ;;  %v3605_v49 = vunpack.c.h.bf16 %v3895_v46  ;;  %v3890_v54 = vld [vmem:[%s4504_s22 + $0x238] sm:$0xff]  }
 0xa22   : > { %v2047_v11 = vadd.f32 %v2046_v57, %v1977_v50  ;;  %v3914_v55 = vld [vmem:[%s4504_s22 + $0x2f8] sm:$0xff]   ;;  %v3600_v57 = vunpack.c.l.bf16 %v3894_v48  ;;  %v3909_v48 = vld [vmem:[%s4504_s22 + $0x2d0] sm:$0xff]  }
 0xa23   : > { %v2076_v58 = vmax.f32 %v2024_v30, 0.0  ;;  %v3585_v30 = vunpack.c.h.bf16 %v3890_v54 }
 0xa24   : > { %v2077_v12 = vmax.f32 %v2047_v11, 0.0  ;;  %v1747_v59 = vpop.f32.mrf.mxu2  ;;  %v3632_v11 = vunpack.c.l.bf16 %v3902_v51 }
 0xa25   : > { %v1771_v37 = vadd.f32 %v1770_v38, %v1747_v59  ;;  %v1816_v60 = vpop.f32.mrf.mxu3  ;;  %2122 = vmatmul.f32.vlgmr.msrb.gmra.mxu0 %v2076_v58  ;;  %v3681_v58 = vunpack.c.h.bf16 %v3914_v55  ;;  %v3893_v59 = vld [vmem:[%s4504_s22 + $0x250] sm:$0xff]  }
 0xa26   : > { %2145 = vmatmul.f32.vlgmr.msrb.gmra.mxu1 %v2077_v12  ;;  %2462 = vmatpush.msrb.mxu0 %v3617_v6  ;;  %v3584_v12 = vunpack.c.l.bf16 %v3890_v54 }
 0xa27   : > { %v1794_v61 = vadd.f32 %v1793_v40, %v1771_v37  ;;  %2485 = vmatpush.msrb.mxu1 %v3649_v10  ;;  %v3901_v37 = vld [vmem:[%s4504_s22 + $0x290] sm:$0xff]  }
 0xa28   : > { %v2026_v63 = vpop.f32.mrf.mxu0  ;;  %2463 = vmatpush.msrb.mxu0 %v3616_v19  ;;  %v3628_v9 = vunpack.c.l.bf16 %v3901_v37 }
 0xa29   : > { %v4679_v0 = vadd.f32 %v1816_v60, %v1794_v61  ;;  %v2027_v1 = vadd.f32 %v2026_v63, %v1976_v13  ;;  %v2049_v2 = vpop.f32.mrf.mxu1  ;;  %2486 = vmatpush.msrb.mxu1 %v3648_v20  ;;  %v3637_v13 = vunpack.c.h.bf16 %v3903_v47  ;;  %v3680_v60 = vunpack.c.l.bf16 %v3914_v55  ;;  %v3889_v61 = vld [vmem:[%s4504_s22 + $0x230] sm:$0xff]   ;;  %v3884_v55 = vld [vmem:[%s4504_s22 + $0x208] sm:$0xff]  }
 0xa2a   : > { %v2050_v4 = vadd.f32 %v2049_v2, %v1977_v50  ;;  %2464 = vmatpush.msrb.mxu0 %v3613_v24  ;;  %v3604_v50 = vunpack.c.l.bf16 %v3895_v46  ;;  %v3597_v63 = vunpack.c.h.bf16 %v3893_v59  ;;  %v3581_v2 = vunpack.c.h.bf16 %v3889_v61  ;;  %v3885_v47 = vld [vmem:[%s4504_s22 + $0x210] sm:$0xff]  }
 0xa2b   : > { %v2080_v33 = vmax.f32 %v2027_v1, 0.0  ;;  %2487 = vmatpush.msrb.mxu1 %v3645_v22  ;;  %v3629_v1 = vunpack.c.h.bf16 %v3901_v37  ;;  %v3580_v6 = vunpack.c.l.bf16 %v3889_v61  ;;  %v3891_v22 = vld [vmem:[%s4504_s22 + $0x240] sm:$0xff]   ;;  %v3564_v51 = vunpack.c.l.bf16 %v3885_v47  ;;  %v2538_v37 = vld [vmem:[%s4487_s20 + $0xb8] sm:$0xff] }
 0xa2c   : > { %v2081_v41 = vmax.f32 %v2050_v4, 0.0  ;;  %v2000_v17 = vpop.f32.mrf.mxu2  ;;  %2465 = vmatpush.msrb.mxu0 %v3612_v31  ;;  %v3913_v4 = vld [vmem:[%s4504_s22 + $0x2f0] sm:$0xff]   ;;  %v3589_v25 = vunpack.c.h.bf16 %v3891_v22  ;;  %v3573_v31 = vunpack.c.h.bf16 %v3887_v39  ;;  %v2551_v61 = vunpack.c.l.bf16 %v2538_v37 }
 0xa2d   : > { %v2001_v7 = vadd.f32 %v2000_v17, %v1975_v3  ;;  %v2069_v16 = vpop.f32.mrf.mxu3  ;;  %2125 = vmatmul.f32.gmra.mxu0 %v2080_v33  ;;  %2488 = vmatpush.msrb.mxu1 %v3644_v28  ;;  %v3677_v33 = vunpack.c.h.bf16 %v3913_v4  ;;  %v3676_v15 = vunpack.c.l.bf16 %v3913_v4  ;;  %v3912_v17 = vld [vmem:[%s4504_s22 + $0x2e8] sm:$0xff]  }
 0xa2e   : > { %v2070_v23 = vadd.f32 %v2069_v16, %v1978_v5  ;;  %2148 = vmatmul.f32.gmra.mxu1 %v2081_v41  ;;  %2466 = vmatpush.msrb.mxu0 %v3609_v34  ;;  %v3888_v41 = vld [vmem:[%s4504_s22 + $0x228] sm:$0xff]   ;;  %v3673_v16 = vunpack.c.h.bf16 %v3912_v17  ;;  %v3672_v28 = vunpack.c.l.bf16 %v3912_v17 }
 0xa2f   : > { %v2075_v27 = vmax.f32 %v2001_v7, 0.0  ;;  %2489 = vmatpush.msrb.mxu1 %v3641_v32  ;;  %v3577_v19 = vunpack.c.h.bf16 %v3888_v41  ;;  %v3624_v7 = vunpack.c.l.bf16 %v3900_v8  ;;  %v3576_v24 = vunpack.c.l.bf16 %v3888_v41  ;;  %v3883_v8 = vld [vmem:[%s4504_s22 + $0x200] sm:$0xff]  }
 0xa30   : > { %v2078_v29 = vmax.f32 %v2070_v23, 0.0  ;;  %2467 = vmatpush.msrb.mxu0 %v3608_v44  ;;  %v3899_v23 = vld [vmem:[%s4504_s22 + $0x280] sm:$0xff]   ;;  %v3588_v32 = vunpack.c.l.bf16 %v3891_v22  ;;  %v3556_v17 = vunpack.c.l.bf16 %v3883_v8 }
 0xa31   : > { %2099 = vmatmul.f32.vlgmr.msra.gmra.mxu2 %v2075_v27  ;;  %2490 = vmatpush.msrb.mxu1 %v3640_v45  ;;  %v3621_v27 = vunpack.c.h.bf16 %v3899_v23  ;;  %v3620_v34 = vunpack.c.l.bf16 %v3899_v23 }
 0xa32   : > { %2168 = vmatmul.f32.vlgmr.msrb.gmra.mxu3 %v2078_v29  ;;  %2468 = vmatpush.msrb.mxu0 %v3605_v49  ;;  %v3911_v29 = vld [vmem:[%s4504_s22 + $0x2e0] sm:$0xff]   ;;  %v3565_v49 = vunpack.c.h.bf16 %v3885_v47 }
 0xa33   : > { %2491 = vmatpush.msrb.mxu1 %v3637_v13  ;;  %2439 = vmatpush.msra.mxu2 %v3585_v30  ;;  %v3661_v13 = vunpack.c.h.bf16 %v3909_v48  ;;  %v3908_v30 = vld [vmem:[%s4504_s22 + $0x2c8] sm:$0xff]  }
 0xa34   : > { %v2003_v35 = vpop.f32.mrf.mxu2  ;;  %2469 = vmatpush.msrb.mxu0 %v3604_v50  ;;  %2508 = vmatpush.msrb.mxu3 %v3681_v58  ;;  %v4728_v50 = vld [vmem:[%s4487_s20 + $0xf0] sm:$0xff]  ;;  %v3561_v58 = vunpack.c.h.bf16 %v3884_v55 }
 0xa35   : > { %v2004_v36 = vadd.f32 %v2003_v35, %v1975_v3  ;;  %v2072_v38 = vpop.f32.mrf.mxu3  ;;  %3255 = vmatmul.msk.f32.vlgmr.msra.gmra.mxu0 %vm675_vm0, %v4561_v21  ;;  %2492 = vmatpush.msrb.mxu1 %v3636_v62  ;;  %v3596_v3 = vunpack.c.l.bf16 %v3893_v59  ;;  %v3669_v35 = vunpack.c.h.bf16 %v3911_v29  ;;  %v4731_v62 = vld [vmem:[%s4487_s20 + $0xf8] sm:$0xff] }
 0xa36   : > { %v2073_v40 = vadd.f32 %v2072_v38, %v1978_v5  ;;  %3257 = vmatmul.msk.f32.vlgmr.msra.gmra.mxu1 %vm675_vm0, %v4561_v21  ;;  %2470 = vmatpush.msrb.mxu0 %v3601_v52  ;;  %v3892_v5 = vld [vmem:[%s4504_s22 + $0x248] sm:$0xff]   ;;  %v3668_v38 = vunpack.c.l.bf16 %v3911_v29  ;;  %v3660_v52 = vunpack.c.l.bf16 %v3909_v48  ;;  %v2555_v54 = vunpack.c.l.bf16 %v4731_v62 }
 0xa37   : > { %v2079_v42 = vmax.f32 %v2004_v36, 0.0  ;;  %2493 = vmatpush.msrb.mxu1 %v3633_v53  ;;  %2440 = vmatpush.msra.mxu2 %v3584_v12  ;;  %v3593_v10 = vunpack.c.h.bf16 %v3892_v5  ;;  %v3592_v20 = vunpack.c.l.bf16 %v3892_v5  ;;  %v3572_v36 = vunpack.c.l.bf16 %v3887_v39 }
 0xa38   : > { %v2082_v43 = vmax.f32 %v2073_v40, 0.0  ;;  %2471 = vmatpush.msrb.mxu0 %v3600_v57  ;;  %2509 = vmatpush.msrb.mxu3 %v3680_v60  ;;  %v3886_v40 = vld [vmem:[%s4504_s22 + $0x218] sm:$0xff]   ;;  %v2554_v53 = vunpack.c.h.bf16 %v4728_v50  ;;  %v4738_v57 = vld [vmem:[%s4487_s20 + $0xb0] sm:$0xff]  ;;  %v3657_v12 = vunpack.c.h.bf16 %v3908_v30  ;;  %v2552_v39 = vunpack.c.h.bf16 %v2538_v37 }
 0xa39   : > { %2102 = vmatmul.f32.gmra.mxu2 %v2079_v42  ;;  %2494 = vmatpush.msrb.mxu1 %v3632_v11  ;;  %v3910_v42 = vld [vmem:[%s4504_s22 + $0x2d8] sm:$0xff]   ;;  %v3568_v45 = vunpack.c.l.bf16 %v3886_v40  ;;  %v2550_v59 = vunpack.c.h.bf16 %v4738_v57 }
 0xa3a   : > { %2171 = vmatmul.f32.gmra.mxu3 %v2082_v43  ;;  %2472 = vmatpush.msrb.mxu0 %v3597_v63  ;;  %v3569_v43 = vunpack.c.h.bf16 %v3886_v40  ;;  %v3665_v44 = vunpack.c.h.bf16 %v3910_v42  ;;  %v3664_v46 = vunpack.c.l.bf16 %v3910_v42  ;;  %v2535_v63 = vld [vmem:[%s4487_s20 + $0x70] sm:$0xff]  ;;  %v3930_v37 = vld [vmem:[%s4504_s22 + $0x378] sm:$0xff]  }
 0xa3b   : > { %2495 = vmatpush.msrb.mxu1 %v3629_v1  ;;  %2441 = vmatpush.msra.mxu2 %v3581_v2  ;;  %v2536_v1 = vld [vmem:[%s4487_s20 + $0x78] sm:$0xff]  ;;  %v3560_v2 = vunpack.c.l.bf16 %v3884_v55  ;;  %v2546_v4 = vunpack.c.h.bf16 %v2535_v63 }
 0xa3c   : > { %2473 = vmatpush.msrb.mxu0 %v3596_v3  ;;  %2510 = vmatpush.msrb.mxu3 %v3677_v33  ;;  %v3656_v3 = vunpack.c.l.bf16 %v3908_v30  ;;  %v2547_v5 = vunpack.c.l.bf16 %v2536_v1  ;;  %v2533_v33 = vld [vmem:[%s4487_s20 + $0x30] sm:$0xff] }
 0xa3d   : > { %3256 = vmatmul.msk.f32.gmra.mxu0 %vm675_vm0, %v4579_v26  ;;  %2496 = vmatpush.msrb.mxu1 %v3628_v9  ;;  %v3907_v9 = vld [vmem:[%s4504_s22 + $0x2c0] sm:$0xff]  }
 0xa3e   : > { %3258 = vmatmul.msk.f32.gmra.mxu1 %vm675_vm0, %v4579_v26  ;;  %2442 = vmatpush.msra.mxu2 %v3580_v6  ;;  %v3557_v6 = vunpack.c.h.bf16 %v3883_v8 }
 0xa3f   : > { %2474 = vmatpush.msrb.mxu0 %v3593_v10  ;;  %2497 = vmatpush.msrb.mxu1 %v3625_v14  ;;  %v3653_v10 = vunpack.c.h.bf16 %v3907_v9  ;;  %v2542_v14 = vunpack.c.h.bf16 %v2533_v33 }
 0xa40   : > { %2511 = vmatpush.msrb.mxu3 %v3676_v15  ;;  %2443 = vmatpush.msra.mxu2 %v3577_v19  ;;  %v2534_v15 = vld [vmem:[%s4487_s20 + $0x38] sm:$0xff]  ;;  %v3652_v19 = vunpack.c.l.bf16 %v3907_v9 }
 0xa41   : > { %3253 = vmatmul.msk.f32.vlgmr.msrb.gmra.mxu2 %vm675_vm0, %v4561_v21  ;;  %2475 = vmatpush.msrb.mxu0 %v3592_v20  ;;  %v2543_v41 = vunpack.c.l.bf16 %v2534_v15  ;;  %v2544_v47 = vunpack.c.h.bf16 %v2534_v15 }
 0xa42   : > { %3259 = vmatmul.msk.f32.vlgmr.msra.gmra.mxu3 %vm675_vm0, %v4561_v21  ;;  %2498 = vmatpush.msrb.mxu1 %v3624_v7 }
 0xa43   : > { %2512 = vmatpush.msrb.mxu3 %v3673_v16  ;;  %2444 = vmatpush.msra.mxu2 %v3576_v24  ;;  %v4749_v16 = vld [vmem:[%s4609_s18 + $0x8] sm:$0xf] }
 0xa44   : > { %2476 = vmatpush.msrb.mxu0 %v3589_v25  ;;  %2499 = vmatpush.msrb.mxu1 %v3621_v27  ;;  %v2332_v22 = vperm.slane %v4749_v16, 1  ;;  %v2333_v23 = vperm.slane %v4749_v16, 2  ;;  %v2553_v25 = vunpack.c.l.bf16 %v4728_v50  ;;  %v2556_v27 = vunpack.c.h.bf16 %v4731_v62 }
 0xa45   : > { %2513 = vmatpush.msrb.mxu3 %v3672_v28  ;;  %2445 = vmatpush.msra.mxu2 %v3573_v31  ;;  %v2549_v28 = vunpack.c.l.bf16 %v4738_v57 }
 0xa46   : > { %2477 = vmatpush.msrb.mxu0 %v3588_v32  ;;  %2500 = vmatpush.msrb.mxu1 %v3620_v34 }
 0xa47   : > { %2514 = vmatpush.msrb.mxu3 %v3669_v35  ;;  %2446 = vmatpush.msra.mxu2 %v3572_v36  ;;  %v2545_v35 = vunpack.c.l.bf16 %v2535_v63  ;;  %v4028_v36 = vld [vmem:[%s649_s21] ss:$0 sm:$0xff]  ;;  %v3745_v63 = vunpack.c.h.bf16 %v3930_v37  ;;  %s655_s21 = scalar_lea.vmem %s4900_s12, %s4276_s25 }
 0xa48   : > { %2730 = vmatpush.msra.mxu0 %v2554_v53  ;;  %2753 = vmatpush.msra.mxu1 %v2555_v54  ;;  %v1819_v48 = vadd.f32 %v4028_v36, %v4677_v56 }
 0xa49   : > { %3254 = vmatmul.msk.f32.gmra.mxu2 %vm675_vm0, %v4579_v26  ;;  %2515 = vmatpush.msrb.mxu3 %v3668_v38 }
 0xa4a   : > { %3260 = vmatmul.msk.f32.gmra.mxu3 %vm675_vm0, %v4579_v26  ;;  %2447 = vmatpush.msra.mxu2 %v3569_v43  ;;  %v2548_v43 = vunpack.c.h.bf16 %v2536_v1 }
 0xa4b   : > { %2516 = vmatpush.msrb.mxu3 %v3665_v44  ;;  %2731 = vmatpush.msra.mxu0 %v2550_v59  ;;  %v2334_v59 = vperm.slane %v4749_v16, 3 }
 0xa4c   : > { %2448 = vmatpush.msra.mxu2 %v3568_v45  ;;  %2754 = vmatpush.msra.mxu1 %v2551_v61  ;;  %v2541_v45 = vunpack.c.l.bf16 %v2533_v33 }
 0xa4d   : > { %2517 = vmatpush.msrb.mxu3 %v3664_v46  ;;  %2732 = vmatpush.msra.mxu0 %v2546_v4 }
 0xa4e   : > { %2449 = vmatpush.msra.mxu2 %v3565_v49  ;;  %2755 = vmatpush.msra.mxu1 %v2547_v5  ;;  %v3744_v5 = vunpack.c.l.bf16 %v3930_v37 }
 0xa4f   : > { %2518 = vmatpush.msrb.mxu3 %v3661_v13  ;;  %2733 = vmatpush.msra.mxu0 %v2542_v14  ;;  %v3936_v14 = vld [vmem:[%s4504_s22 + $0x3a8] sm:$0xff]  }
 0xa50   : > { %2450 = vmatpush.msra.mxu2 %v3564_v51  ;;  %2756 = vmatpush.msra.mxu1 %v2543_v41 }
 0xa51   : > { %2519 = vmatpush.msrb.mxu3 %v3660_v52 }
 0xa52   : > { %2451 = vmatpush.msra.mxu2 %v3561_v58 }
 0xa53   : > { %2520 = vmatpush.msrb.mxu3 %v3657_v12  ;;  %v2331_v12 = vperm.slane %v4749_v16, 0 }
 0xa54   : > { %2452 = vmatpush.msra.mxu2 %v3560_v2  ;;  %v3929_v2 = vld [vmem:[%s4504_s22 + $0x370] sm:$0xff]  }
 0xa55   : > { %2521 = vmatpush.msrb.mxu3 %v3656_v3  ;;  %v3937_v3 = vld [vmem:[%s4504_s22 + $0x3b0] sm:$0xff]  }
 0xa56   : > { %2453 = vmatpush.msra.mxu2 %v3557_v6  ;;  %v3773_v33 = vunpack.c.h.bf16 %v3937_v3  ;;  %v3772_v41 = vunpack.c.l.bf16 %v3937_v3 }
 0xa57   : > { %2522 = vmatpush.msrb.mxu3 %v3653_v10  ;;  %v3741_v10 = vunpack.c.h.bf16 %v3929_v2 }
 0xa58   : > { %2454 = vmatpush.msra.mxu2 %v3556_v17  ;;  %v3928_v17 = vld [vmem:[%s4504_s22 + $0x368] sm:$0xff]  }
 0xa59   : > { %2523 = vmatpush.msrb.mxu3 %v3652_v19  ;;  %v3737_v16 = vunpack.c.h.bf16 %v3928_v17 }
 0xa5a   : > { %2707 = vmatpush.msrb.mxu2 %v2553_v25 }
 0xa5b   : > { %2776 = vmatpush.msra.mxu3 %v2556_v27 }
 0xa5c   : > { %2708 = vmatpush.msrb.mxu2 %v2549_v28 }
 0xa5d   : > { %2777 = vmatpush.msra.mxu3 %v2552_v39  ;;  %v3736_v39 = vunpack.c.l.bf16 %v3928_v17 }
 0xa5e   : > { %2709 = vmatpush.msrb.mxu2 %v2545_v35 }
 0xa5f   : > { %2778 = vmatpush.msra.mxu3 %v2548_v43 }
 0xa60   : > { %2710 = vmatpush.msrb.mxu2 %v2541_v45 }
 0xa61   : > { %2779 = vmatpush.msra.mxu3 %v2544_v47  ;;  %v3925_v47 = vld [vmem:[%s4504_s22 + $0x350] sm:$0xff]  }
 0xaa2   : > { %v2123_v11 = vpop.f32.mrf.mxu0 }
 0xaa3   : > { %v2146_v60 = vpop.f32.mrf.mxu1 }
 0xaaa   : > { %v2126_v20 = vpop.f32.mrf.mxu0 }
 0xaab   : > { %v2149_v7 = vpop.f32.mrf.mxu1 }
 0xab2   : > { %v2379_v24 = vpop.f32.mrf.mxu0 }
 0xab3   : > { %v2380_v29 = vadd.f32 %v2379_v24, %v2332_v22  ;;  %v2402_v31 = vpop.f32.mrf.mxu1 }
 0xab4   : > { %v2403_v32 = vadd.f32 %v2402_v31, %v2333_v23  ;;  %v2100_v34 = vpop.f32.mrf.mxu2  ;;  %v3927_v31 = vld [vmem:[%s4504_s22 + $0x360] sm:$0xff]  }
 0xab5   : > { %v2432_v38 = vmax.f32 %v2380_v29, 0.0  ;;  %v2124_v40 = vadd.f32 %v2123_v11, %v2100_v34  ;;  %v2169_v42 = vpop.f32.mrf.mxu3  ;;  %v1820_v11 = vadd.f32 %v4028_v36, %v4679_v0  ;;  %v3768_v29 = vunpack.c.l.bf16 %v3936_v14  ;;  %v3926_v34 = vld [vmem:[%s4504_s22 + $0x358] sm:$0xff]  }
 0xab6   : > { %v2433_v44 = vmax.f32 %v2403_v32, 0.0  ;;  %v3935_v32 = vld [vmem:[%s4504_s22 + $0x3a0] sm:$0xff]   ;;  %v3733_v35 = vunpack.c.h.bf16 %v3927_v31  ;;  %v3729_v43 = vunpack.c.h.bf16 %v3926_v34  ;;  %v3728_v45 = vunpack.c.l.bf16 %v3926_v34 }
 0xab7   : > { %v2147_v46 = vadd.f32 %v2146_v60, %v2124_v40  ;;  %2478 = vmatmul.f32.vlgmr.msrb.gmra.mxu0 %v2432_v38  ;;  %v3938_v60 = vld [vmem:[%s4504_s22 + $0x3b8] sm:$0xff]   ;;  %v3765_v36 = vunpack.c.h.bf16 %v3935_v32  ;;  %v3732_v38 = vunpack.c.l.bf16 %v3927_v31  ;;  %v3764_v40 = vunpack.c.l.bf16 %v3935_v32 }
 0xab8   : > { %2501 = vmatmul.f32.vlgmr.msrb.gmra.mxu1 %v2433_v44  ;;  %v3777_v1 = vunpack.c.h.bf16 %v3938_v60  ;;  %v3776_v8 = vunpack.c.l.bf16 %v3938_v60  ;;  %2818 = vmatpush.msrb.mxu0 %v3745_v63  ;;  %v3921_v60 = vld [vmem:[%s4504_s22 + $0x330] sm:$0xff]   ;;  %v3923_v63 = vld [vmem:[%s4504_s22 + $0x340] sm:$0xff]  }
 0xab9   : > { %v2170_v49 = vadd.f32 %v2169_v42, %v2147_v46  ;;  %v3934_v42 = vld [vmem:[%s4504_s22 + $0x398] sm:$0xff]   ;;  %v3717_v3 = vunpack.c.h.bf16 %v3923_v63 }
 0xaba   : > { %v2382_v13 = vpop.f32.mrf.mxu0  ;;  %2841 = vmatpush.msrb.mxu1 %v3777_v1  ;;  %2819 = vmatpush.msrb.mxu0 %v3744_v5  ;;  %v3761_v44 = vunpack.c.h.bf16 %v3934_v42  ;;  %v3760_v46 = vunpack.c.l.bf16 %v3934_v42  ;;  %v3931_v1 = vld [vmem:[%s4504_s22 + $0x380] sm:$0xff]   ;;  %v3945_v5 = vld [vmem:[%s4504_s22 + $0x3f0] sm:$0xff]  }
 0xabb   : > { %v4762_v50 = vadd.f32 %v2170_v49, %v1819_v48  ;;  %v2383_v62 = vadd.f32 %v2382_v13, %v2332_v22  ;;  %v2405_v51 = vpop.f32.mrf.mxu1  ;;  %v3933_v48 = vld [vmem:[%s4504_s22 + $0x390] sm:$0xff]   ;;  %v3922_v49 = vld [vmem:[%s4504_s22 + $0x338] sm:$0xff]   ;;  %v3725_v13 = vunpack.c.h.bf16 %v3925_v47 }
 0xabc   : > { %v2406_v52 = vadd.f32 %v2405_v51, %v2333_v23  ;;  %v2103_v53 = vpop.f32.mrf.mxu2  ;;  %2842 = vmatpush.msrb.mxu1 %v3776_v8  ;;  %2820 = vmatpush.msrb.mxu0 %v3741_v10  ;;  %v3724_v51 = vunpack.c.l.bf16 %v3925_v47  ;;  %v3805_v8 = vunpack.c.h.bf16 %v3945_v5  ;;  %v3920_v10 = vld [vmem:[%s4504_s22 + $0x328] sm:$0xff]  }
 0xabd   : > { %v2436_v54 = vmax.f32 %v2383_v62, 0.0  ;;  %v2127_v55 = vadd.f32 %v2126_v20, %v2103_v53  ;;  %v2172_v30 = vpop.f32.mrf.mxu3  ;;  %v3740_v20 = vunpack.c.l.bf16 %v3929_v2  ;;  %v3757_v62 = vunpack.c.h.bf16 %v3933_v48  ;;  %v3924_v53 = vld [vmem:[%s4504_s22 + $0x348] sm:$0xff]  }
 0xabe   : > { %v2437_v57 = vmax.f32 %v2406_v52, 0.0  ;;  %2843 = vmatpush.msrb.mxu1 %v3773_v33  ;;  %v3756_v52 = vunpack.c.l.bf16 %v3933_v48  ;;  %v3709_v2 = vunpack.c.h.bf16 %v3921_v60  ;;  %v3748_v33 = vunpack.c.l.bf16 %v3931_v1 }
 0xabf   : > { %v2150_v56 = vadd.f32 %v2149_v7, %v2127_v55  ;;  %2481 = vmatmul.f32.gmra.mxu0 %v2436_v54  ;;  %v3769_v7 = vunpack.c.h.bf16 %v3936_v14  ;;  %v3932_v54 = vld [vmem:[%s4504_s22 + $0x388] sm:$0xff]   ;;  %v3946_v55 = vld [vmem:[%s4504_s22 + $0x3f8] sm:$0xff]   ;;  %v3704_v17 = vunpack.c.l.bf16 %v3920_v10 }
 0xac0   : > { %2504 = vmatmul.f32.gmra.mxu1 %v2437_v57  ;;  %2821 = vmatpush.msrb.mxu0 %v3740_v20  ;;  %v3809_v57 = vunpack.c.h.bf16 %v3946_v55  ;;  %v3808_v37 = vunpack.c.l.bf16 %v3946_v55  ;;  %v3944_v14 = vld [vmem:[%s4504_s22 + $0x3e8] sm:$0xff]   ;;  %v3919_v20 = vld [vmem:[%s4504_s22 + $0x320] sm:$0xff]  }
 0xac1   : > { %v2173_v58 = vadd.f32 %v2172_v30, %v2150_v56  ;;  %2844 = vmatpush.msrb.mxu1 %v3772_v41  ;;  %v3713_v30 = vunpack.c.h.bf16 %v3922_v49  ;;  %v3721_v56 = vunpack.c.h.bf16 %v3924_v53  ;;  %v3801_v41 = vunpack.c.h.bf16 %v3944_v14 }
 0xac2   : > { %2822 = vmatpush.msrb.mxu0 %v3737_v16  ;;  %v3701_v16 = vunpack.c.h.bf16 %v3919_v20 }
 0xac3   : > { %v4769_v61 = vadd.f32 %v2173_v58, %v1820_v11  ;;  %2845 = vmatpush.msrb.mxu1 %v3769_v7  ;;  %v3753_v11 = vunpack.c.h.bf16 %v3932_v54  ;;  %v3712_v58 = vunpack.c.l.bf16 %v3922_v49  ;;  %v3943_v7 = vld [vmem:[%s4504_s22 + $0x3e0] sm:$0xff]  }
 0xac4   : > { %v2356_v4 = vpop.f32.mrf.mxu2  ;;  %2823 = vmatpush.msrb.mxu0 %v3736_v39 }
 0xac5   : > { %v2357_v9 = vadd.f32 %v2356_v4, %v2331_v12  ;;  %v2425_v0 = vpop.f32.mrf.mxu3  ;;  %2846 = vmatpush.msrb.mxu1 %v3768_v29  ;;  %v3749_v4 = vunpack.c.h.bf16 %v3931_v1 }
 0xac6   : > { %v2426_v6 = vadd.f32 %v2425_v0, %v2334_v59  ;;  %2824 = vmatpush.msrb.mxu0 %v3733_v35  ;;  %v3716_v0 = vunpack.c.l.bf16 %v3923_v63  ;;  %v3917_v35 = vld [vmem:[%s4504_s22 + $0x310] sm:$0xff]  }
 0xac7   : > { %v2431_v15 = vmax.f32 %v2357_v9, 0.0  ;;  %3263 = vmatmul.msk.f32.vlgmr.msra.gmra.mxu0 %vm675_vm0, %v4561_v21  ;;  %2847 = vmatpush.msrb.mxu1 %v3765_v36  ;;  %v3708_v9 = vunpack.c.l.bf16 %v3921_v60  ;;  %v3941_v36 = vld [vmem:[%s4504_s22 + $0x3d0] sm:$0xff]   ;;  %v3692_v42 = vunpack.c.l.bf16 %v3917_v35 }
 0xac8   : > { %v2434_v19 = vmax.f32 %v2426_v6, 0.0  ;;  %3265 = vmatmul.msk.f32.vlgmr.msra.gmra.mxu1 %vm675_vm0, %v4561_v21  ;;  %2825 = vmatpush.msrb.mxu0 %v3732_v38  ;;  %v3804_v6 = vunpack.c.l.bf16 %v3945_v5  ;;  %v3693_v38 = vunpack.c.h.bf16 %v3917_v35 }
 0xac9   : > { %2455 = vmatmul.f32.vlgmr.msra.gmra.mxu2 %v2431_v15  ;;  %2848 = vmatpush.msrb.mxu1 %v3764_v40  ;;  %v3705_v15 = vunpack.c.h.bf16 %v3920_v10  ;;  %v3789_v40 = vunpack.c.h.bf16 %v3941_v36 }
 0xaca   : > { %2524 = vmatmul.f32.vlgmr.msrb.gmra.mxu3 %v2434_v19  ;;  %2826 = vmatpush.msrb.mxu0 %v3729_v43  ;;  %v3800_v19 = vunpack.c.l.bf16 %v3944_v14  ;;  %v3788_v43 = vunpack.c.l.bf16 %v3941_v36 }
 0xacb   : > { %2849 = vmatpush.msrb.mxu1 %v3761_v44  ;;  %2795 = vmatpush.msra.mxu2 %v3713_v30  ;;  %v3916_v44 = vld [vmem:[%s4504_s22 + $0x308] sm:$0xff]  }
 0xacc   : > { %v2359_v22 = vpop.f32.mrf.mxu2  ;;  %2827 = vmatpush.msrb.mxu0 %v3728_v45  ;;  %2864 = vmatpush.msrb.mxu3 %v3809_v57  ;;  %v3940_v45 = vld [vmem:[%s4504_s22 + $0x3c8] sm:$0xff]   ;;  %v3688_v49 = vunpack.c.l.bf16 %v3916_v44 }
 0xacd   : > { %v2360_v23 = vadd.f32 %v2359_v22, %v2331_v12  ;;  %v2428_v24 = vpop.f32.mrf.mxu3  ;;  %2850 = vmatpush.msrb.mxu1 %v3760_v46  ;;  %v3720_v12 = vunpack.c.l.bf16 %v3924_v53  ;;  %2796 = vmatpush.msra.mxu2 %v3712_v58  ;;  %v3797_v22 = vunpack.c.h.bf16 %v3943_v7  ;;  %v3689_v46 = vunpack.c.h.bf16 %v3916_v44  ;;  %v2685_v53 = vld [vmem:[%s4609_s18 + $0xc] sm:$0xf]  ;;  %s652_s18 = scalar_lea.vmem %s4899_s11, %s4276_s25  ;;  %s608_s25 = sand.u32 1, %s4127_s30  }
 0xace   : > { %v2429_v25 = vadd.f32 %v2428_v24, %v2334_v59  ;;  %2828 = vmatpush.msrb.mxu0 %v3725_v13  ;;  %v3752_v59 = vunpack.c.l.bf16 %v3932_v54  ;;  %2865 = vmatpush.msrb.mxu3 %v3808_v37  ;;  %v3796_v24 = vunpack.c.l.bf16 %v3943_v7  ;;  %v3785_v47 = vunpack.c.h.bf16 %v3940_v45  ;;  %s2987_s27 = scalar_lea.sflag [#allocation3], %s608_s25 }
 0xacf   : > { %v2435_v27 = vmax.f32 %v2360_v23, 0.0  ;;  %3264 = vmatmul.msk.f32.gmra.mxu0 %vm675_vm0, %v4579_v26  ;;  %2851 = vmatpush.msrb.mxu1 %v3757_v62  ;;  %v3700_v23 = vunpack.c.l.bf16 %v3919_v20  ;;  %v3784_v13 = vunpack.c.l.bf16 %v3940_v45  ;;  %v2687_v7 = vperm.slane %v2685_v53, 0 }
 0xad0   : > { %v2438_v28 = vmax.f32 %v2429_v25, 0.0  ;;  %3266 = vmatmul.msk.f32.gmra.mxu1 %vm675_vm0, %v4579_v26  ;;  %2829 = vmatpush.msrb.mxu0 %v3724_v51  ;;  %v3918_v25 = vld [vmem:[%s4504_s22 + $0x318] sm:$0xff]   ;;  %v3915_v51 = vld [vmem:[%s4504_s22 + $0x300] sm:$0xff]  }
 0xad1   : > { %2458 = vmatmul.f32.gmra.mxu2 %v2435_v27  ;;  %2852 = vmatpush.msrb.mxu1 %v3756_v52  ;;  %v3942_v27 = vld [vmem:[%s4504_s22 + $0x3d8] sm:$0xff]   ;;  %v3696_v31 = vunpack.c.l.bf16 %v3918_v25  ;;  %v3939_v52 = vld [vmem:[%s4504_s22 + $0x3c0] sm:$0xff]   ;;  %v3685_v54 = vunpack.c.h.bf16 %v3915_v51  ;;  %v3684_v30 = vunpack.c.l.bf16 %v3915_v51  ;;  %s660_s22 = scalar_lea.vmem %s4901_s13, %s4279_s26 }
 0xad2   : > { %2527 = vmatmul.f32.gmra.mxu3 %v2438_v28  ;;  %2830 = vmatpush.msrb.mxu0 %v3721_v56  ;;  %v3697_v28 = vunpack.c.h.bf16 %v3918_v25  ;;  %v3793_v39 = vunpack.c.h.bf16 %v3942_v27  ;;  %v3792_v32 = vunpack.c.l.bf16 %v3942_v27  ;;  %v3781_v55 = vunpack.c.h.bf16 %v3939_v52 }
 0xad3   : > { %2853 = vmatpush.msrb.mxu1 %v3753_v11  ;;  %2797 = vmatpush.msra.mxu2 %v3709_v2  ;;  %v3780_v57 = vunpack.c.l.bf16 %v3939_v52  ;;  %v2688_v56 = vperm.slane %v2685_v53, 1  ;;  %v2689_v11 = vperm.slane %v2685_v53, 2 }
 0xad4   : > { %2831 = vmatpush.msrb.mxu0 %v3720_v12  ;;  %2866 = vmatpush.msrb.mxu3 %v3805_v8 }
 0xad5   : > { %2854 = vmatpush.msrb.mxu1 %v3752_v59  ;;  %2798 = vmatpush.msra.mxu2 %v3708_v9 }
 0xad6   : > { %2832 = vmatpush.msrb.mxu0 %v3717_v3  ;;  %2867 = vmatpush.msrb.mxu3 %v3804_v6 }
 0xad7   : > { %2855 = vmatpush.msrb.mxu1 %v3749_v4  ;;  %2799 = vmatpush.msra.mxu2 %v3705_v15 }
 0xad8   : > { %2833 = vmatpush.msrb.mxu0 %v3716_v0  ;;  %2868 = vmatpush.msrb.mxu3 %v3801_v41 }
 0xad9   : > { %3261 = vmatmul.msk.f32.vlgmr.msrb.gmra.mxu2 %vm675_vm0, %v4561_v21  ;;  %2856 = vmatpush.msrb.mxu1 %v3748_v33 }
 0xada   : > { %3267 = vmatmul.msk.f32.vlgmr.msra.gmra.mxu3 %vm675_vm0, %v4561_v21  ;;  %2800 = vmatpush.msra.mxu2 %v3704_v17 }
 0xadb   : > { %2869 = vmatpush.msrb.mxu3 %v3800_v19 }
 0xadc   : > { %2801 = vmatpush.msra.mxu2 %v3701_v16  ;;  %v2690_v16 = vperm.slane %v2685_v53, 3 }
 0xadd   : > { %2870 = vmatpush.msrb.mxu3 %v3797_v22 }
 0xade   : > { %2802 = vmatpush.msra.mxu2 %v3700_v23 }
 0xadf   : > { %2871 = vmatpush.msrb.mxu3 %v3796_v24 }
 0xae0   : > { %2803 = vmatpush.msra.mxu2 %v3697_v28 }
 0xae1   : > { %3262 = vmatmul.msk.f32.gmra.mxu2 %vm675_vm0, %v4579_v26  ;;  %2872 = vmatpush.msrb.mxu3 %v3793_v39 }
 0xae2   : > { %3268 = vmatmul.msk.f32.gmra.mxu3 %vm675_vm0, %v4579_v26  ;;  %2804 = vmatpush.msra.mxu2 %v3696_v31 }
 0xae3   : > { %2873 = vmatpush.msrb.mxu3 %v3792_v32 }
 0xae4   : > { %2805 = vmatpush.msra.mxu2 %v3693_v38 }
 0xae5   : > { %2874 = vmatpush.msrb.mxu3 %v3789_v40 }
 0xae6   : > { %2806 = vmatpush.msra.mxu2 %v3692_v42 }
 0xae7   : > { %2875 = vmatpush.msrb.mxu3 %v3788_v43 }
 0xae8   : > { %2807 = vmatpush.msra.mxu2 %v3689_v46 }
 0xae9   : > { %2876 = vmatpush.msrb.mxu3 %v3785_v47 }
 0xaea   : > { %2808 = vmatpush.msra.mxu2 %v3688_v49 }
 0xaeb   : > { %2877 = vmatpush.msrb.mxu3 %v3784_v13 }
 0xaec   : > { %2809 = vmatpush.msra.mxu2 %v3685_v54 }
 0xaed   : > { %2878 = vmatpush.msrb.mxu3 %v3781_v55 }
 0xaee   : > { %2810 = vmatpush.msra.mxu2 %v3684_v30 }
 0xaef   : > { %2879 = vmatpush.msrb.mxu3 %v3780_v57 }
 0xb34   : > { %v2479_v29 = vpop.f32.mrf.mxu0 }
 0xb35   : > { %v2502_v34 = vpop.f32.mrf.mxu1 }
 0xb3c   : > { %v2482_v48 = vpop.f32.mrf.mxu0 }
 0xb3d   : > { %v2505_v62 = vpop.f32.mrf.mxu1 }
 0xb44   : > { %v2735_v58 = vpop.f32.mrf.mxu0 }
 0xb45   : > { %v2736_v12 = vadd.f32 %v2735_v58, %v2688_v56  ;;  %v2758_v59 = vpop.f32.mrf.mxu1 }
 0xb46   : > { %v2759_v37 = vadd.f32 %v2758_v59, %v2689_v11 }
 0xb47   : > { %v2788_v60 = vmax.f32 %v2736_v12, 0.0 }
 0xb48   : > { %v2789_v63 = vmax.f32 %v2759_v37, 0.0 }
 0xb49   : > { %2834 = vmatmul.f32.vlgmr.msrb.gmra.mxu0 %v2788_v60 }
 0xb4a   : > { %2857 = vmatmul.f32.vlgmr.msrb.gmra.mxu1 %v2789_v63 }
 0xb4c   : > { %v2456_v1 = vpop.f32.mrf.mxu2  ;;  %v2738_v2 = vpop.f32.mrf.mxu0 }
 0xb4d   : > { %v2480_v3 = vadd.f32 %v2479_v29, %v2456_v1  ;;  %v2525_v4 = vpop.f32.mrf.mxu3  ;;  %v2739_v5 = vadd.f32 %v2738_v2, %v2688_v56  ;;  %v2761_v8 = vpop.f32.mrf.mxu1 }
 0xb4e   : > { %v2762_v9 = vadd.f32 %v2761_v8, %v2689_v11 }
 0xb4f   : > { %v2503_v0 = vadd.f32 %v2502_v34, %v2480_v3  ;;  %v2792_v33 = vmax.f32 %v2739_v5, 0.0  ;;  %v3811_v3 = vld [vmem:[%s660_s22] sm:$0xff]  }
 0xb50   : > { %v2793_v6 = vmax.f32 %v2762_v9, 0.0  ;;  %v3812_v5 = vunpack.c.l.bf16 %v3811_v3 }
 0xb51   : > { %v2526_v10 = vadd.f32 %v2525_v4, %v2503_v0  ;;  %2837 = vmatmul.f32.gmra.mxu0 %v2792_v33  ;;  %v3813_v4 = vunpack.c.h.bf16 %v3811_v3 }
 0xb52   : > { %2860 = vmatmul.f32.gmra.mxu1 %v2793_v6 }
 0xb53   : > { %v2531_v14 = vadd.f32 %v2526_v10, %v4762_v50 }
 0xb54   : > { %v2459_v15 = vpop.f32.mrf.mxu2 }
 0xb55   : > { %v2483_v41 = vadd.f32 %v2482_v48, %v2459_v15  ;;  %v2528_v17 = vpop.f32.mrf.mxu3 }
 0xb57   : > { %v2506_v19 = vadd.f32 %v2505_v62, %v2483_v41 }
 0xb59   : > { %v2529_v20 = vadd.f32 %v2528_v17, %v2506_v19 }
 0xb5b   : > { %v2532_v22 = vadd.f32 %v2529_v20, %v4769_v61 }
 0xb5c   : > { %v2712_v23 = vpop.f32.mrf.mxu2 }
 0xb5d   : > { %v2713_v24 = vadd.f32 %v2712_v23, %v2687_v7  ;;  %v2781_v25 = vpop.f32.mrf.mxu3 }
 0xb5e   : > { %v2782_v27 = vadd.f32 %v2781_v25, %v2690_v16  ;;  %v4030_v25 = vld [vmem:[%s655_s21] ss:$0 sm:$0xff]  ;;  %s3281_s21 = sshll.u32 %s4247_s17, 4 }
 0xb5f   : > { %v2787_v28 = vmax.f32 %v2713_v24, 0.0  ;;  %s2998_s26 = scalar_lea.hbm %s4902_s14, %s3281_s21 }
 0xb60   : > { %v2790_v39 = vmax.f32 %v2782_v27, 0.0  ;;  %s3001_s28 = sshll.u32 %s2998_s26, 4  ;;  %s3002_s28 = int_to_ptr.hbm [resolvable:$true] %s3001_s28 }
 0xb61   : > { %2811 = vmatmul.f32.vlgmr.msra.gmra.mxu2 %v2787_v28  ;;  %s4087_s0 = sshra.s32 %s3002_s28, 4  ;;  %s4088_s0 = int_to_ptr.hbm [resolvable:$true] %s4087_s0 }
 0xb62   : > { %2880 = vmatmul.f32.vlgmr.msrb.gmra.mxu3 %v2790_v39  ;;  %s4089_s17 = scalar_lea.hbm %s4088_s0, 16  ;;  %p4094_p0 = scmp.lt.s32.totalorder %s4088_s0, %s4902_s14 }
 0xb63   : > { %p4090_p11 = scmp.ne.s32.totalorder %s4088_s0, %s4089_s17  ;;  %p4095_p1 = scmp.lt.s32.totalorder %s4093_s15, %s4089_s17 }
 0xb64   : > { %v2715_v29 = vpop.f32.mrf.mxu2 }
 0xb65   : > { %v2716_v31 = vadd.f32 %v2715_v29, %v2687_v7  ;;  %v2784_v50 = vpop.f32.mrf.mxu3  ;;  %p4091_p12 = pnand %p4090_p11, %p4264_p5  ;;  %p4096_p2 = por %p4095_p1, %p4094_p0 }
 0xb66   : > { %v2785_v32 = vadd.f32 %v2784_v50, %v2690_v16 }
 0xb67   : > { %v2791_v34 = vmax.f32 %v2716_v31, 0.0  ;;  %p4092_p13 = pneg %p4091_p12 }
 0xb68   : > { %v2794_v35 = vmax.f32 %v2785_v32, 0.0 }
 0xb69   : > { %2814 = vmatmul.f32.gmra.mxu2 %v2791_v34  ;;  %p4097_p3 = pnand %p4096_p2, %p4092_p13 }
 0xb6a   : > { %2883 = vmatmul.f32.gmra.mxu3 %v2794_v35 }
 0xbc6   : > { %v2835_v36 = vpop.f32.mrf.mxu0 }
 0xbc7   : > { %v2858_v38 = vpop.f32.mrf.mxu1 }
 0xbce   : > { %v2838_v46 = vpop.f32.mrf.mxu0 }
 0xbcf   : > { %v2861_v13 = vpop.f32.mrf.mxu1 }
 0xbe4   : > { %v2812_v40 = vpop.f32.mrf.mxu2 }
 0xbe5   : > { %v2836_v61 = vadd.f32 %v2835_v36, %v2812_v40  ;;  %v2881_v42 = vpop.f32.mrf.mxu3 }
 0xbe7   : > { %v2859_v43 = vadd.f32 %v2858_v38, %v2836_v61 }
 0xbe9   : > { %v2882_v44 = vadd.f32 %v2881_v42, %v2859_v43 }
 0xbeb   : > { %v2887_v45 = vadd.f32 %v2882_v44, %v2531_v14 }
 0xbec   : > { %v2815_v47 = vpop.f32.mrf.mxu2 }
 0xbed   : > { %v2839_v48 = vadd.f32 %v2838_v46, %v2815_v47  ;;  %v2889_v49 = vadd.f32 %v2887_v45, %v4561_v21  ;;  %v2884_v52 = vpop.f32.mrf.mxu3 }
 0xbef   : > { %v2862_v62 = vadd.f32 %v2861_v13, %v2839_v48  ;;  %v2893_v51 = vsel %vm675_vm0, %v2889_v49, 0.0 }
 0xbf0   : > { %2894 = vadd.xlane.f32.xlu1 %v2893_v51 }
 0xbf1   : > { %v2885_v53 = vadd.f32 %v2884_v52, %v2862_v62 }
 0xbf3   : > { %v2888_v54 = vadd.f32 %v2885_v53, %v2532_v22  ;;  %v4029_v22 = vld [vmem:[%s652_s18] ss:$0 sm:$0xff]  ;;  %s3191_s18 = sshll.u32 %s608_s25, 4 }
 0xbf4   : > { %s610_s20 = scalar_lea.vmem [#allocation2], %s3191_s18 }
 0xbf5   : > { %v2890_v55 = vadd.f32 %v2888_v54, %v4579_v26  ;;  %v3947_v26 = vld [vmem:[%s660_s22 + $0x8] sm:$0xff]   ;;  %s2999_s19 = sshll.u32 %s610_s20, 4  ;;  %s3000_s19 = int_to_ptr.vmem [resolvable:$true] %s2999_s19 }
 0xbf6   : > { %v3817_v1 = vunpack.c.h.bf16 %v3947_v26  ;;  %v3816_v2 = vunpack.c.l.bf16 %v3947_v26 }
 0xbf7   : > { %v2896_v30 = vsel %vm675_vm0, %v2890_v55, 0.0 }
 0xbf8   : > { %2897 = vadd.xlane.f32.xlu0 %v2896_v30  ;;  %2973 = vmatpush.msrb.mxu2 %v3817_v1 }
 0xbfa   : > { %2974 = vmatpush.msrb.mxu2 %v3816_v2 }
 0xbfc   : > { %2975 = vmatpush.msrb.mxu2 %v3813_v4 }
 0xbfe   : > { %2976 = vmatpush.msrb.mxu2 %v3812_v5 }
 0xc63   : > { %v2895_v21 = vpop.xlane.xlu1 %2894 }
 0xc64   : > { %v2899_v57 = vmul.f32 %v2895_v21, %v4469_v18 }
 0xc66   : > { %v2901_v56 = vsub.f32 %v2889_v49, %v2899_v57 }
 0xc68   : > { %v2903_v11 = vmul.f32 %v2901_v56, %v2901_v56 }
 0xc6a   : > { %v2905_v58 = vsel %vm675_vm0, %v2903_v11, 0.0 }
 0xc6b   : > { %2906 = vadd.xlane.f32.xlu0 %v2905_v58  ;;  %v2898_v12 = vpop.xlane.xlu0 %2897 }
 0xc6c   : > { %v2900_v59 = vmul.f32 %v2898_v12, %v4469_v18 }
 0xc6e   : > { %v2902_v37 = vsub.f32 %v2890_v55, %v2900_v59 }
 0xc70   : > { %v2904_v60 = vmul.f32 %v2902_v37, %v2902_v37 }
 0xc72   : > { %v2908_v63 = vsel %vm675_vm0, %v2904_v60, 0.0 }
 0xc73   : > { %2909 = vadd.xlane.f32.xlu0 %v2908_v63 }
 0xcde   : > { %v2907_v8 = vpop.xlane.xlu0 %2906 }
 0xcdf   : > { %v2911_v9 = vmul.f32 %v2907_v8, %v4469_v18 }
 0xce1   : > { %v2913_v0 = vadd.f32 1e-05, %v2911_v9 }
 0xce3   : > { %4069 = vrsqrt.f32 %v2913_v0  ;;  %vm2921_vm6 = vweird.f32 %v2913_v0 }
 0xce6   : > { %v2910_v33 = vpop.xlane.xlu0 %2909 }
 0xce7   : > { %v2912_v6 = vmul.f32 %v2910_v33, %v4469_v18 }
 0xce9   : > { %v4070_v10 = vpop.eup %4069  ;;  %v2914_v14 = vadd.f32 1e-05, %v2912_v6 }
 0xcea   : > { %v2916_v15 = vmul.f32 %v4070_v10, %v2913_v0  ;;  %vm2922_vm5 = vweird.f32 %v4070_v10 }
 0xceb   : > { %4071 = vrsqrt.f32 %v2914_v14  ;;  %vm2923_vm7 = vmor %vm2921_vm6, %vm2922_vm5  ;;  %vm2931_vm9 = vweird.f32 %v2914_v14 }
 0xcec   : > { %v2917_v41 = vmul.f32 %v4070_v10, %v2916_v15 }
 0xcee   : > { %v2918_v17 = vmul.f32 0.5, %v2917_v41 }
 0xcf0   : > { %v2919_v19 = vsub.f32 1.5, %v2918_v17 }
 0xcf1   : > { %v4072_v20 = vpop.eup %4071 }
 0xcf2   : > { %v2920_v7 = vmul.f32 %v4070_v10, %v2919_v19  ;;  %v2926_v16 = vmul.f32 %v4072_v20, %v2914_v14  ;;  %vm2932_vm8 = vweird.f32 %v4072_v20 }
 0xcf3   : > { %vm2933_vm2 = vmor %vm2931_vm9, %vm2932_vm8 }
 0xcf4   : > { %v2924_v18 = vsel %vm2923_vm7, %v4070_v10, %v2920_v7  ;;  %v2927_v23 = vmul.f32 %v4072_v20, %v2926_v16 }
 0xcf5   : > { %v2935_v24 = vmul.f32 %v2924_v18, %v2901_v56 }
 0xcf6   : > { %v2928_v27 = vmul.f32 0.5, %v2927_v23 }
 0xcf7   : > { %v2940_v28 = vmul.f32 %v4029_v22, %v2935_v24 }
 0xcf8   : > { %v2929_v39 = vsub.f32 1.5, %v2928_v27 }
 0xcf9   : > { %v2945_v29 = vadd.f32 %v4030_v25, %v2940_v28 }
 0xcfa   : > { %v2930_v31 = vmul.f32 %v4072_v20, %v2929_v39 }
 0xcfb   : > { %3269 = vmatmul.msk.f32.vlgmr.msrb.gmra.mxu2 %vm675_vm0, %v2945_v29 }
 0xcfc   : > { %v2934_v50 = vsel %vm2933_vm2, %v4072_v20, %v2930_v31 }
 0xcfd   : > { %v2936_v32 = vmul.f32 %v2934_v50, %v2902_v37 }
 0xcff   : > { %v2941_v34 = vmul.f32 %v4029_v22, %v2936_v32 }
 0xd01   : > { %v2946_v35 = vadd.f32 %v4030_v25, %v2941_v34 }
 0xd03   : > { %3270 = vmatmul.msk.f32.gmra.mxu2 %vm675_vm0, %v2946_v35 }
 0xd7e   : > { %v2978_v36 = vpop.f32.mrf.mxu2 }
 0xd7f   : > { %2984 = vst.msk [vmem:[%s610_s20] sm:$0xff] %vm675_vm0, %v2978_v36 }
 0xd86   : > { %v2981_v38 = vpop.f32.mrf.mxu2 }
 0xd87   : > { %2985 = vst.msk [vmem:[%s610_s20 + $0x8] sm:$0xff] %vm675_vm0, %v2981_v38 }
 0xd88   : > { %4100 = shalt.err (!%p4097_p3)
}
 0xd89   : > { %s4149_s25 = smov 128   ;;  %s4150_s20 = smov 8  }
 0xd8a   : > { %3951 = dma.vmem_to_hbm [thread:$0]  (%p4264_p5), %s3000_s19, 256, %s3002_s28, %s2987_s27, %s4149_s25, %s4149_s25, %s4150_s20  }
 0xd8b PF: > { %p3957_p4 = scmp.ge.s32.totalorder %s4135_s16, 2  ;;  %s3016_s1 = sand.u32 1, %s4123_s29  }
 0xd8c   : > { %s3017_s26 = scalar_lea.sflag [#allocation3], %s3016_s1 }
 0xd8d   : > { %p3954_p7 = pnand %p3957_p4, %p4268_p6 }
 0xd8f   : > { %p3955_p8 = pneg %p3954_p7 }
 0xd91   : > { %4118 = dma.done.wait (%p3955_p8), %s3017_s26, 256  }
 0xd92   : > { %4120 = vsyncadd (%p3955_p8), %s3017_s26, 4294967040  ;;  %s4919_s16 = sld [smem:[#allocation6_spill]]  ;;  %s4922_s29 = smov %s4127_s30 }
 0xd93   : > { %s4920_s0 = sld [smem:[#allocation5_spill]] }
 0xd94   : > { %s4921_s15 = sld [smem:[#allocation7_spill]] }
 0xd98   : > { %p24_p9 = scmp.ge.s32.totalorder %s4919_s16, 4  }
 0xd99   : > { %s4923_s30 = smov %s4920_s0 }
 0xd9a   :  { %26 = sbr.rel (!%p24_p9) target bundleno = 6 (0x6), region = 147 }
 0xd9f   :  { %3023 = vsyncpa [#allocation3], 1 }
 0xda0   :  { %3025 = vsyncpa [#allocation3 + $0x1], 1 }

</bundles_post_ra>
